<compile_context>
chip_gen: v5e
topology: v5e:2x2
jax: 0.10.0
libtpu: 0.0.40
codegen_flags: <defaults>
</compile_context>

<pallas_src>
import jax
import jax.numpy as jnp
from jax.experimental import pallas as pl
from jax.experimental.pallas import tpu as pltpu

EPS = 1e-5


def _round_up(a, m):
    return (a + m - 1) // m * m


def resblock_pallas(x_nchw, params):
    """x_nchw: (N, C, H, W) float32. Returns (N, C, H, W)."""
    x = x_nchw.astype(jnp.float32)
    N, C, H, W = x.shape
    C4 = params["w1"].shape[-1]

    # ---- flat, frame-padded, channel-major layout --------------------------------------
    GH, GW = H + 4, W + 4            # each frame carries a 2-pixel halo (two 3x3 convs)
    FRAME = GH * GW
    M1 = GW + 1                      # max |dy*GW + dx| over the 9 taps
    XW = (N + 2) * FRAME             # one all-zero margin frame on each side

    # conv2 / output window: exactly the N real frames, lane-padded to a 128 multiple
    W2_START = FRAME
    W2_REAL = N * FRAME
    W2_LEN = _round_up(W2_REAL, 128)
    # conv1 / h1 window: must cover every position conv2 taps (W2 window +/- M1)
    W1_START = W2_START - M1
    W1_LEN = _round_up(W2_LEN + 2 * M1, 128)

    inv_cnt = 1.0 / float(N * H * W)
    taps = [(ky - 1, kx - 1) for ky in range(3) for kx in range(3)]

    def kernel(xf_ref, m_ref, w1_ref, g1_ref, be1_ref, w2_ref, g2_ref, be2_ref,
               out_ref, h1_ref):
        m1 = m_ref[...]                                    # (1, W1_LEN): 1.0 on real pixels

        # ---- conv1: 9-tap accumulate, no im2col staging (bias folds into BN mean) ------
        w1 = w1_ref[...]                                   # (9, C4, C)
        acc1 = None
        for t, (dy, dx) in enumerate(taps):
            off = W1_START + dy * GW + dx                  # static flat offset
            part = jnp.dot(w1[t], xf_ref[:, off:off + W1_LEN],
                           preferred_element_type=jnp.float32)      # (C4, W1_LEN)
            acc1 = part if acc1 is None else acc1 + part

        # ---- BN1 (masked batch stats) + ReLU; Dropout(p=0) == identity -----------------
        mean1 = jnp.sum(acc1 * m1, axis=1, keepdims=True) * inv_cnt
        d1 = acc1 - mean1
        var1 = jnp.sum(d1 * d1 * m1, axis=1, keepdims=True) * inv_cnt
        scale1 = g1_ref[...] * jax.lax.rsqrt(var1 + EPS)             # EUP rsqrt
        # the mask also zeroes every halo column -> this IS conv2's zero padding
        h1_ref[...] = jnp.maximum(d1 * scale1 + be1_ref[...], 0.0) * m1

        # ---- conv2: 9-tap accumulate over the output window -----------------------------
        w2 = w2_ref[...]                                   # (9, C, C4)
        acc2 = None
        for t, (dy, dx) in enumerate(taps):
            off = M1 + dy * GW + dx                        # window-local offset
            part = jnp.dot(w2[t], h1_ref[:, off:off + W2_LEN],
                           preferred_element_type=jnp.float32)      # (C, W2_LEN)
            acc2 = part if acc2 is None else acc2 + part

        # ---- BN2 + ReLU + residual; lane-dense (896-wide) store -------------------------
        m2 = m_ref[:, M1:M1 + W2_LEN]
        mean2 = jnp.sum(acc2 * m2, axis=1, keepdims=True) * inv_cnt
        d2 = acc2 - mean2
        var2 = jnp.sum(d2 * d2 * m2, axis=1, keepdims=True) * inv_cnt
        scale2 = g2_ref[...] * jax.lax.rsqrt(var2 + EPS)
        h2 = jnp.maximum(d2 * scale2 + be2_ref[...], 0.0)
        out_ref[...] = h2 + xf_ref[:, W2_START:W2_START + W2_LEN]

    # ---- host-side packing: ONE transpose + ONE pad (fused inside this jit) -------------
    xt = jnp.transpose(x, (1, 0, 2, 3))                                   # (C, N, H, W)
    xf = jnp.pad(xt, ((0, 0), (1, 1), (2, 2), (2, 2))).reshape(C, XW)     # (C, (N+2)*FRAME)

    # mask over the W1 window: 1.0 exactly on the N*H*W real-pixel columns
    pos = W1_START + jnp.arange(W1_LEN)
    fr, fi = pos // FRAME, pos % FRAME
    r, c = fi // GW, fi % GW
    mask = ((fr >= 1) & (fr <= N) & (r >= 2) & (r < 2 + H) &
            (c >= 2) & (c < 2 + W)).astype(jnp.float32).reshape(1, W1_LEN)

    # per-tap weights: tap t -> (Cout, Cin). Conv biases are dropped (cancel in BN mean).
    w1k = jnp.transpose(params["w1"].reshape(9, C, C4), (0, 2, 1))        # (9, C4, C)
    w2k = jnp.transpose(params["w2"].reshape(9, C4, C), (0, 2, 1))        # (9, C, C4)
    g1, be1 = params["g1"].reshape(C4, 1), params["be1"].reshape(C4, 1)
    g2, be2 = params["g2"].reshape(C, 1), params["be2"].reshape(C, 1)

    vmem = pl.BlockSpec(memory_space=pltpu.MemorySpace.VMEM)
    out2d = pl.pallas_call(
        kernel,
        out_shape=jax.ShapeDtypeStruct((C, W2_LEN), jnp.float32),
        in_specs=[vmem] * 8,
        out_specs=vmem,
        scratch_shapes=[pltpu.VMEM((C4, W1_LEN), jnp.float32)],
    )(xf, mask, w1k, g1, be1, w2k, g2, be2)

    # unpack: columns [0, N*FRAME) are exactly the N real frames -> slice+reshape+transpose
    out = out2d[:, :W2_REAL].reshape(C, N, GH, GW)[:, :, 2:2 + H, 2:2 + W]
    return jnp.transpose(out, (1, 0, 2, 3))


resblock_forward = jax.jit(resblock_pallas)


def make_params(key, num_ch=4, expansion=4):
    """Deterministic synthetic init matching ResBlock.__init__ shapes (HWIO weights)."""
    c4 = num_ch * expansion
    k1, k2, k3, k4 = jax.random.split(key, 4)
    w1 = jax.random.normal(k1, (3, 3, num_ch, c4), jnp.float32) * 0.1
    b1 = jax.random.normal(k2, (c4,), jnp.float32) * 0.1
    # conv2: zero_initialization=True -> uniform(-0.001, 0.001)
    w2 = jax.random.uniform(k3, (3, 3, c4, num_ch), jnp.float32, -0.001, 0.001)
    b2 = jax.random.uniform(k4, (num_ch,), jnp.float32, -0.001, 0.001)
    return {
        "w1": w1, "b1": b1,
        "g1": jnp.ones((c4,), jnp.float32), "be1": jnp.zeros((c4,), jnp.float32),
        "w2": w2, "b2": b2,
        "g2": jnp.ones((num_ch,), jnp.float32), "be2": jnp.zeros((num_ch,), jnp.float32),
    }


def ref_forward(x_nchw, p):
    """Pure-JAX reference (NHWC internally, conv biases kept) for correctness check."""
    x = jnp.transpose(x_nchw, (0, 2, 3, 1)).astype(jnp.float32)

    def conv(h, w, b):
        return jax.lax.conv_general_dilated(
            h, w, window_strides=(1, 1), padding=((1, 1), (1, 1)),
            dimension_numbers=("NHWC", "HWIO", "NHWC")) + b.reshape(1, 1, 1, -1)

    def bn(h, g, be):
        m = h.mean(axis=(0, 1, 2))
        v = ((h - m) ** 2).mean(axis=(0, 1, 2))
        return (h - m) / jnp.sqrt(v + EPS) * g + be

    h = jnp.maximum(bn(conv(x, p["w1"], p["b1"]), p["g1"], p["be1"]), 0.0)
    h = jnp.maximum(bn(conv(h, p["w2"], p["b2"]), p["g2"], p["be2"]), 0.0)
    return jnp.transpose(x + h, (0, 3, 1, 2))


if __name__ == "__main__":
    key = jax.random.PRNGKey(0)
    kx, kp = jax.random.split(key)

    num_ch, expansion = 4, 4
    x = jax.random.normal(kx, (2, num_ch, 16, 16), jnp.float32)   # NCHW, like PyTorch
    params = make_params(kp, num_ch=num_ch, expansion=expansion)

    out = jax.block_until_ready(resblock_forward(x, params))
    ref = jax.block_until_ready(ref_forward(x, params))

    assert out.shape == x.shape
    max_err = float(jnp.max(jnp.abs(out - ref)))
    assert jnp.allclose(out, ref, atol=2e-4, rtol=2e-4), f"mismatch vs reference: {max_err}"

    print("KERNEL_OK")
</pallas_src>

<mosaic_0001>
module attributes {stable_mosaic.version = 11 : i64} {
  func.func @kernel(%arg0: memref<4x1600xf32, #tpu.memory_space<vmem>>, %arg1: memref<1x1024xf32, #tpu.memory_space<vmem>>, %arg2: memref<9x16x4xf32, #tpu.memory_space<vmem>>, %arg3: memref<16x1xf32, #tpu.memory_space<vmem>>, %arg4: memref<16x1xf32, #tpu.memory_space<vmem>>, %arg5: memref<9x4x16xf32, #tpu.memory_space<vmem>>, %arg6: memref<4x1xf32, #tpu.memory_space<vmem>>, %arg7: memref<4x1xf32, #tpu.memory_space<vmem>>, %arg8: memref<4x896xf32, #tpu.memory_space<vmem>>, %arg9: memref<16x1024xf32, #tpu.memory_space<vmem>>) attributes {dimension_semantics = [], scalar_prefetch = 0 : i64, scratch_operands = 1 : i64, tpu.core_type = #tpu.core_type<tc>} {
    %c0 = arith.constant 0 : index
    %c0_0 = arith.constant 0 : index
    %0 = vector.load %arg1[%c0, %c0_0] : memref<1x1024xf32, #tpu.memory_space<vmem>>, vector<1x1024xf32>
    %c0_1 = arith.constant 0 : index
    %c0_2 = arith.constant 0 : index
    %c0_3 = arith.constant 0 : index
    %1 = vector.load %arg2[%c0_1, %c0_2, %c0_3] : memref<9x16x4xf32, #tpu.memory_space<vmem>>, vector<9x16x4xf32>
    %2 = vector.extract_strided_slice %1 {offsets = [0, 0, 0], sizes = [1, 16, 4], strides = [1, 1, 1]} : vector<9x16x4xf32> to vector<1x16x4xf32>
    %3 = vector.shape_cast %2 : vector<1x16x4xf32> to vector<16x4xf32>
    %c0_4 = arith.constant 0 : index
    %c358 = arith.constant 358 : index
    %4 = vector.load %arg0[%c0_4, %c358] : memref<4x1600xf32, #tpu.memory_space<vmem>>, vector<4x1024xf32>
    %cst = arith.constant dense<0.000000e+00> : vector<16x1024xf32>
    %5 = tpu.matmul %3, %4, %cst {dimension_numbers = #tpu.dot_dimension_numbers<[1], [0], [0], [1], [0, 0, 1, 1], [], []>} : vector<16x4xf32>, vector<4x1024xf32>, vector<16x1024xf32> -> vector<16x1024xf32>
    %6 = vector.extract_strided_slice %1 {offsets = [1, 0, 0], sizes = [1, 16, 4], strides = [1, 1, 1]} : vector<9x16x4xf32> to vector<1x16x4xf32>
    %7 = vector.shape_cast %6 : vector<1x16x4xf32> to vector<16x4xf32>
    %c0_5 = arith.constant 0 : index
    %c359 = arith.constant 359 : index
    %8 = vector.load %arg0[%c0_5, %c359] : memref<4x1600xf32, #tpu.memory_space<vmem>>, vector<4x1024xf32>
    %cst_6 = arith.constant dense<0.000000e+00> : vector<16x1024xf32>
    %9 = tpu.matmul %7, %8, %cst_6 {dimension_numbers = #tpu.dot_dimension_numbers<[1], [0], [0], [1], [0, 0, 1, 1], [], []>} : vector<16x4xf32>, vector<4x1024xf32>, vector<16x1024xf32> -> vector<16x1024xf32>
    %10 = arith.addf %5, %9 : vector<16x1024xf32>
    %11 = vector.extract_strided_slice %1 {offsets = [2, 0, 0], sizes = [1, 16, 4], strides = [1, 1, 1]} : vector<9x16x4xf32> to vector<1x16x4xf32>
    %12 = vector.shape_cast %11 : vector<1x16x4xf32> to vector<16x4xf32>
    %c0_7 = arith.constant 0 : index
    %c360 = arith.constant 360 : index
    %13 = vector.load %arg0[%c0_7, %c360] : memref<4x1600xf32, #tpu.memory_space<vmem>>, vector<4x1024xf32>
    %cst_8 = arith.constant dense<0.000000e+00> : vector<16x1024xf32>
    %14 = tpu.matmul %12, %13, %cst_8 {dimension_numbers = #tpu.dot_dimension_numbers<[1], [0], [0], [1], [0, 0, 1, 1], [], []>} : vector<16x4xf32>, vector<4x1024xf32>, vector<16x1024xf32> -> vector<16x1024xf32>
    %15 = arith.addf %10, %14 : vector<16x1024xf32>
    %16 = vector.extract_strided_slice %1 {offsets = [3, 0, 0], sizes = [1, 16, 4], strides = [1, 1, 1]} : vector<9x16x4xf32> to vector<1x16x4xf32>
    %17 = vector.shape_cast %16 : vector<1x16x4xf32> to vector<16x4xf32>
    %c0_9 = arith.constant 0 : index
    %c378 = arith.constant 378 : index
    %18 = vector.load %arg0[%c0_9, %c378] : memref<4x1600xf32, #tpu.memory_space<vmem>>, vector<4x1024xf32>
    %cst_10 = arith.constant dense<0.000000e+00> : vector<16x1024xf32>
    %19 = tpu.matmul %17, %18, %cst_10 {dimension_numbers = #tpu.dot_dimension_numbers<[1], [0], [0], [1], [0, 0, 1, 1], [], []>} : vector<16x4xf32>, vector<4x1024xf32>, vector<16x1024xf32> -> vector<16x1024xf32>
    %20 = arith.addf %15, %19 : vector<16x1024xf32>
    %21 = vector.extract_strided_slice %1 {offsets = [4, 0, 0], sizes = [1, 16, 4], strides = [1, 1, 1]} : vector<9x16x4xf32> to vector<1x16x4xf32>
    %22 = vector.shape_cast %21 : vector<1x16x4xf32> to vector<16x4xf32>
    %c0_11 = arith.constant 0 : index
    %c379 = arith.constant 379 : index
    %23 = vector.load %arg0[%c0_11, %c379] : memref<4x1600xf32, #tpu.memory_space<vmem>>, vector<4x1024xf32>
    %cst_12 = arith.constant dense<0.000000e+00> : vector<16x1024xf32>
    %24 = tpu.matmul %22, %23, %cst_12 {dimension_numbers = #tpu.dot_dimension_numbers<[1], [0], [0], [1], [0, 0, 1, 1], [], []>} : vector<16x4xf32>, vector<4x1024xf32>, vector<16x1024xf32> -> vector<16x1024xf32>
    %25 = arith.addf %20, %24 : vector<16x1024xf32>
    %26 = vector.extract_strided_slice %1 {offsets = [5, 0, 0], sizes = [1, 16, 4], strides = [1, 1, 1]} : vector<9x16x4xf32> to vector<1x16x4xf32>
    %27 = vector.shape_cast %26 : vector<1x16x4xf32> to vector<16x4xf32>
    %c0_13 = arith.constant 0 : index
    %c380 = arith.constant 380 : index
    %28 = vector.load %arg0[%c0_13, %c380] : memref<4x1600xf32, #tpu.memory_space<vmem>>, vector<4x1024xf32>
    %cst_14 = arith.constant dense<0.000000e+00> : vector<16x1024xf32>
    %29 = tpu.matmul %27, %28, %cst_14 {dimension_numbers = #tpu.dot_dimension_numbers<[1], [0], [0], [1], [0, 0, 1, 1], [], []>} : vector<16x4xf32>, vector<4x1024xf32>, vector<16x1024xf32> -> vector<16x1024xf32>
    %30 = arith.addf %25, %29 : vector<16x1024xf32>
    %31 = vector.extract_strided_slice %1 {offsets = [6, 0, 0], sizes = [1, 16, 4], strides = [1, 1, 1]} : vector<9x16x4xf32> to vector<1x16x4xf32>
    %32 = vector.shape_cast %31 : vector<1x16x4xf32> to vector<16x4xf32>
    %c0_15 = arith.constant 0 : index
    %c398 = arith.constant 398 : index
    %33 = vector.load %arg0[%c0_15, %c398] : memref<4x1600xf32, #tpu.memory_space<vmem>>, vector<4x1024xf32>
    %cst_16 = arith.constant dense<0.000000e+00> : vector<16x1024xf32>
    %34 = tpu.matmul %32, %33, %cst_16 {dimension_numbers = #tpu.dot_dimension_numbers<[1], [0], [0], [1], [0, 0, 1, 1], [], []>} : vector<16x4xf32>, vector<4x1024xf32>, vector<16x1024xf32> -> vector<16x1024xf32>
    %35 = arith.addf %30, %34 : vector<16x1024xf32>
    %36 = vector.extract_strided_slice %1 {offsets = [7, 0, 0], sizes = [1, 16, 4], strides = [1, 1, 1]} : vector<9x16x4xf32> to vector<1x16x4xf32>
    %37 = vector.shape_cast %36 : vector<1x16x4xf32> to vector<16x4xf32>
    %c0_17 = arith.constant 0 : index
    %c399 = arith.constant 399 : index
    %38 = vector.load %arg0[%c0_17, %c399] : memref<4x1600xf32, #tpu.memory_space<vmem>>, vector<4x1024xf32>
    %cst_18 = arith.constant dense<0.000000e+00> : vector<16x1024xf32>
    %39 = tpu.matmul %37, %38, %cst_18 {dimension_numbers = #tpu.dot_dimension_numbers<[1], [0], [0], [1], [0, 0, 1, 1], [], []>} : vector<16x4xf32>, vector<4x1024xf32>, vector<16x1024xf32> -> vector<16x1024xf32>
    %40 = arith.addf %35, %39 : vector<16x1024xf32>
    %41 = vector.extract_strided_slice %1 {offsets = [8, 0, 0], sizes = [1, 16, 4], strides = [1, 1, 1]} : vector<9x16x4xf32> to vector<1x16x4xf32>
    %42 = vector.shape_cast %41 : vector<1x16x4xf32> to vector<16x4xf32>
    %c0_19 = arith.constant 0 : index
    %c400 = arith.constant 400 : index
    %43 = vector.load %arg0[%c0_19, %c400] : memref<4x1600xf32, #tpu.memory_space<vmem>>, vector<4x1024xf32>
    %cst_20 = arith.constant dense<0.000000e+00> : vector<16x1024xf32>
    %44 = tpu.matmul %42, %43, %cst_20 {dimension_numbers = #tpu.dot_dimension_numbers<[1], [0], [0], [1], [0, 0, 1, 1], [], []>} : vector<16x4xf32>, vector<4x1024xf32>, vector<16x1024xf32> -> vector<16x1024xf32>
    %45 = arith.addf %40, %44 : vector<16x1024xf32>
    %46 = vector.broadcast %0 : vector<1x1024xf32> to vector<16x1024xf32>
    %47 = arith.mulf %45, %46 : vector<16x1024xf32>
    %cst_21 = arith.constant dense<0.000000e+00> : vector<16xf32>
    %48 = vector.multi_reduction <add>, %47, %cst_21 [1] : vector<16x1024xf32> to vector<16xf32>
    %49 = vector.shape_cast %48 : vector<16xf32> to vector<16x1xf32>
    %cst_22 = arith.constant 0.001953125 : f32
    %50 = vector.broadcast %cst_22 : f32 to vector<16x1xf32>
    %51 = arith.mulf %49, %50 : vector<16x1xf32>
    %52 = vector.broadcast %51 : vector<16x1xf32> to vector<16x1024xf32>
    %53 = arith.subf %45, %52 : vector<16x1024xf32>
    %54 = arith.mulf %53, %53 : vector<16x1024xf32>
    %55 = vector.broadcast %0 : vector<1x1024xf32> to vector<16x1024xf32>
    %56 = arith.mulf %54, %55 : vector<16x1024xf32>
    %cst_23 = arith.constant dense<0.000000e+00> : vector<16xf32>
    %57 = vector.multi_reduction <add>, %56, %cst_23 [1] : vector<16x1024xf32> to vector<16xf32>
    %58 = vector.shape_cast %57 : vector<16xf32> to vector<16x1xf32>
    %cst_24 = arith.constant 0.001953125 : f32
    %59 = vector.broadcast %cst_24 : f32 to vector<16x1xf32>
    %60 = arith.mulf %58, %59 : vector<16x1xf32>
    %c0_25 = arith.constant 0 : index
    %c0_26 = arith.constant 0 : index
    %61 = vector.load %arg3[%c0_25, %c0_26] : memref<16x1xf32, #tpu.memory_space<vmem>>, vector<16x1xf32>
    %cst_27 = arith.constant 9.99999974E-6 : f32
    %62 = vector.broadcast %cst_27 : f32 to vector<16x1xf32>
    %63 = arith.addf %60, %62 : vector<16x1xf32>
    %64 = math.rsqrt %63 : vector<16x1xf32>
    %65 = arith.mulf %61, %64 : vector<16x1xf32>
    %66 = vector.broadcast %65 : vector<16x1xf32> to vector<16x1024xf32>
    %67 = arith.mulf %53, %66 : vector<16x1024xf32>
    %c0_28 = arith.constant 0 : index
    %c0_29 = arith.constant 0 : index
    %68 = vector.load %arg4[%c0_28, %c0_29] : memref<16x1xf32, #tpu.memory_space<vmem>>, vector<16x1xf32>
    %69 = vector.broadcast %68 : vector<16x1xf32> to vector<16x1024xf32>
    %70 = arith.addf %67, %69 : vector<16x1024xf32>
    %cst_30 = arith.constant 0.000000e+00 : f32
    %71 = vector.broadcast %cst_30 : f32 to vector<16x1024xf32>
    %72 = arith.maximumf %70, %71 : vector<16x1024xf32>
    %73 = vector.broadcast %0 : vector<1x1024xf32> to vector<16x1024xf32>
    %74 = arith.mulf %72, %73 : vector<16x1024xf32>
    %c0_31 = arith.constant 0 : index
    %c0_32 = arith.constant 0 : index
    %75 = vector.load %arg9[%c0_31, %c0_32] : memref<16x1024xf32, #tpu.memory_space<vmem>>, vector<16x1024xf32>
    tpu.vector_store %arg9[%c0_31, %c0_32], %74 {strides = array<i32>} : memref<16x1024xf32, #tpu.memory_space<vmem>>, vector<16x1024xf32>,
    %c0_33 = arith.constant 0 : index
    %c0_34 = arith.constant 0 : index
    %c0_35 = arith.constant 0 : index
    %76 = vector.load %arg5[%c0_33, %c0_34, %c0_35] : memref<9x4x16xf32, #tpu.memory_space<vmem>>, vector<9x4x16xf32>
    %77 = vector.extract_strided_slice %76 {offsets = [0, 0, 0], sizes = [1, 4, 16], strides = [1, 1, 1]} : vector<9x4x16xf32> to vector<1x4x16xf32>
    %78 = vector.shape_cast %77 : vector<1x4x16xf32> to vector<4x16xf32>
    %c0_36 = arith.constant 0 : index
    %c0_37 = arith.constant 0 : index
    %79 = vector.load %arg9[%c0_36, %c0_37] : memref<16x1024xf32, #tpu.memory_space<vmem>>, vector<16x896xf32>
    %cst_38 = arith.constant dense<0.000000e+00> : vector<4x896xf32>
    %80 = tpu.matmul %78, %79, %cst_38 {dimension_numbers = #tpu.dot_dimension_numbers<[1], [0], [0], [1], [0, 0, 1, 1], [], []>} : vector<4x16xf32>, vector<16x896xf32>, vector<4x896xf32> -> vector<4x896xf32>
    %81 = vector.extract_strided_slice %76 {offsets = [1, 0, 0], sizes = [1, 4, 16], strides = [1, 1, 1]} : vector<9x4x16xf32> to vector<1x4x16xf32>
    %82 = vector.shape_cast %81 : vector<1x4x16xf32> to vector<4x16xf32>
    %c0_39 = arith.constant 0 : index
    %c1 = arith.constant 1 : index
    %83 = vector.load %arg9[%c0_39, %c1] : memref<16x1024xf32, #tpu.memory_space<vmem>>, vector<16x896xf32>
    %cst_40 = arith.constant dense<0.000000e+00> : vector<4x896xf32>
    %84 = tpu.matmul %82, %83, %cst_40 {dimension_numbers = #tpu.dot_dimension_numbers<[1], [0], [0], [1], [0, 0, 1, 1], [], []>} : vector<4x16xf32>, vector<16x896xf32>, vector<4x896xf32> -> vector<4x896xf32>
    %85 = arith.addf %80, %84 : vector<4x896xf32>
    %86 = vector.extract_strided_slice %76 {offsets = [2, 0, 0], sizes = [1, 4, 16], strides = [1, 1, 1]} : vector<9x4x16xf32> to vector<1x4x16xf32>
    %87 = vector.shape_cast %86 : vector<1x4x16xf32> to vector<4x16xf32>
    %c0_41 = arith.constant 0 : index
    %c2 = arith.constant 2 : index
    %88 = vector.load %arg9[%c0_41, %c2] : memref<16x1024xf32, #tpu.memory_space<vmem>>, vector<16x896xf32>
    %cst_42 = arith.constant dense<0.000000e+00> : vector<4x896xf32>
    %89 = tpu.matmul %87, %88, %cst_42 {dimension_numbers = #tpu.dot_dimension_numbers<[1], [0], [0], [1], [0, 0, 1, 1], [], []>} : vector<4x16xf32>, vector<16x896xf32>, vector<4x896xf32> -> vector<4x896xf32>
    %90 = arith.addf %85, %89 : vector<4x896xf32>
    %91 = vector.extract_strided_slice %76 {offsets = [3, 0, 0], sizes = [1, 4, 16], strides = [1, 1, 1]} : vector<9x4x16xf32> to vector<1x4x16xf32>
    %92 = vector.shape_cast %91 : vector<1x4x16xf32> to vector<4x16xf32>
    %c0_43 = arith.constant 0 : index
    %c20 = arith.constant 20 : index
    %93 = vector.load %arg9[%c0_43, %c20] : memref<16x1024xf32, #tpu.memory_space<vmem>>, vector<16x896xf32>
    %cst_44 = arith.constant dense<0.000000e+00> : vector<4x896xf32>
    %94 = tpu.matmul %92, %93, %cst_44 {dimension_numbers = #tpu.dot_dimension_numbers<[1], [0], [0], [1], [0, 0, 1, 1], [], []>} : vector<4x16xf32>, vector<16x896xf32>, vector<4x896xf32> -> vector<4x896xf32>
    %95 = arith.addf %90, %94 : vector<4x896xf32>
    %96 = vector.extract_strided_slice %76 {offsets = [4, 0, 0], sizes = [1, 4, 16], strides = [1, 1, 1]} : vector<9x4x16xf32> to vector<1x4x16xf32>
    %97 = vector.shape_cast %96 : vector<1x4x16xf32> to vector<4x16xf32>
    %c0_45 = arith.constant 0 : index
    %c21 = arith.constant 21 : index
    %98 = vector.load %arg9[%c0_45, %c21] : memref<16x1024xf32, #tpu.memory_space<vmem>>, vector<16x896xf32>
    %cst_46 = arith.constant dense<0.000000e+00> : vector<4x896xf32>
    %99 = tpu.matmul %97, %98, %cst_46 {dimension_numbers = #tpu.dot_dimension_numbers<[1], [0], [0], [1], [0, 0, 1, 1], [], []>} : vector<4x16xf32>, vector<16x896xf32>, vector<4x896xf32> -> vector<4x896xf32>
    %100 = arith.addf %95, %99 : vector<4x896xf32>
    %101 = vector.extract_strided_slice %76 {offsets = [5, 0, 0], sizes = [1, 4, 16], strides = [1, 1, 1]} : vector<9x4x16xf32> to vector<1x4x16xf32>
    %102 = vector.shape_cast %101 : vector<1x4x16xf32> to vector<4x16xf32>
    %c0_47 = arith.constant 0 : index
    %c22 = arith.constant 22 : index
    %103 = vector.load %arg9[%c0_47, %c22] : memref<16x1024xf32, #tpu.memory_space<vmem>>, vector<16x896xf32>
    %cst_48 = arith.constant dense<0.000000e+00> : vector<4x896xf32>
    %104 = tpu.matmul %102, %103, %cst_48 {dimension_numbers = #tpu.dot_dimension_numbers<[1], [0], [0], [1], [0, 0, 1, 1], [], []>} : vector<4x16xf32>, vector<16x896xf32>, vector<4x896xf32> -> vector<4x896xf32>
    %105 = arith.addf %100, %104 : vector<4x896xf32>
    %106 = vector.extract_strided_slice %76 {offsets = [6, 0, 0], sizes = [1, 4, 16], strides = [1, 1, 1]} : vector<9x4x16xf32> to vector<1x4x16xf32>
    %107 = vector.shape_cast %106 : vector<1x4x16xf32> to vector<4x16xf32>
    %c0_49 = arith.constant 0 : index
    %c40 = arith.constant 40 : index
    %108 = vector.load %arg9[%c0_49, %c40] : memref<16x1024xf32, #tpu.memory_space<vmem>>, vector<16x896xf32>
    %cst_50 = arith.constant dense<0.000000e+00> : vector<4x896xf32>
    %109 = tpu.matmul %107, %108, %cst_50 {dimension_numbers = #tpu.dot_dimension_numbers<[1], [0], [0], [1], [0, 0, 1, 1], [], []>} : vector<4x16xf32>, vector<16x896xf32>, vector<4x896xf32> -> vector<4x896xf32>
    %110 = arith.addf %105, %109 : vector<4x896xf32>
    %111 = vector.extract_strided_slice %76 {offsets = [7, 0, 0], sizes = [1, 4, 16], strides = [1, 1, 1]} : vector<9x4x16xf32> to vector<1x4x16xf32>
    %112 = vector.shape_cast %111 : vector<1x4x16xf32> to vector<4x16xf32>
    %c0_51 = arith.constant 0 : index
    %c41 = arith.constant 41 : index
    %113 = vector.load %arg9[%c0_51, %c41] : memref<16x1024xf32, #tpu.memory_space<vmem>>, vector<16x896xf32>
    %cst_52 = arith.constant dense<0.000000e+00> : vector<4x896xf32>
    %114 = tpu.matmul %112, %113, %cst_52 {dimension_numbers = #tpu.dot_dimension_numbers<[1], [0], [0], [1], [0, 0, 1, 1], [], []>} : vector<4x16xf32>, vector<16x896xf32>, vector<4x896xf32> -> vector<4x896xf32>
    %115 = arith.addf %110, %114 : vector<4x896xf32>
    %116 = vector.extract_strided_slice %76 {offsets = [8, 0, 0], sizes = [1, 4, 16], strides = [1, 1, 1]} : vector<9x4x16xf32> to vector<1x4x16xf32>
    %117 = vector.shape_cast %116 : vector<1x4x16xf32> to vector<4x16xf32>
    %c0_53 = arith.constant 0 : index
    %c42 = arith.constant 42 : index
    %118 = vector.load %arg9[%c0_53, %c42] : memref<16x1024xf32, #tpu.memory_space<vmem>>, vector<16x896xf32>
    %cst_54 = arith.constant dense<0.000000e+00> : vector<4x896xf32>
    %119 = tpu.matmul %117, %118, %cst_54 {dimension_numbers = #tpu.dot_dimension_numbers<[1], [0], [0], [1], [0, 0, 1, 1], [], []>} : vector<4x16xf32>, vector<16x896xf32>, vector<4x896xf32> -> vector<4x896xf32>
    %120 = arith.addf %115, %119 : vector<4x896xf32>
    %c0_55 = arith.constant 0 : index
    %c21_56 = arith.constant 21 : index
    %121 = vector.load %arg1[%c0_55, %c21_56] : memref<1x1024xf32, #tpu.memory_space<vmem>>, vector<1x896xf32>
    %122 = vector.broadcast %121 : vector<1x896xf32> to vector<4x896xf32>
    %123 = arith.mulf %120, %122 : vector<4x896xf32>
    %cst_57 = arith.constant dense<0.000000e+00> : vector<4xf32>
    %124 = vector.multi_reduction <add>, %123, %cst_57 [1] : vector<4x896xf32> to vector<4xf32>
    %125 = vector.shape_cast %124 : vector<4xf32> to vector<4x1xf32>
    %cst_58 = arith.constant 0.001953125 : f32
    %126 = vector.broadcast %cst_58 : f32 to vector<4x1xf32>
    %127 = arith.mulf %125, %126 : vector<4x1xf32>
    %128 = vector.broadcast %127 : vector<4x1xf32> to vector<4x896xf32>
    %129 = arith.subf %120, %128 : vector<4x896xf32>
    %130 = arith.mulf %129, %129 : vector<4x896xf32>
    %131 = vector.broadcast %121 : vector<1x896xf32> to vector<4x896xf32>
    %132 = arith.mulf %130, %131 : vector<4x896xf32>
    %cst_59 = arith.constant dense<0.000000e+00> : vector<4xf32>
    %133 = vector.multi_reduction <add>, %132, %cst_59 [1] : vector<4x896xf32> to vector<4xf32>
    %134 = vector.shape_cast %133 : vector<4xf32> to vector<4x1xf32>
    %cst_60 = arith.constant 0.001953125 : f32
    %135 = vector.broadcast %cst_60 : f32 to vector<4x1xf32>
    %136 = arith.mulf %134, %135 : vector<4x1xf32>
    %c0_61 = arith.constant 0 : index
    %c0_62 = arith.constant 0 : index
    %137 = vector.load %arg6[%c0_61, %c0_62] : memref<4x1xf32, #tpu.memory_space<vmem>>, vector<4x1xf32>
    %cst_63 = arith.constant 9.99999974E-6 : f32
    %138 = vector.broadcast %cst_63 : f32 to vector<4x1xf32>
    %139 = arith.addf %136, %138 : vector<4x1xf32>
    %140 = math.rsqrt %139 : vector<4x1xf32>
    %141 = arith.mulf %137, %140 : vector<4x1xf32>
    %142 = vector.broadcast %141 : vector<4x1xf32> to vector<4x896xf32>
    %143 = arith.mulf %129, %142 : vector<4x896xf32>
    %c0_64 = arith.constant 0 : index
    %c0_65 = arith.constant 0 : index
    %144 = vector.load %arg7[%c0_64, %c0_65] : memref<4x1xf32, #tpu.memory_space<vmem>>, vector<4x1xf32>
    %145 = vector.broadcast %144 : vector<4x1xf32> to vector<4x896xf32>
    %146 = arith.addf %143, %145 : vector<4x896xf32>
    %cst_66 = arith.constant 0.000000e+00 : f32
    %147 = vector.broadcast %cst_66 : f32 to vector<4x896xf32>
    %148 = arith.maximumf %146, %147 : vector<4x896xf32>
    %c0_67 = arith.constant 0 : index
    %c400_68 = arith.constant 400 : index
    %149 = vector.load %arg0[%c0_67, %c400_68] : memref<4x1600xf32, #tpu.memory_space<vmem>>, vector<4x896xf32>
    %150 = arith.addf %148, %149 : vector<4x896xf32>
    %c0_69 = arith.constant 0 : index
    %c0_70 = arith.constant 0 : index
    %151 = vector.load %arg8[%c0_69, %c0_70] : memref<4x896xf32, #tpu.memory_space<vmem>>, vector<4x896xf32>
    tpu.vector_store %arg8[%c0_69, %c0_70], %150 {strides = array<i32>} : memref<4x896xf32, #tpu.memory_space<vmem>>, vector<4x896xf32>,
    return
  }
}

</mosaic_0001>

<bundles_post_ra>
// kernel: resblock_pallas.1
= control target key start
LH: loop header
LB: loop body
LE: loop exit
PB: predicated region body
PF: predicated region fallthrough
CT: control target
= control target key end

     0   :  { %s5474_s13 = smov 25   ;;  %s5475_s16 = smov 26   ;;  %vm93_vm0 = vcmask 203776   ;;  %vm109_vm1 = vcmask 1043456   ;;  %vm102_vm2 = vcmask 31744   ;;  %vm345_vm3 = vcmask 211968   ;;  %s7609_s0 = inlined_call_operand.vmem [shape: f32[4,1600], index: 0, kind: input, shape index: {}]   ;;  %s7610_s2 = inlined_call_operand.vmem [shape: f32[9,16,4], index: 2, kind: input, shape index: {}]   ;;  %s7611_s1 = inlined_call_operand.vmem [shape: f32[1,1024], index: 1, kind: input, shape index: {}]   ;;  %s7612_s4 = inlined_call_operand.vmem [shape: f32[16,1], index: 4, kind: input, shape index: {}]   ;;  %s7613_s3 = inlined_call_operand.vmem [shape: f32[16,1], index: 3, kind: input, shape index: {}]   ;;  %s7614_s5 = inlined_call_operand.vmem [shape: f32[9,4,16], index: 5, kind: input, shape index: {}]   ;;  %s7615_s7 = inlined_call_operand.vmem [shape: f32[4,1], index: 7, kind: input, shape index: {}]   ;;  %s7616_s6 = inlined_call_operand.vmem [shape: f32[4,1], index: 6, kind: input, shape index: {}]   ;;  %s7617_s8 = inlined_call_operand.vmem [shape: f32[4,896], index: 8, kind: output, shape index: {}]  }
   0x1   :  { %v5540_v0 = vld [vmem:[%s7609_s0 + $0x10] sm:$0xff]  ;;  %v5545_v1 = vld [vmem:[%s7609_s0 + $0x8] sm:$0xff]  ;;  %v5550_v2 = vld [vmem:[%s7609_s0 + $0x20] sm:$0xff]  ;;  %s5476_s17 = smov 24   ;;  %s5477_s20 = smov 6   ;;  %vm605_vm4 = vcmask 195584  }
   0x2   :  { %60 = vst [vmem:[#allocation1 + $0x10] ss:$2 sm:$0xff] %v5540_v0  ;;  %v5556_v3 = vld [vmem:[%s7609_s0 + $0x18] sm:$0xff]  ;;  %v52_v8 = vld [vmem:[%s7609_s0 + $0x28] sm:$0xf]  ;;  %s5478_s23 = smov 5  }
   0x3   :  { %58 = vst [vmem:[#allocation1] ss:$2 sm:$0xff] %v5545_v1  ;;  %v564_v33 = vld [vmem:[%s7609_s0 + $0x28] sm:$0xf]  ;;  %s5479_s26 = smov 4   ;;  %v32_v62 = vld [vmem:[%s7610_s2 + $0x10] sm:$0xff] }
   0x4   :  { %64 = vst [vmem:[#allocation1 + $0x30] ss:$2 sm:$0xff] %v5550_v2  ;;  %v840_v38 = vld [vmem:[%s7609_s0 + $0x28] sm:$0xf]  ;;  %s5480_s19 = smov 114   ;;  %vm881_vm5 = vcmask 48128  }
   0x5   :  { %62 = vst [vmem:[#allocation1 + $0x20] ss:$2 sm:$0xff] %v5556_v3  ;;  %v1116_v53 = vld [vmem:[%s7609_s0 + $0x28] sm:$0xf]  ;;  %s5482_s11 = smov 112   ;;  %vm1157_vm6 = vcmask 39936  }
   0x6   :  { %vm1708_vm7 = vcmask 932864   ;;  %vm1984_vm8 = vcmask 924672   ;;  %vm2260_vm9 = vcmask 916480   ;;  %s5485_s25 = smov 126   ;;  %s5487_s27 = smov 107  }
   0x7   :  { %s5488_s28 = smov 106   ;;  %s5489_s29 = smov 88  }
   0x8   :  { %s5490_s30 = smov 86   ;;  %s5491_s9 = smov 87  }
   0x9   :  { %v67_v4 = vld.sshfl [vmem:[#allocation1 + $0x10] sm:$0xff pattern:$0x75316420]  ;;  %v68_v5 = vld.sshfl [vmem:[#allocation1 + $0x18] sm:$0xff pattern:$0x75316420] }
   0xa   :  { %79 = vrot.lane.b32.xlu0 %v67_v4, %s5474_s13  ;;  %v65_v6 = vld.sshfl [vmem:[#allocation1] sm:$0xff pattern:$0x75316420]  ;;  %312 = vst [vmem:[#allocation1 + $0x10] ss:$2 sm:$0xff] %v5540_v0 }
   0xb   :  { %75 = vrot.lane.b32.xlu1 %v65_v6, %s5474_s13  ;;  %v66_v7 = vld.sshfl [vmem:[#allocation1 + $0x8] sm:$0xff pattern:$0x75316420]  ;;  %v72_v11 = vld.sshfl [vmem:[#allocation1 + $0x38] sm:$0xff pattern:$0x75316420] }
   0xc   :  { %v70_v9 = vld.sshfl [vmem:[#allocation1 + $0x28] sm:$0xff pattern:$0x75316420]  ;;  %v69_v10 = vld.sshfl [vmem:[#allocation1 + $0x20] sm:$0xff pattern:$0x75316420] }
   0xd   :  { %83 = vrot.lane.b32.xlu2 %v69_v10, %s5474_s13  ;;  %314 = vst [vmem:[#allocation1 + $0x20] ss:$2 sm:$0xff] %v5556_v3  ;;  %v71_v12 = vld.sshfl [vmem:[#allocation1 + $0x30] sm:$0xff pattern:$0x75316420] }
   0xe   :  { %73 = vst [vmem:[#allocation1] ss:$2 sm:$0xff] %v52_v8 }
   0xf   :  { %316 = vst [vmem:[#allocation1 + $0x30] ss:$2 sm:$0xff] %v5550_v2 }
  0x11   :  { %v319_v13 = vld.sshfl [vmem:[#allocation1 + $0x10] sm:$0xff pattern:$0x75316420]  ;;  %v320_v14 = vld.sshfl [vmem:[#allocation1 + $0x18] sm:$0xff pattern:$0x75316420] }
  0x12   :  { %81 = vrot.lane.b32.xlu0 %v68_v5, %s5474_s13  ;;  %572 = vst [vmem:[#allocation1 + $0x10] ss:$2 sm:$0xff] %v5540_v0 }
  0x13   :  { %77 = vrot.lane.b32.xlu1 %v66_v7, %s5474_s13 }
  0x14   :  { %v321_v15 = vld.sshfl [vmem:[#allocation1 + $0x20] sm:$0xff pattern:$0x75316420]  ;;  %v322_v16 = vld.sshfl [vmem:[#allocation1 + $0x28] sm:$0xff pattern:$0x75316420] }
  0x15   :  { %v74_v17 = vld.sshfl [vmem:[#allocation1] sm:$0xff pattern:$0x75316420]  ;;  %87 = vrot.lane.b32.xlu2 %v71_v12, %s5474_s13  ;;  %574 = vst [vmem:[#allocation1 + $0x20] ss:$2 sm:$0xff] %v5556_v3 }
  0x16   :  { %310 = vst [vmem:[#allocation1] ss:$2 sm:$0xff] %v5545_v1  ;;  %v324_v22 = vld.sshfl [vmem:[#allocation1 + $0x38] sm:$0xff pattern:$0x75316420] }
  0x17   :  { %v323_v24 = vld.sshfl [vmem:[#allocation1 + $0x30] sm:$0xff pattern:$0x75316420] }
  0x18   :  { %576 = vst [vmem:[#allocation1 + $0x30] ss:$2 sm:$0xff] %v5550_v2 }
  0x19   :  { %v580_v18 = vld.sshfl [vmem:[#allocation1 + $0x18] sm:$0xff pattern:$0x75316420]  ;;  %v579_v19 = vld.sshfl [vmem:[#allocation1 + $0x10] sm:$0xff pattern:$0x75316420] }
  0x1a   :  { %89 = vrot.lane.b32.xlu0 %v72_v11, %s5474_s13  ;;  %848 = vst [vmem:[#allocation1 + $0x10] ss:$2 sm:$0xff] %v5540_v0 }
  0x1b   :  { %85 = vrot.lane.b32.xlu1 %v70_v9, %s5474_s13  ;;  %v33_v9 = vld [vmem:[%s7610_s2 + $0x18] sm:$0xff] }
  0x1c   :  { %v581_v23 = vld.sshfl [vmem:[#allocation1 + $0x20] sm:$0xff pattern:$0x75316420]  ;;  %v582_v25 = vld.sshfl [vmem:[#allocation1 + $0x28] sm:$0xff pattern:$0x75316420] }
  0x1d   :  { %v318_v20 = vld.sshfl [vmem:[#allocation1 + $0x8] sm:$0xff pattern:$0x75316420]  ;;  %91 = vrot.lane.b32.xlu2 %v74_v17, %s5474_s13  ;;  %v317_v21 = vld.sshfl [vmem:[#allocation1] sm:$0xff pattern:$0x75316420] }
  0x1e   :  { %325 = vst [vmem:[#allocation1] ss:$2 sm:$0xff] %v52_v8 }
  0x1f   :  { %850 = vst [vmem:[#allocation1 + $0x20] ss:$2 sm:$0xff] %v5556_v3  ;;  %v584_v31 = vld.sshfl [vmem:[#allocation1 + $0x38] sm:$0xff pattern:$0x75316420] }
  0x20   :  { %v583_v34 = vld.sshfl [vmem:[#allocation1 + $0x30] sm:$0xff pattern:$0x75316420] }
  0x21   :  { %v856_v27 = vld.sshfl [vmem:[#allocation1 + $0x18] sm:$0xff pattern:$0x75316420]  ;;  %v855_v28 = vld.sshfl [vmem:[#allocation1 + $0x10] sm:$0xff pattern:$0x75316420] }
  0x22   :  { %331 = vrot.lane.b32.xlu0 %v319_v13, %s5475_s16  ;;  %1124 = vst [vmem:[#allocation1 + $0x10] ss:$2 sm:$0xff] %v5540_v0 }
  0x23   :  { %333 = vrot.lane.b32.xlu1 %v320_v14, %s5475_s16  ;;  %852 = vst [vmem:[#allocation1 + $0x30] ss:$2 sm:$0xff] %v5550_v2 }
  0x25   :  { %327 = vrot.lane.b32.xlu2 %v317_v21, %s5475_s16  ;;  %v326_v26 = vld.sshfl [vmem:[#allocation1] sm:$0xff pattern:$0x75316420] }
  0x26   :  { %570 = vst [vmem:[#allocation1] ss:$2 sm:$0xff] %v5545_v1  ;;  %v857_v32 = vld.sshfl [vmem:[#allocation1 + $0x20] sm:$0xff pattern:$0x75316420] }
  0x27   :  { %v858_v35 = vld.sshfl [vmem:[#allocation1 + $0x28] sm:$0xff pattern:$0x75316420] }
  0x28   :  { %1126 = vst [vmem:[#allocation1 + $0x20] ss:$2 sm:$0xff] %v5556_v3 }
  0x29   :  { %v1132_v40 = vld.sshfl [vmem:[#allocation1 + $0x18] sm:$0xff pattern:$0x75316420]  ;;  %v1131_v41 = vld.sshfl [vmem:[#allocation1 + $0x10] sm:$0xff pattern:$0x75316420] }
  0x2a   :  { %329 = vrot.lane.b32.xlu0 %v318_v20, %s5475_s16  ;;  %v860_v42 = vld.sshfl [vmem:[#allocation1 + $0x38] sm:$0xff pattern:$0x75316420]  ;;  %1400 = vst [vmem:[#allocation1 + $0x10] ss:$2 sm:$0xff] %v5540_v0 }
  0x2b   :  { %335 = vrot.lane.b32.xlu1 %v321_v15, %s5475_s16  ;;  %v859_v46 = vld.sshfl [vmem:[#allocation1 + $0x30] sm:$0xff pattern:$0x75316420] }
  0x2c   :  { %1128 = vst [vmem:[#allocation1 + $0x30] ss:$2 sm:$0xff] %v5550_v2 }
  0x2d   :  { %339 = vrot.lane.b32.xlu2 %v323_v24, %s5475_s16  ;;  %v577_v29 = vld.sshfl [vmem:[#allocation1] sm:$0xff pattern:$0x75316420]  ;;  %v578_v30 = vld.sshfl [vmem:[#allocation1 + $0x8] sm:$0xff pattern:$0x75316420] }
  0x2e   :  { %585 = vst [vmem:[#allocation1] ss:$2 sm:$0xff] %v564_v33  ;;  %v5667_v24 = vld [vmem:[%s7609_s0 + $0x14] sm:$0xff] }
  0x2f   :  { %v1133_v47 = vld.sshfl [vmem:[#allocation1 + $0x20] sm:$0xff pattern:$0x75316420]  ;;  %v1134_v48 = vld.sshfl [vmem:[#allocation1 + $0x28] sm:$0xff pattern:$0x75316420] }
  0x30   :  { %1402 = vst [vmem:[#allocation1 + $0x20] ss:$2 sm:$0xff] %v5556_v3 }
  0x31   :  { %v1408_v56 = vld.sshfl [vmem:[#allocation1 + $0x18] sm:$0xff pattern:$0x75316420]  ;;  %v1407_v57 = vld.sshfl [vmem:[#allocation1 + $0x10] sm:$0xff pattern:$0x75316420] }
  0x32   :  { %341 = vrot.lane.b32.xlu0 %v324_v22, %s5475_s16  ;;  %1675 = vst [vmem:[#allocation1 + $0x10] ss:$2 sm:$0xff] %v5667_v24 }
  0x33   :  { %337 = vrot.lane.b32.xlu1 %v322_v16, %s5475_s16  ;;  %v1136_v50 = vld.sshfl [vmem:[#allocation1 + $0x38] sm:$0xff pattern:$0x75316420]  ;;  %v1135_v6 = vld.sshfl [vmem:[#allocation1 + $0x30] sm:$0xff pattern:$0x75316420] }
  0x34   :  { %1404 = vst [vmem:[#allocation1 + $0x30] ss:$2 sm:$0xff] %v5550_v2 }
  0x35   :  { %343 = vrot.lane.b32.xlu2 %v326_v26, %s5475_s16  ;;  %v586_v36 = vld.sshfl [vmem:[#allocation1] sm:$0xff pattern:$0x75316420] }
  0x36   :  { %846 = vst [vmem:[#allocation1] ss:$2 sm:$0xff] %v5545_v1 }
  0x37   :  { %v1409_v5 = vld.sshfl [vmem:[#allocation1 + $0x20] sm:$0xff pattern:$0x75316420]  ;;  %v1410_v13 = vld.sshfl [vmem:[#allocation1 + $0x28] sm:$0xff pattern:$0x75316420] }
  0x39   :  { %v1683_v33 = vld.sshfl [vmem:[#allocation1 + $0x18] sm:$0xff pattern:$0x75316420] }
  0x3a   :  { %591 = vrot.lane.b32.xlu0 %v579_v19, %s5476_s17 }
  0x3b   :  { %593 = vrot.lane.b32.xlu1 %v580_v18, %s5476_s17  ;;  %v1412_v18 = vld.sshfl [vmem:[#allocation1 + $0x38] sm:$0xff pattern:$0x75316420] }
  0x3d   :  { %587 = vrot.lane.b32.xlu2 %v577_v29, %s5476_s17  ;;  %v854_v37 = vld.sshfl [vmem:[#allocation1 + $0x8] sm:$0xff pattern:$0x75316420]  ;;  %v853_v39 = vld.sshfl [vmem:[#allocation1] sm:$0xff pattern:$0x75316420] }
  0x3e   :  { %861 = vst [vmem:[#allocation1] ss:$2 sm:$0xff] %v840_v38  ;;  %v5694_v38 = vld [vmem:[%s7609_s0 + $0x1c] sm:$0xff] }
  0x3f   :  { %1677 = vst [vmem:[#allocation1 + $0x20] ss:$2 sm:$0xff] %v5694_v38 }
  0x42   :  { %589 = vrot.lane.b32.xlu0 %v578_v30, %s5476_s17  ;;  %v30_v30 = vld [vmem:[%s7610_s2] sm:$0xff] }
  0x43   :  { %595 = vrot.lane.b32.xlu1 %v581_v23, %s5476_s17 }
  0x45   :  { %599 = vrot.lane.b32.xlu2 %v583_v34, %s5476_s17  ;;  %v862_v43 = vld.sshfl [vmem:[#allocation1] sm:$0xff pattern:$0x75316420] }
  0x46   :  { %1122 = vst [vmem:[#allocation1] ss:$2 sm:$0xff] %v5545_v1 }
  0x4a   :  { %601 = vrot.lane.b32.xlu0 %v584_v31, %s5476_s17 }
  0x4b   :  { %597 = vrot.lane.b32.xlu1 %v582_v25, %s5476_s17  ;;  %v1392_v25 = vld [vmem:[%s7609_s0 + $0x28] sm:$0xf] }
  0x4d   :  { %603 = vrot.lane.b32.xlu2 %v586_v36, %s5476_s17  ;;  %v1130_v45 = vld.sshfl [vmem:[#allocation1 + $0x8] sm:$0xff pattern:$0x75316420]  ;;  %v1129_v54 = vld.sshfl [vmem:[#allocation1] sm:$0xff pattern:$0x75316420] }
  0x4e   :  { %1137 = vst [vmem:[#allocation1] ss:$2 sm:$0xff] %v1116_v53 }
  0x52   :  { %867 = vrot.lane.b32.xlu0 %v855_v28, %s5477_s20 }
  0x53   :  { %869 = vrot.lane.b32.xlu1 %v856_v27, %s5477_s20 }
  0x55   :  { %863 = vrot.lane.b32.xlu2 %v853_v39, %s5477_s20  ;;  %v1138_v63 = vld.sshfl [vmem:[#allocation1] sm:$0xff pattern:$0x75316420]  ;;  %v5699_v39 = vld [vmem:[%s7609_s0 + $0xc] sm:$0xff] }
  0x56   :  { %1398 = vst [vmem:[#allocation1] ss:$2 sm:$0xff] %v5545_v1 }
  0x5a   :  { %865 = vrot.lane.b32.xlu0 %v854_v37, %s5477_s20 }
  0x5b   :  { %871 = vrot.lane.b32.xlu1 %v857_v32, %s5477_s20 }
  0x5d   :  { %875 = vrot.lane.b32.xlu2 %v859_v46, %s5477_s20  ;;  %v1406_v2 = vld.sshfl [vmem:[#allocation1 + $0x8] sm:$0xff pattern:$0x75316420]  ;;  %v1405_v26 = vld.sshfl [vmem:[#allocation1] sm:$0xff pattern:$0x75316420] }
  0x5e   :  { %1413 = vst [vmem:[#allocation1] ss:$2 sm:$0xff] %v1392_v25  ;;  %v1684_v46 = vld.sshfl [vmem:[#allocation1 + $0x20] sm:$0xff pattern:$0x75316420] }
  0x62   :  { %877 = vrot.lane.b32.xlu0 %v860_v42, %s5477_s20 }
  0x63   :  { %873 = vrot.lane.b32.xlu1 %v858_v35, %s5477_s20 }
  0x65   :  { %879 = vrot.lane.b32.xlu2 %v862_v43, %s5477_s20  ;;  %v1414_v37 = vld.sshfl [vmem:[#allocation1] sm:$0xff pattern:$0x75316420]  ;;  %v31_v43 = vld [vmem:[%s7610_s2 + $0x8] sm:$0xff] }
  0x66   :  { %1673 = vst [vmem:[#allocation1] ss:$2 sm:$0xff] %v5699_v39 }
  0x67   :  { %v84_v44 = vpop.permute.xlu2 %83 }
  0x6a   :  { %1143 = vrot.lane.b32.xlu0 %v1131_v41, %s5478_s23  ;;  %v1411_v41 = vld.sshfl [vmem:[#allocation1 + $0x30] sm:$0xff pattern:$0x75316420] }
  0x6b   :  { %1145 = vrot.lane.b32.xlu1 %v1132_v40, %s5478_s23  ;;  %v1682_v40 = vld.sshfl [vmem:[#allocation1 + $0x10] sm:$0xff pattern:$0x75316420] }
  0x6c   :  { %1951 = vst [vmem:[#allocation1 + $0x10] ss:$2 sm:$0xff] %v5667_v24 }
  0x6d   :  { %1139 = vrot.lane.b32.xlu2 %v1129_v54, %s5478_s23  ;;  %v5731_v54 = vld [vmem:[%s7609_s0 + $0x24] sm:$0xff] }
  0x6e   :  { %1679 = vst [vmem:[#allocation1 + $0x30] ss:$2 sm:$0xff] %v5731_v54 }
  0x6f   :  { %v88_v49 = vpop.permute.xlu2 %87 }
  0x72   :  { %1141 = vrot.lane.b32.xlu0 %v1130_v45, %s5478_s23 }
  0x73   :  { %1147 = vrot.lane.b32.xlu1 %v1133_v47, %s5478_s23 }
  0x75   :  { %1151 = vrot.lane.b32.xlu2 %v1135_v6, %s5478_s23  ;;  %v1958_v6 = vld.sshfl [vmem:[#allocation1 + $0x10] sm:$0xff pattern:$0x75316420] }
  0x77   :  { %v92_v55 = vpop.permute.xlu2 %91 }
  0x7a   :  { %1153 = vrot.lane.b32.xlu0 %v1136_v50, %s5478_s23 }
  0x7b   :  { %1149 = vrot.lane.b32.xlu1 %v1134_v48, %s5478_s23  ;;  %v1681_v48 = vld.sshfl [vmem:[#allocation1 + $0x8] sm:$0xff pattern:$0x75316420] }
  0x7c   :  { %v80_v51 = vpop.permute.xlu0 %79 }
  0x7d   :  { %v76_v52 = vpop.permute.xlu1 %75  ;;  %1155 = vrot.lane.b32.xlu2 %v1138_v63, %s5478_s23 }
  0x7f   :  { %v328_v4 = vpop.permute.xlu2 %327 }
  0x82   :  { %1419 = vrot.lane.b32.xlu0 %v1407_v57, %s5479_s26 }
  0x83   :  { %1421 = vrot.lane.b32.xlu1 %v1408_v56, %s5479_s26 }
  0x84   :  { %v82_v58 = vpop.permute.xlu0 %81 }
  0x85   :  { %v78_v59 = vpop.permute.xlu1 %77  ;;  %v96_v60 = vsel %vm93_vm0, %v80_v51, %v82_v58  ;;  %v97_v61 = vsel %vm93_vm0, %v82_v58, %v84_v44  ;;  %1415 = vrot.lane.b32.xlu2 %v1405_v26, %s5479_s26 }
  0x86   :  { %v94_v0 = vsel %vm93_vm0, %v76_v52, %v78_v59  ;;  %v95_v3 = vsel %vm93_vm0, %v78_v59, %v80_v51  ;;  %4854 = vmatpush.msk.msra.mxu2 %vm109_vm1, %v96_v60  ;;  %4857 = vmatpush.msk.msra.mxu3 %vm109_vm1, %v97_v61  ;;  %v1667_v61 = vld [vmem:[%s7609_s0 + $0x2c] sm:$0xf] }
  0x87   :  { %4848 = vmatpush.msk.msra.mxu0 %vm109_vm1, %v94_v0  ;;  %4851 = vmatpush.msk.msra.mxu1 %vm109_vm1, %v95_v3  ;;  %v340_v14 = vpop.permute.xlu2 %339  ;;  %v1680_v0 = vld.sshfl [vmem:[#allocation1] sm:$0xff pattern:$0x75316420]  ;;  %v1687_v3 = vld.sshfl [vmem:[#allocation1 + $0x38] sm:$0xff pattern:$0x75316420] }
  0x88   :  { %4849 = vmatmul.msk.f32.vlgmr.msra.gmra.mxu0 %vm102_vm2, %v32_v62  ;;  %4852 = vmatmul.msk.f32.vlgmr.msra.gmra.mxu1 %vm102_vm2, %v32_v62  ;;  %1688 = vst [vmem:[#allocation1] ss:$2 sm:$0xff] %v1667_v61 }
  0x89   :  { %4855 = vmatmul.msk.f32.vlgmr.msra.gmra.mxu2 %vm102_vm2, %v32_v62  ;;  %4858 = vmatmul.msk.f32.vlgmr.msra.gmra.mxu3 %vm102_vm2, %v32_v62 }
  0x8a   :  { %1417 = vrot.lane.b32.xlu0 %v1406_v2, %s5479_s26 }
  0x8b   :  { %1423 = vrot.lane.b32.xlu1 %v1409_v5, %s5479_s26 }
  0x8c   :  { %v90_v1 = vpop.permute.xlu0 %89 }
  0x8d   :  { %v86_v7 = vpop.permute.xlu1 %85  ;;  %v100_v8 = vsel %vm93_vm0, %v88_v49, %v90_v1  ;;  %v101_v10 = vsel %vm93_vm0, %v90_v1, %v92_v55  ;;  %1427 = vrot.lane.b32.xlu2 %v1411_v41, %s5479_s26 }
  0x8e   :  { %v98_v11 = vsel %vm93_vm0, %v84_v44, %v86_v7  ;;  %v99_v12 = vsel %vm93_vm0, %v86_v7, %v88_v49  ;;  %4866 = vmatpush.msk.msrb.mxu2 %vm109_vm1, %v100_v8  ;;  %4869 = vmatpush.msk.msrb.mxu3 %vm109_vm1, %v101_v10  ;;  %v1685_v49 = vld.sshfl [vmem:[#allocation1 + $0x28] sm:$0xff pattern:$0x75316420]  ;;  %v34_v7 = vld [vmem:[%s7610_s2 + $0x20] sm:$0xff]  ;;  %vm2827_vm0 = vcmask 1039360  }
  0x8f   :  { %4860 = vmatpush.msk.msrb.mxu0 %vm109_vm1, %v98_v11  ;;  %4863 = vmatpush.msk.msrb.mxu1 %vm109_vm1, %v99_v12  ;;  %v344_v23 = vpop.permute.xlu2 %343  ;;  %1953 = vst [vmem:[#allocation1 + $0x20] ss:$2 sm:$0xff] %v5694_v38  ;;  %v1686_v12 = vld.sshfl [vmem:[#allocation1 + $0x30] sm:$0xff pattern:$0x75316420] }
  0x90   :  { %4850 = vmatmul.msk.f32.gmra.mxu0 %vm102_vm2, %v33_v9  ;;  %4853 = vmatmul.msk.f32.gmra.mxu1 %vm102_vm2, %v33_v9  ;;  %1955 = vst [vmem:[#allocation1 + $0x30] ss:$2 sm:$0xff] %v5731_v54 }
  0x91   :  { %4856 = vmatmul.msk.f32.gmra.mxu2 %vm102_vm2, %v33_v9  ;;  %4859 = vmatmul.msk.f32.gmra.mxu3 %vm102_vm2, %v33_v9 }
  0x92   :  { %1429 = vrot.lane.b32.xlu0 %v1412_v18, %s5479_s26 }
  0x93   :  { %1425 = vrot.lane.b32.xlu1 %v1410_v13, %s5479_s26 }
  0x94   :  { %v332_v15 = vpop.permute.xlu0 %331 }
  0x95   :  { %v334_v16 = vpop.permute.xlu1 %333  ;;  %1431 = vrot.lane.b32.xlu2 %v1414_v37, %s5479_s26  ;;  %s5481_s26 = smov 113   ;;  %v36_v37 = vld [vmem:[%s7610_s2 + $0x30] sm:$0xff] }
  0x96   :  { %v348_v17 = vsel %vm345_vm3, %v332_v15, %v334_v16  ;;  %v1960_v11 = vld.sshfl [vmem:[#allocation1 + $0x20] sm:$0xff pattern:$0x75316420] }
  0x97   :  { %4878 = vmatpush.msk.msra.mxu2 %vm109_vm1, %v348_v17  ;;  %v588_v34 = vpop.permute.xlu2 %587 }
  0x98   :  { %4861 = vmatmul.msk.f32.vlgmr.msrb.gmra.mxu0 %vm102_vm2, %v32_v62  ;;  %4864 = vmatmul.msk.f32.vlgmr.msrb.gmra.mxu1 %vm102_vm2, %v32_v62 }
  0x99   :  { %4867 = vmatmul.msk.f32.vlgmr.msrb.gmra.mxu2 %vm102_vm2, %v32_v62  ;;  %4870 = vmatmul.msk.f32.vlgmr.msrb.gmra.mxu3 %vm102_vm2, %v32_v62 }
  0x9a   :  { %1694 = vrot.lane.b32.xlu0 %v1682_v40, %s5480_s19 }
  0x9b   :  { %1696 = vrot.lane.b32.xlu1 %v1683_v33, %s5480_s19 }
  0x9c   :  { %v330_v19 = vpop.permute.xlu0 %329 }
  0x9d   :  { %v336_v20 = vpop.permute.xlu1 %335  ;;  %v347_v21 = vsel %vm345_vm3, %v330_v19, %v332_v15  ;;  %v346_v22 = vsel %vm345_vm3, %v328_v4, %v330_v19  ;;  %v1959_v4 = vld.sshfl [vmem:[#allocation1 + $0x18] sm:$0xff pattern:$0x75316420]  ;;  %1690 = vrot.lane.b32.xlu2 %v1680_v0, %s5480_s19 }
  0x9e   :  { %v349_v27 = vsel %vm345_vm3, %v334_v16, %v336_v20  ;;  %4875 = vmatpush.msk.msra.mxu1 %vm109_vm1, %v347_v21  ;;  %4872 = vmatpush.msk.msra.mxu0 %vm109_vm1, %v346_v22  ;;  %2227 = vst [vmem:[#allocation1 + $0x10] ss:$2 sm:$0xff] %v5667_v24 }
  0x9f   :  { %4881 = vmatpush.msk.msra.mxu3 %vm109_vm1, %v349_v27  ;;  %v600_v47 = vpop.permute.xlu2 %599 }
  0xa0   :  { %4862 = vmatmul.msk.f32.gmra.mxu0 %vm102_vm2, %v33_v9  ;;  %4865 = vmatmul.msk.f32.gmra.mxu1 %vm102_vm2, %v33_v9 }
  0xa1   :  { %4868 = vmatmul.msk.f32.gmra.mxu2 %vm102_vm2, %v33_v9  ;;  %4871 = vmatmul.msk.f32.gmra.mxu3 %vm102_vm2, %v33_v9  ;;  %v1689_v9 = vld.sshfl [vmem:[#allocation1] sm:$0xff pattern:$0x75316420] }
  0xa2   :  { %1692 = vrot.lane.b32.xlu0 %v1681_v48, %s5480_s19  ;;  %1949 = vst [vmem:[#allocation1] ss:$2 sm:$0xff] %v5699_v39  ;;  %v1962_v48 = vld.sshfl [vmem:[#allocation1 + $0x30] sm:$0xff pattern:$0x75316420] }
  0xa3   :  { %1698 = vrot.lane.b32.xlu1 %v1684_v46, %s5480_s19  ;;  %v37_v46 = vld [vmem:[%s7610_s2 + $0x38] sm:$0xff] }
  0xa4   :  { %v342_v28 = vpop.permute.xlu0 %341 }
  0xa5   :  { %v338_v29 = vpop.permute.xlu1 %337  ;;  %v352_v31 = vsel %vm345_vm3, %v340_v14, %v342_v28  ;;  %v353_v32 = vsel %vm345_vm3, %v342_v28, %v344_v23  ;;  %1702 = vrot.lane.b32.xlu2 %v1686_v12, %s5480_s19  ;;  %v1963_v28 = vld.sshfl [vmem:[#allocation1 + $0x38] sm:$0xff pattern:$0x75316420] }
  0xa6   :  { %v350_v35 = vsel %vm345_vm3, %v336_v20, %v338_v29  ;;  %v351_v36 = vsel %vm345_vm3, %v338_v29, %v340_v14  ;;  %4890 = vmatpush.msk.msrb.mxu2 %vm109_vm1, %v352_v31  ;;  %4893 = vmatpush.msk.msrb.mxu3 %vm109_vm1, %v353_v32  ;;  %v35_v14 = vld [vmem:[%s7610_s2 + $0x28] sm:$0xff]  ;;  %v2235_v33 = vld.sshfl [vmem:[#allocation1 + $0x18] sm:$0xff pattern:$0x75316420]  ;;  %2231 = vst [vmem:[#allocation1 + $0x30] ss:$2 sm:$0xff] %v5731_v54 }
  0xa7   :  { %4884 = vmatpush.msk.msrb.mxu0 %vm109_vm1, %v350_v35  ;;  %4887 = vmatpush.msk.msrb.mxu1 %vm109_vm1, %v351_v36  ;;  %v604_v56 = vpop.permute.xlu2 %603  ;;  %v1961_v20 = vld.sshfl [vmem:[#allocation1 + $0x28] sm:$0xff pattern:$0x75316420]  ;;  %v2234_v35 = vld.sshfl [vmem:[#allocation1 + $0x10] sm:$0xff pattern:$0x75316420] }
  0xa8   :  { %4873 = vmatmul.msk.f32.vlgmr.msra.gmra.mxu0 %vm102_vm2, %v30_v30  ;;  %4876 = vmatmul.msk.f32.vlgmr.msra.gmra.mxu1 %vm102_vm2, %v30_v30  ;;  %2229 = vst [vmem:[#allocation1 + $0x20] ss:$2 sm:$0xff] %v5694_v38  ;;  %v1943_v31 = vld [vmem:[%s7609_s0 + $0x2c] sm:$0xf]  ;;  %vm3808_vm3 = vcmask 867328  }
  0xa9   :  { %4879 = vmatmul.msk.f32.vlgmr.msra.gmra.mxu2 %vm102_vm2, %v30_v30  ;;  %4882 = vmatmul.msk.f32.vlgmr.msra.gmra.mxu3 %vm102_vm2, %v30_v30  ;;  %v1957_v19 = vld.sshfl [vmem:[#allocation1 + $0x8] sm:$0xff pattern:$0x75316420]  ;;  %v1956_v32 = vld.sshfl [vmem:[#allocation1] sm:$0xff pattern:$0x75316420] }
  0xaa   :  { %1704 = vrot.lane.b32.xlu0 %v1687_v3, %s5480_s19  ;;  %1964 = vst [vmem:[#allocation1] ss:$2 sm:$0xff] %v1943_v31  ;;  %v38_v3 = vld [vmem:[%s7610_s2 + $0x40] sm:$0xff] }
  0xab   :  { %1700 = vrot.lane.b32.xlu1 %v1685_v49, %s5480_s19 }
  0xac   :  { %v592_v42 = vpop.permute.xlu0 %591 }
  0xad   :  { %v594_v44 = vpop.permute.xlu1 %593  ;;  %1706 = vrot.lane.b32.xlu2 %v1689_v9, %s5480_s19 }
  0xae   :  { %v608_v45 = vsel %vm605_vm4, %v592_v42, %v594_v44 }
  0xaf   :  { %4902 = vmatpush.msk.msra.mxu2 %vm109_vm1, %v608_v45  ;;  %v864_v5 = vpop.permute.xlu2 %863  ;;  %v2236_v45 = vld.sshfl [vmem:[#allocation1 + $0x20] sm:$0xff pattern:$0x75316420] }
  0xb0   :  { %4874 = vmatmul.msk.f32.gmra.mxu0 %vm102_vm2, %v31_v43  ;;  %4877 = vmatmul.msk.f32.gmra.mxu1 %vm102_vm2, %v31_v43 }
  0xb1   :  { %4880 = vmatmul.msk.f32.gmra.mxu2 %vm102_vm2, %v31_v43  ;;  %4883 = vmatmul.msk.f32.gmra.mxu3 %vm102_vm2, %v31_v43  ;;  %v1965_v40 = vld.sshfl [vmem:[#allocation1] sm:$0xff pattern:$0x75316420] }
  0xb2   :  { %1970 = vrot.lane.b32.xlu0 %v1958_v6, %s5481_s26  ;;  %2225 = vst [vmem:[#allocation1] ss:$2 sm:$0xff] %v5699_v39 }
  0xb3   :  { %1972 = vrot.lane.b32.xlu1 %v1959_v4, %s5481_s26 }
  0xb4   :  { %v590_v50 = vpop.permute.xlu0 %589 }
  0xb5   :  { %v596_v51 = vpop.permute.xlu1 %595  ;;  %v607_v52 = vsel %vm605_vm4, %v590_v50, %v592_v42  ;;  %v606_v53 = vsel %vm605_vm4, %v588_v34, %v590_v50  ;;  %1966 = vrot.lane.b32.xlu2 %v1956_v32, %s5481_s26  ;;  %v2237_v50 = vld.sshfl [vmem:[#allocation1 + $0x28] sm:$0xff pattern:$0x75316420] }
  0xb6   :  { %v609_v55 = vsel %vm605_vm4, %v594_v44, %v596_v51  ;;  %4899 = vmatpush.msk.msra.mxu1 %vm109_vm1, %v607_v52  ;;  %4896 = vmatpush.msk.msra.mxu0 %vm109_vm1, %v606_v53 }
  0xb7   :  { %4905 = vmatpush.msk.msra.mxu3 %vm109_vm1, %v609_v55  ;;  %v876_v2 = vpop.permute.xlu2 %875 }
  0xb8   :  { %4885 = vmatmul.msk.f32.vlgmr.msrb.gmra.mxu0 %vm102_vm2, %v30_v30  ;;  %4888 = vmatmul.msk.f32.vlgmr.msrb.gmra.mxu1 %vm102_vm2, %v30_v30 }
  0xb9   :  { %4891 = vmatmul.msk.f32.vlgmr.msrb.gmra.mxu2 %vm102_vm2, %v30_v30  ;;  %4894 = vmatmul.msk.f32.vlgmr.msrb.gmra.mxu3 %vm102_vm2, %v30_v30  ;;  %v2232_v4 = vld.sshfl [vmem:[#allocation1] sm:$0xff pattern:$0x75316420] }
  0xba   :  { %1968 = vrot.lane.b32.xlu0 %v1957_v19, %s5481_s26 }
  0xbb   :  { %1974 = vrot.lane.b32.xlu1 %v1960_v11, %s5481_s26 }
  0xbc   :  { %v602_v57 = vpop.permute.xlu0 %601 }
  0xbd   :  { %v598_v58 = vpop.permute.xlu1 %597  ;;  %v612_v59 = vsel %vm605_vm4, %v600_v47, %v602_v57  ;;  %v613_v60 = vsel %vm605_vm4, %v602_v57, %v604_v56  ;;  %1978 = vrot.lane.b32.xlu2 %v1962_v48, %s5481_s26  ;;  %v2239_v57 = vld.sshfl [vmem:[#allocation1 + $0x38] sm:$0xff pattern:$0x75316420] }
  0xbe   :  { %v610_v62 = vsel %vm605_vm4, %v596_v51, %v598_v58  ;;  %v611_v63 = vsel %vm605_vm4, %v598_v58, %v600_v47  ;;  %4914 = vmatpush.msk.msrb.mxu2 %vm109_vm1, %v612_v59  ;;  %4917 = vmatpush.msk.msrb.mxu3 %vm109_vm1, %v613_v60  ;;  %v2233_v47 = vld.sshfl [vmem:[#allocation1 + $0x8] sm:$0xff pattern:$0x75316420]  ;;  %vm3175_vm4 = vcmask 1031168  }
  0xbf   :  { %4908 = vmatpush.msk.msrb.mxu0 %vm109_vm1, %v610_v62  ;;  %4911 = vmatpush.msk.msrb.mxu1 %vm109_vm1, %v611_v63  ;;  %v880_v23 = vpop.permute.xlu2 %879 }
  0xc0   :  { %4886 = vmatmul.msk.f32.gmra.mxu0 %vm102_vm2, %v31_v43  ;;  %4889 = vmatmul.msk.f32.gmra.mxu1 %vm102_vm2, %v31_v43 }
  0xc1   :  { %4892 = vmatmul.msk.f32.gmra.mxu2 %vm102_vm2, %v31_v43  ;;  %4895 = vmatmul.msk.f32.gmra.mxu3 %vm102_vm2, %v31_v43 }
  0xc2   :  { %1980 = vrot.lane.b32.xlu0 %v1963_v28, %s5481_s26 }
  0xc3   :  { %1976 = vrot.lane.b32.xlu1 %v1961_v20, %s5481_s26 }
  0xc4   :  { %v868_v1 = vpop.permute.xlu0 %867 }
  0xc5   :  { %v870_v8 = vpop.permute.xlu1 %869  ;;  %1982 = vrot.lane.b32.xlu2 %v1965_v40, %s5481_s26  ;;  %s5486_s26 = smov 108  }
  0xc6   :  { %v884_v10 = vsel %vm881_vm5, %v868_v1, %v870_v8 }
  0xc7   :  { %v1140_v34 = vpop.permute.xlu2 %1139 }
  0xc8   :  { %4897 = vmatmul.msk.f32.vlgmr.msra.gmra.mxu0 %vm102_vm2, %v34_v7  ;;  %4900 = vmatmul.msk.f32.vlgmr.msra.gmra.mxu1 %vm102_vm2, %v34_v7 }
  0xc9   :  { %4903 = vmatmul.msk.f32.vlgmr.msra.gmra.mxu2 %vm102_vm2, %v34_v7  ;;  %4906 = vmatmul.msk.f32.vlgmr.msra.gmra.mxu3 %vm102_vm2, %v34_v7 }
  0xca   :  { %4926 = vmatpush.msk.msra.mxu2 %vm109_vm1, %v884_v10  ;;  %2246 = vrot.lane.b32.xlu0 %v2234_v35, %s5482_s11 }
  0xcb   :  { %2248 = vrot.lane.b32.xlu1 %v2235_v33, %s5482_s11 }
  0xcc   :  { %v866_v13 = vpop.permute.xlu0 %865 }
  0xcd   :  { %v872_v15 = vpop.permute.xlu1 %871  ;;  %v883_v16 = vsel %vm881_vm5, %v866_v13, %v868_v1  ;;  %v882_v17 = vsel %vm881_vm5, %v864_v5, %v866_v13  ;;  %2242 = vrot.lane.b32.xlu2 %v2232_v4, %s5482_s11  ;;  %v2238_v13 = vld.sshfl [vmem:[#allocation1 + $0x30] sm:$0xff pattern:$0x75316420] }
  0xce   :  { %v885_v18 = vsel %vm881_vm5, %v870_v8, %v872_v15  ;;  %4923 = vmatpush.msk.msra.mxu1 %vm109_vm1, %v883_v16  ;;  %4920 = vmatpush.msk.msra.mxu0 %vm109_vm1, %v882_v17  ;;  %v2219_v17 = vld [vmem:[%s7609_s0 + $0x2c] sm:$0xf] }
  0xcf   :  { %4929 = vmatpush.msk.msra.mxu3 %vm109_vm1, %v885_v18  ;;  %v1152_v39 = vpop.permute.xlu2 %1151  ;;  %2240 = vst [vmem:[#allocation1] ss:$2 sm:$0xff] %v2219_v17 }
  0xd0   :  { %4898 = vmatmul.msk.f32.gmra.mxu0 %vm102_vm2, %v35_v14  ;;  %4901 = vmatmul.msk.f32.gmra.mxu1 %vm102_vm2, %v35_v14 }
  0xd1   :  { %4904 = vmatmul.msk.f32.gmra.mxu2 %vm102_vm2, %v35_v14  ;;  %4907 = vmatmul.msk.f32.gmra.mxu3 %vm102_vm2, %v35_v14 }
  0xd2   :  { %2244 = vrot.lane.b32.xlu0 %v2233_v47, %s5482_s11 }
  0xd3   :  { %2250 = vrot.lane.b32.xlu1 %v2236_v45, %s5482_s11 }
  0xd4   :  { %v878_v21 = vpop.permute.xlu0 %877 }
  0xd5   :  { %v874_v22 = vpop.permute.xlu1 %873  ;;  %v888_v26 = vsel %vm881_vm5, %v876_v2, %v878_v21  ;;  %v889_v27 = vsel %vm881_vm5, %v878_v21, %v880_v23  ;;  %2254 = vrot.lane.b32.xlu2 %v2238_v13, %s5482_s11 }
  0xd6   :  { %v886_v24 = vsel %vm881_vm5, %v872_v15, %v874_v22  ;;  %v887_v25 = vsel %vm881_vm5, %v874_v22, %v876_v2  ;;  %v39_v2 = vld [vmem:[%s7610_s2 + $0x48] sm:$0xff]  ;;  %vm3386_vm5 = vcmask 883712  }
  0xd7   :  { %v1156_v52 = vpop.permute.xlu2 %1155 }
  0xd8   :  { %4909 = vmatmul.msk.f32.vlgmr.msrb.gmra.mxu0 %vm102_vm2, %v34_v7  ;;  %4912 = vmatmul.msk.f32.vlgmr.msrb.gmra.mxu1 %vm102_vm2, %v34_v7 }
  0xd9   :  { %4915 = vmatmul.msk.f32.vlgmr.msrb.gmra.mxu2 %vm102_vm2, %v34_v7  ;;  %4918 = vmatmul.msk.f32.vlgmr.msrb.gmra.mxu3 %vm102_vm2, %v34_v7 }
  0xda   :  { %4932 = vmatpush.msk.msrb.mxu0 %vm109_vm1, %v886_v24  ;;  %4935 = vmatpush.msk.msrb.mxu1 %vm109_vm1, %v887_v25 }
  0xdb   :  { %4938 = vmatpush.msk.msrb.mxu2 %vm109_vm1, %v888_v26  ;;  %4941 = vmatpush.msk.msrb.mxu3 %vm109_vm1, %v889_v27  ;;  %v2241_v26 = vld.sshfl [vmem:[#allocation1] sm:$0xff pattern:$0x75316420] }
  0xdc   :  { %v1144_v29 = vpop.permute.xlu0 %1143  ;;  %2252 = vrot.lane.b32.xlu1 %v2237_v50, %s5482_s11  ;;  %2256 = vrot.lane.b32.xlu0 %v2239_v57, %s5482_s11 }
  0xdd   :  { %v1146_v30 = vpop.permute.xlu1 %1145  ;;  %2258 = vrot.lane.b32.xlu2 %v2241_v26, %s5482_s11 }
  0xde   :  { %v1160_v41 = vsel %vm1157_vm6, %v1144_v29, %v1146_v30 }
  0xdf   :  { %v1416_v60 = vpop.permute.xlu2 %1415 }
  0xe0   :  { %4910 = vmatmul.msk.f32.gmra.mxu0 %vm102_vm2, %v35_v14  ;;  %4913 = vmatmul.msk.f32.gmra.mxu1 %vm102_vm2, %v35_v14 }
  0xe1   :  { %4916 = vmatmul.msk.f32.gmra.mxu2 %vm102_vm2, %v35_v14  ;;  %4919 = vmatmul.msk.f32.gmra.mxu3 %vm102_vm2, %v35_v14 }
  0xe4   :  { %v1142_v36 = vpop.permute.xlu0 %1141 }
  0xe5   :  { %v1148_v38 = vpop.permute.xlu1 %1147  ;;  %v1159_v42 = vsel %vm1157_vm6, %v1142_v36, %v1144_v29  ;;  %v1158_v44 = vsel %vm1157_vm6, %v1140_v34, %v1142_v36 }
  0xe6   :  { %v1161_v43 = vsel %vm1157_vm6, %v1146_v30, %v1148_v38 }
  0xe7   :  { %v1428_v8 = vpop.permute.xlu2 %1427 }
  0xe8   :  { %4921 = vmatmul.msk.f32.vlgmr.msra.gmra.mxu0 %vm102_vm2, %v36_v37  ;;  %4924 = vmatmul.msk.f32.vlgmr.msra.gmra.mxu1 %vm102_vm2, %v36_v37 }
  0xe9   :  { %4927 = vmatmul.msk.f32.vlgmr.msra.gmra.mxu2 %vm102_vm2, %v36_v37  ;;  %4930 = vmatmul.msk.f32.vlgmr.msra.gmra.mxu3 %vm102_vm2, %v36_v37 }
  0xea   :  { %4947 = vmatpush.msk.msra.mxu1 %vm109_vm1, %v1159_v42  ;;  %4950 = vmatpush.msk.msra.mxu2 %vm109_vm1, %v1160_v41 }
  0xeb   :  { %4953 = vmatpush.msk.msra.mxu3 %vm109_vm1, %v1161_v43  ;;  %4944 = vmatpush.msk.msra.mxu0 %vm109_vm1, %v1158_v44 }
  0xec   :  { %v1154_v49 = vpop.permute.xlu0 %1153 }
  0xed   :  { %v1150_v51 = vpop.permute.xlu1 %1149  ;;  %v1164_v55 = vsel %vm1157_vm6, %v1152_v39, %v1154_v49  ;;  %v1165_v56 = vsel %vm1157_vm6, %v1154_v49, %v1156_v52  ;;  %v41_v52 = vld [vmem:[%s7610_s2 + $0x58] sm:$0xff] }
  0xee   :  { %v1162_v53 = vsel %vm1157_vm6, %v1148_v38, %v1150_v51  ;;  %v1163_v54 = vsel %vm1157_vm6, %v1150_v51, %v1152_v39  ;;  %v40_v38 = vld [vmem:[%s7610_s2 + $0x50] sm:$0xff]  ;;  %vm3597_vm6 = vcmask 875520  }
  0xef   :  { %v1432_v16 = vpop.permute.xlu2 %1431 }
  0xf0   :  { %4922 = vmatmul.msk.f32.gmra.mxu0 %vm102_vm2, %v37_v46  ;;  %4925 = vmatmul.msk.f32.gmra.mxu1 %vm102_vm2, %v37_v46 }
  0xf1   :  { %4928 = vmatmul.msk.f32.gmra.mxu2 %vm102_vm2, %v37_v46  ;;  %4931 = vmatmul.msk.f32.gmra.mxu3 %vm102_vm2, %v37_v46 }
  0xf4   :  { %v1420_v59 = vpop.permute.xlu0 %1419 }
  0xf5   :  { %v1422_v58 = vpop.permute.xlu1 %1421 }
  0xf6   :  { %v1435_v5 = vsel %vm102_vm2, %v1420_v59, %v1422_v58 }
  0xf7   :  { %v1691_v33 = vpop.permute.xlu2 %1690 }
  0xf8   :  { %4933 = vmatmul.msk.f32.vlgmr.msrb.gmra.mxu0 %vm102_vm2, %v36_v37  ;;  %4936 = vmatmul.msk.f32.vlgmr.msrb.gmra.mxu1 %vm102_vm2, %v36_v37 }
  0xf9   :  { %4939 = vmatmul.msk.f32.vlgmr.msrb.gmra.mxu2 %vm102_vm2, %v36_v37  ;;  %4942 = vmatmul.msk.f32.vlgmr.msrb.gmra.mxu3 %vm102_vm2, %v36_v37 }
  0xfa   :  { %4956 = vmatpush.msk.msrb.mxu0 %vm109_vm1, %v1162_v53  ;;  %4959 = vmatpush.msk.msrb.mxu1 %vm109_vm1, %v1163_v54 }
  0xfb   :  { %4962 = vmatpush.msk.msrb.mxu2 %vm109_vm1, %v1164_v55  ;;  %4965 = vmatpush.msk.msrb.mxu3 %vm109_vm1, %v1165_v56 }
  0xfc   :  { %v1418_v62 = vpop.permute.xlu0 %1417 }
  0xfd   :  { %v1424_v61 = vpop.permute.xlu1 %1423  ;;  %v1434_v6 = vsel %vm102_vm2, %v1418_v62, %v1420_v59  ;;  %v1433_v7 = vsel %vm102_vm2, %v1416_v60, %v1418_v62 }
  0xfe   :  { %v1436_v1 = vsel %vm102_vm2, %v1422_v58, %v1424_v61 }
  0xff   :  { %v1703_v39 = vpop.permute.xlu2 %1702 }
 0x100   :  { %4934 = vmatmul.msk.f32.gmra.mxu0 %vm102_vm2, %v37_v46  ;;  %4937 = vmatmul.msk.f32.gmra.mxu1 %vm102_vm2, %v37_v46 }
 0x101   :  { %4940 = vmatmul.msk.f32.gmra.mxu2 %vm102_vm2, %v37_v46  ;;  %4943 = vmatmul.msk.f32.gmra.mxu3 %vm102_vm2, %v37_v46 }
 0x104   :  { %v1430_v15 = vpop.permute.xlu0 %1429 }
 0x105   :  { %v5862_v63 = vpop.f32.mrf.mxu0  ;;  %v5864_v0 = vpop.f32.mrf.mxu1  ;;  %v1439_v24 = vsel %vm102_vm2, %v1428_v8, %v1430_v15  ;;  %v1440_v25 = vsel %vm102_vm2, %v1430_v15, %v1432_v16 }
 0x106   :  { %v1426_v14 = vpop.permute.xlu1 %1425 }
 0x107   :  { %v1437_v22 = vsel %vm102_vm2, %v1424_v61, %v1426_v14  ;;  %v1438_v23 = vsel %vm102_vm2, %v1426_v14, %v1428_v8  ;;  %v1707_v54 = vpop.permute.xlu2 %1706 }
 0x108   :  { %4945 = vmatmul.msk.f32.vlgmr.msra.gmra.mxu0 %vm102_vm2, %v38_v3  ;;  %4948 = vmatmul.msk.f32.vlgmr.msra.gmra.mxu1 %vm102_vm2, %v38_v3 }
 0x109   :  { %4951 = vmatmul.msk.f32.vlgmr.msra.gmra.mxu2 %vm102_vm2, %v38_v3  ;;  %4954 = vmatmul.msk.f32.vlgmr.msra.gmra.mxu3 %vm102_vm2, %v38_v3 }
 0x10a   :  { %4971 = vmatpush.msk.msra.mxu1 %vm109_vm1, %v1434_v6  ;;  %4974 = vmatpush.msk.msra.mxu2 %vm109_vm1, %v1435_v5 }
 0x10b   :  { %4977 = vmatpush.msk.msra.mxu3 %vm109_vm1, %v1436_v1  ;;  %4968 = vmatpush.msk.msra.mxu0 %vm109_vm1, %v1433_v7 }
 0x10c   :  { %v5882_v9 = vpop.f32.mrf.mxu2  ;;  %v5884_v10 = vpop.f32.mrf.mxu3 }
 0x10d   :  { %v5886_v11 = vpop.f32.mrf.mxu0  ;;  %v5888_v12 = vpop.f32.mrf.mxu1 }
 0x10e   :  { %v1697_v31 = vpop.permute.xlu1 %1696  ;;  %v1695_v32 = vpop.permute.xlu0 %1694 }
 0x10f   :  { %v1711_v42 = vsel %vm1708_vm7, %v1695_v32, %v1697_v31  ;;  %v1967_v14 = vpop.permute.xlu2 %1966 }
 0x110   :  { %4946 = vmatmul.msk.f32.gmra.mxu0 %vm102_vm2, %v39_v2  ;;  %4949 = vmatmul.msk.f32.gmra.mxu1 %vm102_vm2, %v39_v2 }
 0x111   :  { %4952 = vmatmul.msk.f32.gmra.mxu2 %vm102_vm2, %v39_v2  ;;  %4955 = vmatmul.msk.f32.gmra.mxu3 %vm102_vm2, %v39_v2 }
 0x114   :  { %v5901_v18 = vpop.f32.mrf.mxu2  ;;  %v5903_v19 = vpop.f32.mrf.mxu3 }
 0x115   :  { %v5905_v20 = vpop.f32.mrf.mxu0  ;;  %v5907_v21 = vpop.f32.mrf.mxu1 }
 0x116   :  { %v1699_v40 = vpop.permute.xlu1 %1698  ;;  %v1693_v41 = vpop.permute.xlu0 %1692 }
 0x117   :  { %v1710_v43 = vsel %vm1708_vm7, %v1693_v41, %v1695_v32  ;;  %v1712_v44 = vsel %vm1708_vm7, %v1697_v31, %v1699_v40  ;;  %v1709_v45 = vsel %vm1708_vm7, %v1691_v33, %v1693_v41  ;;  %v1979_v32 = vpop.permute.xlu2 %1978 }
 0x118   :  { %4957 = vmatmul.msk.f32.vlgmr.msrb.gmra.mxu0 %vm102_vm2, %v38_v3  ;;  %4960 = vmatmul.msk.f32.vlgmr.msrb.gmra.mxu1 %vm102_vm2, %v38_v3 }
 0x119   :  { %4963 = vmatmul.msk.f32.vlgmr.msrb.gmra.mxu2 %vm102_vm2, %v38_v3  ;;  %4966 = vmatmul.msk.f32.vlgmr.msrb.gmra.mxu3 %vm102_vm2, %v38_v3 }
 0x11a   :  { %4980 = vmatpush.msk.msrb.mxu0 %vm109_vm1, %v1437_v22  ;;  %4983 = vmatpush.msk.msrb.mxu1 %vm109_vm1, %v1438_v23 }
 0x11b   :  { %4986 = vmatpush.msk.msrb.mxu2 %vm109_vm1, %v1439_v24  ;;  %4989 = vmatpush.msk.msrb.mxu3 %vm109_vm1, %v1440_v25  ;;  %v42_v24 = vld [vmem:[%s7610_s2 + $0x60] sm:$0xff] }
 0x11c   :  { %v5921_v27 = vpop.f32.mrf.mxu2  ;;  %v5923_v28 = vpop.f32.mrf.mxu3 }
 0x11d   :  { %v5926_v29 = vpop.f32.mrf.mxu0  ;;  %v5928_v30 = vpop.f32.mrf.mxu1 }
 0x11e   :  { %v1701_v53 = vpop.permute.xlu1 %1700  ;;  %v1705_v61 = vpop.permute.xlu0 %1704 }
 0x11f   :  { %v1713_v62 = vsel %vm1708_vm7, %v1699_v40, %v1701_v53  ;;  %v1714_v3 = vsel %vm1708_vm7, %v1701_v53, %v1703_v39  ;;  %v1715_v4 = vsel %vm1708_vm7, %v1703_v39, %v1705_v61  ;;  %v1716_v5 = vsel %vm1708_vm7, %v1705_v61, %v1707_v54 }
 0x120   :  { %4958 = vmatmul.msk.f32.gmra.mxu0 %vm102_vm2, %v39_v2  ;;  %4961 = vmatmul.msk.f32.gmra.mxu1 %vm102_vm2, %v39_v2  ;;  %vm4019_vm7 = vcmask 719872  }
 0x121   :  { %4964 = vmatmul.msk.f32.gmra.mxu2 %vm102_vm2, %v39_v2  ;;  %4967 = vmatmul.msk.f32.gmra.mxu3 %vm102_vm2, %v39_v2 }
 0x124   :  { %v5934_v34 = vpop.f32.mrf.mxu2  ;;  %v5936_v35 = vpop.f32.mrf.mxu3 }
 0x125   :  { %v5938_v36 = vpop.f32.mrf.mxu0  ;;  %v5940_v37 = vpop.f32.mrf.mxu1 }
 0x126   :  { %v1973_v6 = vpop.permute.xlu1 %1972  ;;  %v1971_v13 = vpop.permute.xlu0 %1970 }
 0x127   :  { %v1987_v26 = vsel %vm1984_vm8, %v1971_v13, %v1973_v6 }
 0x128   :  { %4969 = vmatmul.msk.f32.vlgmr.msra.gmra.mxu0 %vm102_vm2, %v40_v38  ;;  %4972 = vmatmul.msk.f32.vlgmr.msra.gmra.mxu1 %vm102_vm2, %v40_v38 }
 0x129   :  { %4975 = vmatmul.msk.f32.vlgmr.msra.gmra.mxu2 %vm102_vm2, %v40_v38  ;;  %4978 = vmatmul.msk.f32.vlgmr.msra.gmra.mxu3 %vm102_vm2, %v40_v38 }
 0x12a   :  { %4995 = vmatpush.msk.msra.mxu1 %vm109_vm1, %v1710_v43  ;;  %4998 = vmatpush.msk.msra.mxu2 %vm109_vm1, %v1711_v42  ;;  %v43_v42 = vld [vmem:[%s7610_s2 + $0x68] sm:$0xff] }
 0x12b   :  { %5001 = vmatpush.msk.msra.mxu3 %vm109_vm1, %v1712_v44  ;;  %4992 = vmatpush.msk.msra.mxu0 %vm109_vm1, %v1709_v45  ;;  %v1983_v45 = vpop.permute.xlu2 %1982 }
 0x12c   :  { %v439_v46 = vpop.f32.mrf.mxu2  ;;  %v462_v47 = vpop.f32.mrf.mxu3 }
 0x12d   :  { %v5958_v48 = vadd.f32 %v439_v46, %v5882_v9  ;;  %v5961_v49 = vadd.f32 %v462_v47, %v5884_v10  ;;  %v5963_v50 = vpop.f32.mrf.mxu0  ;;  %v5965_v51 = vpop.f32.mrf.mxu1 }
 0x12e   :  { %v1975_v15 = vpop.permute.xlu1 %1974  ;;  %v1969_v25 = vpop.permute.xlu0 %1968 }
 0x12f   :  { %v1985_v31 = vsel %vm1984_vm8, %v1967_v14, %v1969_v25 }
 0x130   :  { %4970 = vmatmul.msk.f32.gmra.mxu0 %vm102_vm2, %v41_v52  ;;  %4973 = vmatmul.msk.f32.gmra.mxu1 %vm102_vm2, %v41_v52 }
 0x131   :  { %4976 = vmatmul.msk.f32.gmra.mxu2 %vm102_vm2, %v41_v52  ;;  %4979 = vmatmul.msk.f32.gmra.mxu3 %vm102_vm2, %v41_v52 }
 0x134   :  { %v442_v55 = vpop.f32.mrf.mxu2  ;;  %v465_v56 = vpop.f32.mrf.mxu3 }
 0x135   :  { %v5975_v57 = vadd.f32 %v442_v55, %v5901_v18  ;;  %v5978_v58 = vadd.f32 %v465_v56, %v5903_v19  ;;  %v5980_v59 = vpop.f32.mrf.mxu0  ;;  %v5982_v60 = vpop.f32.mrf.mxu1 }
 0x136   :  { %v1981_v43 = vpop.permute.xlu0 %1980  ;;  %v1977_v44 = vpop.permute.xlu1 %1976 }
 0x137   :  { %v1989_v53 = vsel %vm1984_vm8, %v1975_v15, %v1977_v44  ;;  %v1990_v54 = vsel %vm1984_vm8, %v1977_v44, %v1979_v32  ;;  %v1991_v55 = vsel %vm1984_vm8, %v1979_v32, %v1981_v43  ;;  %v1992_v56 = vsel %vm1984_vm8, %v1981_v43, %v1983_v45 }
 0x138   :  { %4981 = vmatmul.msk.f32.vlgmr.msrb.gmra.mxu0 %vm102_vm2, %v40_v38  ;;  %4984 = vmatmul.msk.f32.vlgmr.msrb.gmra.mxu1 %vm102_vm2, %v40_v38 }
 0x139   :  { %4987 = vmatmul.msk.f32.vlgmr.msrb.gmra.mxu2 %vm102_vm2, %v40_v38  ;;  %4990 = vmatmul.msk.f32.vlgmr.msrb.gmra.mxu3 %vm102_vm2, %v40_v38 }
 0x13a   :  { %5004 = vmatpush.msk.msrb.mxu0 %vm109_vm1, %v1713_v62  ;;  %5007 = vmatpush.msk.msrb.mxu1 %vm109_vm1, %v1714_v3 }
 0x13b   :  { %5010 = vmatpush.msk.msrb.mxu2 %vm109_vm1, %v1715_v4  ;;  %5013 = vmatpush.msk.msrb.mxu3 %vm109_vm1, %v1716_v5 }
 0x13c   :  { %v531_v1 = vpop.f32.mrf.mxu2  ;;  %v554_v7 = vpop.f32.mrf.mxu3 }
 0x13d   :  { %v5997_v8 = vadd.f32 %v531_v1, %v5921_v27  ;;  %v6000_v9 = vadd.f32 %v554_v7, %v5923_v28  ;;  %v6002_v10 = vpop.f32.mrf.mxu0  ;;  %v6004_v2 = vpop.f32.mrf.mxu1  ;;  %v1986_v27 = vsel %vm1984_vm8, %v1969_v25, %v1971_v13  ;;  %v1988_v28 = vsel %vm1984_vm8, %v1973_v6, %v1975_v15 }
 0x13e   :  { %v2243_v1 = vpop.permute.xlu2 %2242  ;;  %vm4230_vm8 = vcmask 711680  }
 0x140   :  { %4982 = vmatmul.msk.f32.gmra.mxu0 %vm102_vm2, %v41_v52  ;;  %4985 = vmatmul.msk.f32.gmra.mxu1 %vm102_vm2, %v41_v52 }
 0x141   :  { %4988 = vmatmul.msk.f32.gmra.mxu2 %vm102_vm2, %v41_v52  ;;  %4991 = vmatmul.msk.f32.gmra.mxu3 %vm102_vm2, %v41_v52 }
 0x144   :  { %v534_v16 = vpop.f32.mrf.mxu2  ;;  %v557_v17 = vpop.f32.mrf.mxu3 }
 0x145   :  { %v6011_v18 = vadd.f32 %v534_v16, %v5934_v34  ;;  %v6014_v19 = vadd.f32 %v557_v17, %v5936_v35  ;;  %v6016_v22 = vpop.f32.mrf.mxu0  ;;  %v6018_v23 = vpop.f32.mrf.mxu1 }
 0x148   :  { %4993 = vmatmul.msk.f32.vlgmr.msra.gmra.mxu0 %vm102_vm2, %v42_v24  ;;  %4996 = vmatmul.msk.f32.vlgmr.msra.gmra.mxu1 %vm102_vm2, %v42_v24 }
 0x149   :  { %4999 = vmatmul.msk.f32.vlgmr.msra.gmra.mxu2 %vm102_vm2, %v42_v24  ;;  %5002 = vmatmul.msk.f32.vlgmr.msra.gmra.mxu3 %vm102_vm2, %v42_v24 }
 0x14a   :  { %5019 = vmatpush.msk.msra.mxu1 %vm109_vm1, %v1986_v27  ;;  %5022 = vmatpush.msk.msra.mxu2 %vm109_vm1, %v1987_v26  ;;  %v2255_v27 = vpop.permute.xlu2 %2254 }
 0x14b   :  { %5025 = vmatpush.msk.msra.mxu3 %vm109_vm1, %v1988_v28  ;;  %5016 = vmatpush.msk.msra.mxu0 %vm109_vm1, %v1985_v31 }
 0x14c   :  { %v699_v33 = vpop.f32.mrf.mxu2  ;;  %v722_v34 = vpop.f32.mrf.mxu3 }
 0x14d   :  { %v6036_v35 = vadd.f32 %v699_v33, %v5958_v48  ;;  %v6039_v38 = vadd.f32 %v722_v34, %v5961_v49  ;;  %v6041_v40 = vpop.f32.mrf.mxu0  ;;  %v6043_v41 = vpop.f32.mrf.mxu1  ;;  %v45_v34 = vld [vmem:[%s7610_s2 + $0x78] sm:$0xff] }
 0x150   :  { %4994 = vmatmul.msk.f32.gmra.mxu0 %vm102_vm2, %v43_v42  ;;  %4997 = vmatmul.msk.f32.gmra.mxu1 %vm102_vm2, %v43_v42 }
 0x151   :  { %5000 = vmatmul.msk.f32.gmra.mxu2 %vm102_vm2, %v43_v42  ;;  %5003 = vmatmul.msk.f32.gmra.mxu3 %vm102_vm2, %v43_v42 }
 0x154   :  { %v702_v39 = vpop.f32.mrf.mxu2  ;;  %v725_v46 = vpop.f32.mrf.mxu3 }
 0x155   :  { %v6053_v47 = vadd.f32 %v702_v39, %v5975_v57  ;;  %v6056_v48 = vadd.f32 %v725_v46, %v5978_v58  ;;  %v6058_v49 = vpop.f32.mrf.mxu0  ;;  %v6060_v52 = vpop.f32.mrf.mxu1 }
 0x156   :  { %v2249_v57 = vpop.permute.xlu1 %2248  ;;  %v2247_v58 = vpop.permute.xlu0 %2246 }
 0x157   :  { %v2263_v25 = vsel %vm2260_vm9, %v2247_v58, %v2249_v57 }
 0x158   :  { %5005 = vmatmul.msk.f32.vlgmr.msrb.gmra.mxu0 %vm102_vm2, %v42_v24  ;;  %5008 = vmatmul.msk.f32.vlgmr.msrb.gmra.mxu1 %vm102_vm2, %v42_v24 }
 0x159   :  { %5011 = vmatmul.msk.f32.vlgmr.msrb.gmra.mxu2 %vm102_vm2, %v42_v24  ;;  %5014 = vmatmul.msk.f32.vlgmr.msrb.gmra.mxu3 %vm102_vm2, %v42_v24  ;;  %v44_v24 = vld [vmem:[%s7610_s2 + $0x70] sm:$0xff] }
 0x15a   :  { %5028 = vmatpush.msk.msrb.mxu0 %vm109_vm1, %v1989_v53  ;;  %5031 = vmatpush.msk.msrb.mxu1 %vm109_vm1, %v1990_v54  ;;  %v2259_v53 = vpop.permute.xlu2 %2258 }
 0x15b   :  { %5034 = vmatpush.msk.msrb.mxu2 %vm109_vm1, %v1991_v55  ;;  %5037 = vmatpush.msk.msrb.mxu3 %vm109_vm1, %v1992_v56 }
 0x15c   :  { %v791_v61 = vpop.f32.mrf.mxu2  ;;  %v814_v62 = vpop.f32.mrf.mxu3 }
 0x15d   :  { %v6075_v3 = vadd.f32 %v791_v61, %v5997_v8  ;;  %v6078_v4 = vadd.f32 %v814_v62, %v6000_v9  ;;  %v6080_v5 = vpop.f32.mrf.mxu0  ;;  %v6082_v6 = vpop.f32.mrf.mxu1 }
 0x15e   :  { %v2251_v7 = vpop.permute.xlu1 %2250  ;;  %v2245_v13 = vpop.permute.xlu0 %2244 }
 0x15f   :  { %v2262_v26 = vsel %vm2260_vm9, %v2245_v13, %v2247_v58 }
 0x160   :  { %5006 = vmatmul.msk.f32.gmra.mxu0 %vm102_vm2, %v43_v42  ;;  %5009 = vmatmul.msk.f32.gmra.mxu1 %vm102_vm2, %v43_v42 }
 0x161   :  { %5012 = vmatmul.msk.f32.gmra.mxu2 %vm102_vm2, %v43_v42  ;;  %5015 = vmatmul.msk.f32.gmra.mxu3 %vm102_vm2, %v43_v42 }
 0x164   :  { %v794_v8 = vpop.f32.mrf.mxu2  ;;  %v817_v14 = vpop.f32.mrf.mxu3 }
 0x165   :  { %v6089_v9 = vadd.f32 %v794_v8, %v6011_v18  ;;  %v6092_v15 = vadd.f32 %v817_v14, %v6014_v19  ;;  %v6094_v16 = vpop.f32.mrf.mxu0  ;;  %v6096_v17 = vpop.f32.mrf.mxu1  ;;  %v2264_v18 = vsel %vm2260_vm9, %v2249_v57, %v2251_v7  ;;  %v2261_v19 = vsel %vm2260_vm9, %v2243_v1, %v2245_v13 }
 0x166   :  { %v2253_v42 = vpop.permute.xlu1 %2252  ;;  %v2257_v43 = vpop.permute.xlu0 %2256 }
 0x167   :  { %7618 = vst [vmem:[#allocation3_spill] sm:$0xff] %v6089_v9  ;;  %v2265_v54 = vsel %vm2260_vm9, %v2251_v7, %v2253_v42  ;;  %v2266_v55 = vsel %vm2260_vm9, %v2253_v42, %v2255_v27  ;;  %v2267_v56 = vsel %vm2260_vm9, %v2255_v27, %v2257_v43  ;;  %v2268_v57 = vsel %vm2260_vm9, %v2257_v43, %v2259_v53  ;;  %v47_v27 = vld [vmem:[%s7610_s2 + $0x88] sm:$0xff] }
 0x168   :  { %7619 = vst [vmem:[#allocation4_spill] sm:$0xff] %v6092_v15  ;;  %5017 = vmatmul.msk.f32.vlgmr.msra.gmra.mxu0 %vm102_vm2, %v44_v24  ;;  %5020 = vmatmul.msk.f32.vlgmr.msra.gmra.mxu1 %vm102_vm2, %v44_v24 }
 0x169   :  { %5023 = vmatmul.msk.f32.vlgmr.msra.gmra.mxu2 %vm102_vm2, %v44_v24  ;;  %5026 = vmatmul.msk.f32.vlgmr.msra.gmra.mxu3 %vm102_vm2, %v44_v24 }
 0x16a   :  { %5043 = vmatpush.msk.msra.mxu1 %vm109_vm1, %v2262_v26  ;;  %5046 = vmatpush.msk.msra.mxu2 %vm109_vm1, %v2263_v25 }
 0x16b   :  { %5049 = vmatpush.msk.msra.mxu3 %vm109_vm1, %v2264_v18  ;;  %5040 = vmatpush.msk.msra.mxu0 %vm109_vm1, %v2261_v19 }
 0x16c   :  { %v6113_v28 = vpop.f32.mrf.mxu2  ;;  %v6115_v31 = vpop.f32.mrf.mxu3 }
 0x16d   :  { %v6117_v32 = vpop.f32.mrf.mxu0  ;;  %v6119_v33 = vpop.f32.mrf.mxu1 }
 0x170   :  { %5018 = vmatmul.msk.f32.gmra.mxu0 %vm102_vm2, %v45_v34  ;;  %5021 = vmatmul.msk.f32.gmra.mxu1 %vm102_vm2, %v45_v34 }
 0x171   :  { %5024 = vmatmul.msk.f32.gmra.mxu2 %vm102_vm2, %v45_v34  ;;  %5027 = vmatmul.msk.f32.gmra.mxu3 %vm102_vm2, %v45_v34 }
 0x174   :  { %v6128_v44 = vpop.f32.mrf.mxu2  ;;  %v6130_v45 = vpop.f32.mrf.mxu3 }
 0x175   :  { %v6132_v39 = vpop.f32.mrf.mxu0  ;;  %v6134_v46 = vpop.f32.mrf.mxu1 }
 0x178   :  { %5029 = vmatmul.msk.f32.vlgmr.msrb.gmra.mxu0 %vm102_vm2, %v44_v24  ;;  %5032 = vmatmul.msk.f32.vlgmr.msrb.gmra.mxu1 %vm102_vm2, %v44_v24 }
 0x179   :  { %5035 = vmatmul.msk.f32.vlgmr.msrb.gmra.mxu2 %vm102_vm2, %v44_v24  ;;  %5038 = vmatmul.msk.f32.vlgmr.msrb.gmra.mxu3 %vm102_vm2, %v44_v24  ;;  %v46_v24 = vld [vmem:[%s7610_s2 + $0x80] sm:$0xff] }
 0x17a   :  { %5052 = vmatpush.msk.msrb.mxu0 %vm109_vm1, %v2265_v54  ;;  %5055 = vmatpush.msk.msrb.mxu1 %vm109_vm1, %v2266_v55 }
 0x17b   :  { %5058 = vmatpush.msk.msrb.mxu2 %vm109_vm1, %v2267_v56  ;;  %5061 = vmatpush.msk.msrb.mxu3 %vm109_vm1, %v2268_v57 }
 0x17c   :  { %v6148_v58 = vpop.f32.mrf.mxu2  ;;  %v6150_v61 = vpop.f32.mrf.mxu3 }
 0x17d   :  { %v6152_v62 = vpop.f32.mrf.mxu0  ;;  %v6154_v1 = vpop.f32.mrf.mxu1 }
 0x180   :  { %5030 = vmatmul.msk.f32.gmra.mxu0 %vm102_vm2, %v45_v34  ;;  %5033 = vmatmul.msk.f32.gmra.mxu1 %vm102_vm2, %v45_v34 }
 0x181   :  { %5036 = vmatmul.msk.f32.gmra.mxu2 %vm102_vm2, %v45_v34  ;;  %5039 = vmatmul.msk.f32.gmra.mxu3 %vm102_vm2, %v45_v34 }
 0x184   :  { %v6160_v7 = vpop.f32.mrf.mxu2  ;;  %v6162_v13 = vpop.f32.mrf.mxu3 }
 0x185   :  { %7620 = vst [vmem:[#allocation5_spill] sm:$0xff] %v6160_v7  ;;  %v6164_v8 = vpop.f32.mrf.mxu0  ;;  %v6166_v14 = vpop.f32.mrf.mxu1 }
 0x186   :  { %7621 = vst [vmem:[#allocation6_spill] sm:$0xff] %v6162_v13 }
 0x188   :  { %5041 = vmatmul.msk.f32.vlgmr.msra.gmra.mxu0 %vm102_vm2, %v46_v24  ;;  %5044 = vmatmul.msk.f32.vlgmr.msra.gmra.mxu1 %vm102_vm2, %v46_v24 }
 0x189   :  { %5047 = vmatmul.msk.f32.vlgmr.msra.gmra.mxu2 %vm102_vm2, %v46_v24  ;;  %5050 = vmatmul.msk.f32.vlgmr.msra.gmra.mxu3 %vm102_vm2, %v46_v24 }
 0x18c   :  { %v6175_v25 = vpop.f32.mrf.mxu2  ;;  %v6177_v26 = vpop.f32.mrf.mxu3 }
 0x18d   :  { %7622 = vst [vmem:[#allocation7_spill] sm:$0xff] %v6177_v26  ;;  %v6179_v18 = vpop.f32.mrf.mxu0  ;;  %v6181_v19 = vpop.f32.mrf.mxu1 }
 0x18e   :  { %7623 = vst [vmem:[#allocation8_spill] sm:$0xff] %v6179_v18 }
 0x18f   :  { %7624 = vst [vmem:[#allocation9_spill] sm:$0xff] %v6181_v19 }
 0x190   :  { %5042 = vmatmul.msk.f32.gmra.mxu0 %vm102_vm2, %v47_v27  ;;  %5045 = vmatmul.msk.f32.gmra.mxu1 %vm102_vm2, %v47_v27 }
 0x191   :  { %5048 = vmatmul.msk.f32.gmra.mxu2 %vm102_vm2, %v47_v27  ;;  %5051 = vmatmul.msk.f32.gmra.mxu3 %vm102_vm2, %v47_v27 }
 0x194   :  { %v6190_v34 = vpop.f32.mrf.mxu2  ;;  %v6192_v42 = vpop.f32.mrf.mxu3 }
 0x195   :  { %7625 = vst [vmem:[#allocation10_spill] sm:$0xff] %v6190_v34  ;;  %v6194_v43 = vpop.f32.mrf.mxu0  ;;  %v6196_v53 = vpop.f32.mrf.mxu1 }
 0x196   :  { %7626 = vst [vmem:[#allocation11_spill] sm:$0xff] %v6192_v42 }
 0x197   :  { %7627 = vst [vmem:[#allocation12_spill] sm:$0xff] %v6194_v43 }
 0x198   :  { %7628 = vst [vmem:[#allocation13_spill] sm:$0xff] %v6196_v53  ;;  %5053 = vmatmul.msk.f32.vlgmr.msrb.gmra.mxu0 %vm102_vm2, %v46_v24  ;;  %5056 = vmatmul.msk.f32.vlgmr.msrb.gmra.mxu1 %vm102_vm2, %v46_v24 }
 0x199   :  { %5059 = vmatmul.msk.f32.vlgmr.msrb.gmra.mxu2 %vm102_vm2, %v46_v24  ;;  %5062 = vmatmul.msk.f32.vlgmr.msrb.gmra.mxu3 %vm102_vm2, %v46_v24 }
 0x19c   :  { %v6202_v54 = vpop.f32.mrf.mxu2  ;;  %v6204_v55 = vpop.f32.mrf.mxu3 }
 0x19d   :  { %7629 = vst [vmem:[#allocation14_spill] sm:$0xff] %v6202_v54  ;;  %v6206_v56 = vpop.f32.mrf.mxu0  ;;  %v6208_v57 = vpop.f32.mrf.mxu1 }
 0x19e   :  { %7630 = vst [vmem:[#allocation15_spill] sm:$0xff] %v6204_v55 }
 0x19f   :  { %7631 = vst [vmem:[#allocation16_spill] sm:$0xff] %v6206_v56 }
 0x1a0   :  { %7632 = vst [vmem:[#allocation17_spill] sm:$0xff] %v6208_v57  ;;  %5054 = vmatmul.msk.f32.gmra.mxu0 %vm102_vm2, %v47_v27  ;;  %5057 = vmatmul.msk.f32.gmra.mxu1 %vm102_vm2, %v47_v27 }
 0x1a1   :  { %5060 = vmatmul.msk.f32.gmra.mxu2 %vm102_vm2, %v47_v27  ;;  %5063 = vmatmul.msk.f32.gmra.mxu3 %vm102_vm2, %v47_v27  ;;  %vm2856_vm2 = vcmask 130048  }
 0x1a4   :  { %v6214_v53 = vpop.f32.mrf.mxu2  ;;  %v6216_v43 = vpop.f32.mrf.mxu3 }
 0x1a5   :  { %7633 = vst [vmem:[#allocation18_spill] sm:$0xff] %v6214_v53  ;;  %v6218_v24 = vpop.f32.mrf.mxu0  ;;  %v6220_v54 = vpop.f32.mrf.mxu1 }
 0x1a6   :  { %7634 = vst [vmem:[#allocation19_spill] sm:$0xff] %v6216_v43 }
 0x1ac   :  { %v6222_v55 = vpop.f32.mrf.mxu2  ;;  %v6224_v56 = vpop.f32.mrf.mxu3 }
 0x1ad   :  { %7635 = vst [vmem:[#allocation20_spill] sm:$0xff] %v6224_v56  ;;  %v6226_v57 = vpop.f32.mrf.mxu0  ;;  %v6228_v42 = vpop.f32.mrf.mxu1 }
 0x1ae   :  { %7636 = vst [vmem:[#allocation21_spill] sm:$0xff] %v6226_v57 }
 0x1af   :  { %7637 = vst [vmem:[#allocation22_spill] sm:$0xff] %v6228_v42 }
 0x1b4   :  { %v6230_v34 = vpop.f32.mrf.mxu2  ;;  %v6232_v19 = vpop.f32.mrf.mxu3 }
 0x1b5   :  { %7638 = vst [vmem:[#allocation23_spill] sm:$0xff] %v6230_v34  ;;  %v6234_v27 = vpop.f32.mrf.mxu0  ;;  %v6236_v53 = vpop.f32.mrf.mxu1 }
 0x1b6   :  { %7639 = vst [vmem:[#allocation24_spill] sm:$0xff] %v6232_v19 }
 0x1b7   :  { %7640 = vst [vmem:[#allocation25_spill] sm:$0xff] %v6234_v27 }
 0x1b8   :  { %7641 = vst [vmem:[#allocation26_spill] sm:$0xff] %v6236_v53 }
 0x1bc   :  { %v6238_v43 = vpop.f32.mrf.mxu2  ;;  %v6240_v18 = vpop.f32.mrf.mxu3 }
 0x1bd   :  { %7642 = vst [vmem:[#allocation27_spill] sm:$0xff] %v6238_v43  ;;  %v6242_v26 = vpop.f32.mrf.mxu0  ;;  %v6244_v13 = vpop.f32.mrf.mxu1 }
 0x1be   :  { %7643 = vst [vmem:[#allocation28_spill] sm:$0xff] %v6240_v18 }
 0x1bf   :  { %7644 = vst [vmem:[#allocation29_spill] sm:$0xff] %v6242_v26 }
 0x1c0   :  { %7645 = vst [vmem:[#allocation30_spill] sm:$0xff] %v6244_v13 }
 0x1c4   :  { %v6246_v56 = vpop.f32.mrf.mxu2  ;;  %v6248_v57 = vpop.f32.mrf.mxu3 }
 0x1c5   :  { %7646 = vst [vmem:[#allocation31_spill] sm:$0xff] %v6246_v56  ;;  %v6250_v42 = vpop.f32.mrf.mxu0  ;;  %v6252_v34 = vpop.f32.mrf.mxu1 }
 0x1c6   :  { %7647 = vst [vmem:[#allocation32_spill] sm:$0xff] %v6248_v57 }
 0x1cc   :  { %v6254_v19 = vpop.f32.mrf.mxu2  ;;  %v6256_v27 = vpop.f32.mrf.mxu3 }
 0x1cd   :  { %7648 = vst [vmem:[#allocation33_spill] sm:$0xff] %v6254_v19  ;;  %v6258_v53 = vpop.f32.mrf.mxu0  ;;  %v6260_v43 = vpop.f32.mrf.mxu1 }
 0x1ce   :  { %7649 = vst [vmem:[#allocation34_spill] sm:$0xff] %v6256_v27 }
 0x1cf   :  { %7650 = vst [vmem:[#allocation35_spill] sm:$0xff] %v6258_v53 }
 0x1d0   :  { %7651 = vst [vmem:[#allocation36_spill] sm:$0xff] %v6260_v43 }
 0x1d4   :  { %v6262_v18 = vpop.f32.mrf.mxu2  ;;  %v6264_v26 = vpop.f32.mrf.mxu3 }
 0x1d5   :  { %7652 = vst [vmem:[#allocation37_spill] sm:$0xff] %v6262_v18  ;;  %v6266_v13 = vpop.f32.mrf.mxu0  ;;  %v6268_v56 = vpop.f32.mrf.mxu1 }
 0x1d6   :  { %7653 = vst [vmem:[#allocation38_spill] sm:$0xff] %v6264_v26 }
 0x1d7   :  { %7654 = vst [vmem:[#allocation39_spill] sm:$0xff] %v6266_v13 }
 0x1d8   :  { %7655 = vst [vmem:[#allocation40_spill] sm:$0xff] %v6268_v56 }
 0x1dc   :  { %v6270_v57 = vpop.f32.mrf.mxu2  ;;  %v6272_v15 = vpop.f32.mrf.mxu3 }
 0x1dd   :  { %7656 = vst [vmem:[#allocation41_spill] sm:$0xff] %v6270_v57  ;;  %v6274_v7 = vpop.f32.mrf.mxu0  ;;  %v6276_v19 = vpop.f32.mrf.mxu1 }
 0x1de   :  { %7657 = vst [vmem:[#allocation42_spill] sm:$0xff] %v6272_v15 }
 0x1df   :  { %7658 = vst [vmem:[#allocation43_spill] sm:$0xff] %v6274_v7 }
 0x1e0   :  { %7659 = vst [vmem:[#allocation44_spill] sm:$0xff] %v6276_v19 }
 0x1e4   :  { %v6278_v27 = vpop.f32.mrf.mxu2  ;;  %v6280_v53 = vpop.f32.mrf.mxu3 }
 0x1e5   :  { %7660 = vst [vmem:[#allocation45_spill] sm:$0xff] %v6278_v27  ;;  %v2032_v43 = vpop.f32.mrf.mxu0  ;;  %v2055_v18 = vpop.f32.mrf.mxu1 }
 0x1e6   :  { %7661 = vst [vmem:[#allocation46_spill] sm:$0xff] %v6280_v53 }
 0x1ec   :  { %v6282_v9 = vpop.f32.mrf.mxu2  ;;  %v6284_v26 = vpop.f32.mrf.mxu3 }
 0x1ed   :  { %7662 = vst [vmem:[#allocation47_spill] sm:$0xff] %v6282_v9  ;;  %v6286_v13 = vpop.f32.mrf.mxu0  ;;  %v6288_v56 = vpop.f32.mrf.mxu1  ;;  %v394_v9 = vadd.f32 %v5938_v36, %v5862_v63  ;;  %v486_v63 = vadd.f32 %v5980_v59, %v5905_v20  ;;  %v489_v36 = vadd.f32 %v6002_v10, %v5926_v29  ;;  %v1098_v29 = vadd.f32 %v6113_v28, %v6036_v35 }
 0x1ee   :  { %7663 = vst [vmem:[#allocation48_spill] sm:$0xff] %v6284_v26  ;;  %v1106_v35 = vadd.f32 %v6128_v44, %v6053_v47  ;;  %v1103_v47 = vadd.f32 %v6150_v61, %v6078_v4  ;;  %v7673_v4 = vld [vmem:[#allocation6_spill] sm:$0xff]  ;;  %v7674_v61 = vld [vmem:[#allocation7_spill] sm:$0xff] }
 0x1ef   :  { %7664 = vst [vmem:[#allocation49_spill] sm:$0xff] %v6286_v13  ;;  %v417_v13 = vadd.f32 %v5940_v37, %v5864_v0  ;;  %v509_v0 = vadd.f32 %v5982_v60, %v5907_v21  ;;  %v512_v37 = vadd.f32 %v6004_v2, %v5928_v30  ;;  %v832_v21 = vadd.f32 %v6080_v5, %v489_v36 }
 0x1f0   :  { %7665 = vst [vmem:[#allocation50_spill] sm:$0xff] %v6288_v56  ;;  %v1099_v60 = vadd.f32 %v6115_v31, %v6039_v38  ;;  %v1107_v38 = vadd.f32 %v6130_v45, %v6056_v48  ;;  %v6363_v48 = vld [vmem:[%s7611_s1] sm:$0xff]  ;;  %v7670_v45 = vld [vmem:[#allocation3_spill] sm:$0xff] }
 0x1f1   :  { %v825_v20 = vadd.f32 %v6060_v52, %v509_v0  ;;  %v833_v59 = vadd.f32 %v6082_v6, %v512_v37  ;;  %v6387_v36 = vperm.slane %v6363_v48, 1  ;;  %v7681_v37 = vld [vmem:[#allocation12_spill] sm:$0xff] }
 0x1f3   :  { %v1109_v44 = vadd.f32 %v6154_v1, %v833_v59  ;;  %v6379_v1 = vperm.slane %v6363_v48, 0 }
 0x1f4   :  { %v6290_v57 = vpop.f32.mrf.mxu2  ;;  %v6292_v15 = vpop.f32.mrf.mxu3 }
 0x1f5   :  { %7666 = vst [vmem:[#allocation51_spill] sm:$0xff] %v6292_v15  ;;  %v6294_v7 = vpop.f32.mrf.mxu0  ;;  %v6296_v19 = vpop.f32.mrf.mxu1  ;;  %v820_v15 = vadd.f32 %v6016_v22, %v394_v9 }
 0x1f6   :  { %7667 = vst [vmem:[#allocation52_spill] sm:$0xff] %v6294_v7  ;;  %v821_v7 = vadd.f32 %v6018_v23, %v417_v13  ;;  %v7675_v13 = vld [vmem:[#allocation33_spill] sm:$0xff] }
 0x1f7   :  { %7668 = vst [vmem:[#allocation53_spill] sm:$0xff] %v6296_v19  ;;  %v397_v19 = vadd.f32 %v5963_v50, %v5886_v11  ;;  %v1096_v22 = vadd.f32 %v6094_v16, %v820_v15  ;;  %v824_v50 = vadd.f32 %v6058_v49, %v486_v63  ;;  %v1374_v49 = vadd.f32 %v6175_v25, %v1098_v29  ;;  %v7684_v29 = vld [vmem:[#allocation21_spill] sm:$0xff] }
 0x1f8   :  { %v1097_v23 = vadd.f32 %v6096_v17, %v821_v7  ;;  %v1101_v16 = vadd.f32 %v6134_v46, %v825_v20  ;;  %v1102_v17 = vadd.f32 %v6148_v58, %v6075_v3  ;;  %v7671_v3 = vld [vmem:[#allocation5_spill] sm:$0xff]  ;;  %v7672_v46 = vld [vmem:[#allocation4_spill] sm:$0xff]  ;;  %v1375_v7 = vadd.f32 %v7674_v61, %v1099_v60 }
 0x1f9   :  { %v828_v11 = vadd.f32 %v6041_v40, %v397_v19  ;;  %v1100_v15 = vadd.f32 %v6132_v39, %v824_v50  ;;  %v1649_v28 = vadd.f32 %v6222_v55, %v1374_v49  ;;  %v1110_v39 = vadd.f32 %v7671_v3, %v7670_v45  ;;  %v7676_v19 = vld [vmem:[#allocation8_spill] sm:$0xff]  ;;  %v7679_v55 = vld [vmem:[#allocation47_spill] sm:$0xff]  ;;  %v7686_v49 = vld [vmem:[#allocation14_spill] sm:$0xff] }
 0x1fa   :  { %v1373_v30 = vadd.f32 %v6166_v14, %v1097_v23  ;;  %v6371_v58 = vadd.f32 %v7673_v4, %v7672_v46  ;;  %v7682_v23 = vld [vmem:[#allocation13_spill] sm:$0xff]  ;;  %v7692_v4 = vld [vmem:[#allocation16_spill] sm:$0xff] }
 0x1fb   :  { %v1104_v10 = vadd.f32 %v6117_v32, %v828_v11  ;;  %v1377_v11 = vadd.f32 %v7682_v23, %v1101_v16 }
 0x1fc   :  { %v6298_v27 = vpop.f32.mrf.mxu2  ;;  %v6300_v53 = vpop.f32.mrf.mxu3  ;;  %v1648_v5 = vadd.f32 %v6220_v54, %v1373_v30  ;;  %v7685_v30 = vld [vmem:[#allocation22_spill] sm:$0xff] }
 0x1fd   :  { %7669 = vst [vmem:[#allocation54_spill] sm:$0xff] %v6300_v53  ;;  %v6306_v26 = vpop.f32.mrf.mxu0  ;;  %v6308_v56 = vpop.f32.mrf.mxu1  ;;  %v420_v53 = vadd.f32 %v5965_v51, %v5888_v12  ;;  %v1372_v51 = vadd.f32 %v6164_v8, %v1096_v22  ;;  %v1925_v8 = vadd.f32 %v7675_v13, %v1649_v28  ;;  %v1376_v22 = vadd.f32 %v7681_v37, %v1100_v15  ;;  %v7689_v15 = vld [vmem:[#allocation34_spill] sm:$0xff]  ;;  %v7690_v28 = vld [vmem:[#allocation35_spill] sm:$0xff]  ;;  %v7694_v13 = vld [vmem:[#allocation25_spill] sm:$0xff] }
 0x1fe   :  { %v1924_v32 = vadd.f32 %v6252_v34, %v1648_v5  ;;  %v1380_v34 = vadd.f32 %v7676_v19, %v1104_v10  ;;  %v6398_v10 = vperm.slane %v6363_v48, 2  ;;  %v7687_v5 = vld [vmem:[#allocation15_spill] sm:$0xff] }
 0x1ff   :  { %v829_v12 = vadd.f32 %v6043_v41, %v420_v53  ;;  %v1647_v52 = vadd.f32 %v6218_v24, %v1372_v51  ;;  %v2201_v24 = vadd.f32 %v7679_v55, %v1925_v8  ;;  %v7695_v8 = vld [vmem:[#allocation37_spill] sm:$0xff]  ;;  %v7699_v55 = vld [vmem:[#allocation26_spill] sm:$0xff] }
 0x200   :  { %v2200_v25 = vadd.f32 %v2055_v18, %v1924_v32  ;;  %v1655_v51 = vadd.f32 %v7684_v29, %v1380_v34  ;;  %v7691_v32 = vld [vmem:[#allocation36_spill] sm:$0xff]  ;;  %v7697_v34 = vld [vmem:[#allocation49_spill] sm:$0xff] }
 0x201   :  { %v1105_v2 = vadd.f32 %v6119_v33, %v829_v12  ;;  %v1923_v31 = vadd.f32 %v6250_v42, %v1647_v52  ;;  %v1108_v33 = vadd.f32 %v6152_v62, %v832_v21  ;;  %v7677_v42 = vld [vmem:[#allocation9_spill] sm:$0xff]  ;;  %v7678_v62 = vld [vmem:[#allocation10_spill] sm:$0xff]  ;;  %v7683_v12 = vld [vmem:[#allocation20_spill] sm:$0xff]  ;;  %v1378_v52 = vadd.f32 %v7686_v49, %v1102_v17 }
 0x202   :  { %v1382_v54 = vadd.f32 %v7678_v62, %v1106_v35  ;;  %v1650_v50 = vadd.f32 %v7683_v12, %v1375_v7  ;;  %v7693_v7 = vld [vmem:[#allocation17_spill] sm:$0xff] }
 0x203   :  { %v2199_v14 = vadd.f32 %v2032_v43, %v1923_v31  ;;  %v1381_v53 = vadd.f32 %v7677_v42, %v1105_v2  ;;  %v7680_v43 = vld [vmem:[#allocation11_spill] sm:$0xff]  ;;  %v1931_v31 = vadd.f32 %v7690_v28, %v1655_v51  ;;  %v1384_v61 = vadd.f32 %v7692_v4, %v1108_v33  ;;  %v7702_v51 = vld [vmem:[#allocation24_spill] sm:$0xff]  ;;  %v7709_v4 = vld [vmem:[#allocation53_spill] sm:$0xff] }
 0x204   :  { %v6340_v40 = vpop.f32.mrf.mxu2  ;;  %v6342_v41 = vpop.f32.mrf.mxu3  ;;  %v1383_v18 = vadd.f32 %v7680_v43, %v1107_v38  ;;  %v1926_v16 = vadd.f32 %v7689_v15, %v1650_v50  ;;  %v1385_v17 = vadd.f32 %v7693_v7, %v1109_v44  ;;  %v7700_v43 = vld [vmem:[#allocation39_spill] sm:$0xff]  ;;  %v6423_v44 = vperm.slane %v6363_v48, 3  ;;  %v7705_v15 = vld [vmem:[#allocation40_spill] sm:$0xff] }
 0x205   :  { %v2308_v6 = vpop.f32.mrf.mxu0  ;;  %v2331_v9 = vpop.f32.mrf.mxu1  ;;  %v1656_v59 = vadd.f32 %v7685_v30, %v1381_v53  ;;  %v2207_v42 = vadd.f32 %v7697_v34, %v1931_v31  ;;  %v7698_v53 = vld [vmem:[#allocation50_spill] sm:$0xff]  ;;  %v7706_v31 = vld [vmem:[#allocation28_spill] sm:$0xff] }
 0x206   :  { %v6382_v63 = vadd.f32 %v2308_v6, %v2199_v14  ;;  %v6384_v0 = vadd.f32 %v2331_v9, %v2200_v25  ;;  %v1379_v6 = vadd.f32 %v7687_v5, %v1103_v47  ;;  %v7688_v9 = vld [vmem:[#allocation23_spill] sm:$0xff]  ;;  %v1651_v47 = vadd.f32 %v7694_v13, %v1376_v22  ;;  %v7696_v25 = vld [vmem:[#allocation48_spill] sm:$0xff] }
 0x207   :  { %v1657_v38 = vadd.f32 %v7688_v9, %v1382_v54  ;;  %v1932_v45 = vadd.f32 %v7691_v32, %v1656_v59  ;;  %v2202_v19 = vadd.f32 %v7696_v25, %v1926_v16  ;;  %v1658_v30 = vadd.f32 %v7702_v51, %v1383_v18  ;;  %v7703_v59 = vld [vmem:[#allocation52_spill] sm:$0xff]  ;;  %v7704_v9 = vld [vmem:[#allocation27_spill] sm:$0xff]  ;;  %v7707_v32 = vld [vmem:[#allocation29_spill] sm:$0xff] }
 0x208   :  { %v2508_v3 = vmul.f32 %v6379_v1, %v6382_v63  ;;  %v2509_v46 = vmul.f32 %v6387_v36, %v6384_v0  ;;  %v1927_v37 = vadd.f32 %v7700_v43, %v1651_v47  ;;  %v1659_v18 = vadd.f32 %v7707_v32, %v1384_v61  ;;  %v7712_v61 = vld [vmem:[#allocation51_spill] sm:$0xff] }
 0x209   :  { %v1933_v14 = vadd.f32 %v7695_v8, %v1657_v38  ;;  %v2208_v62 = vadd.f32 %v7698_v53, %v1932_v45  ;;  %v1653_v38 = vadd.f32 %v7704_v9, %v1378_v52  ;;  %v7708_v45 = vld [vmem:[#allocation38_spill] sm:$0xff]  ;;  %v7710_v8 = vld [vmem:[#allocation41_spill] sm:$0xff]  ;;  %v7714_v43 = vld [vmem:[#allocation43_spill] sm:$0xff] }
 0x20a   :  { %v2524_v22 = vadd.f32 %v2509_v46, %v2508_v3  ;;  %v1934_v3 = vadd.f32 %v7708_v45, %v1658_v30  ;;  %v7718_v32 = vld [vmem:[#allocation31_spill] sm:$0xff] }
 0x20b   :  { %v2209_v33 = vadd.f32 %v6290_v57, %v1933_v14  ;;  %v6435_v57 = vperm.slane %v6363_v48, 4  ;;  %v1929_v14 = vadd.f32 %v7710_v8, %v1653_v38  ;;  %v7717_v38 = vld [vmem:[#allocation44_spill] sm:$0xff]  ;;  %v7721_v8 = vld [vmem:[#allocation46_spill] sm:$0xff] }
 0x20c   :  { %v2354_v20 = vpop.f32.mrf.mxu2  ;;  %v2377_v21 = vpop.f32.mrf.mxu3 }
 0x20d   :  { %v6395_v60 = vadd.f32 %v2354_v20, %v2201_v24  ;;  %v2311_v2 = vpop.f32.mrf.mxu0  ;;  %v2334_v35 = vpop.f32.mrf.mxu1  ;;  %v1652_v24 = vadd.f32 %v7699_v55, %v1377_v11  ;;  %v6425_v23 = vadd.f32 %v2377_v21, %v2202_v19  ;;  %v7701_v20 = vld [vmem:[#allocation18_spill] sm:$0xff]  ;;  %v2203_v11 = vadd.f32 %v7703_v59, %v1927_v37 }
 0x20e   :  { %v6427_v12 = vadd.f32 %v2311_v2, %v2207_v42  ;;  %v6429_v50 = vadd.f32 %v2334_v35, %v2208_v62  ;;  %v1386_v29 = vadd.f32 %v7701_v20, %v1110_v39  ;;  %v1654_v39 = vadd.f32 %v7706_v31, %v1379_v6  ;;  %v7711_v6 = vld [vmem:[#allocation42_spill] sm:$0xff] }
 0x20f   :  { %v2510_v54 = vmul.f32 %v6398_v10, %v6395_v60  ;;  %v1928_v21 = vadd.f32 %v7705_v15, %v1652_v24  ;;  %v2511_v52 = vmul.f32 %v6423_v44, %v6425_v23  ;;  %v2210_v19 = vadd.f32 %v7712_v61, %v1934_v3  ;;  %v7713_v55 = vld [vmem:[#allocation30_spill] sm:$0xff] }
 0x210   :  { %v2516_v13 = vmul.f32 %v6379_v1, %v6427_v12  ;;  %v2517_v47 = vmul.f32 %v6387_v36, %v6429_v50  ;;  %v1930_v25 = vadd.f32 %v7711_v6, %v1654_v39  ;;  %v1660_v24 = vadd.f32 %v7713_v55, %v1385_v17 }
 0x211   :  { %v2525_v16 = vadd.f32 %v2524_v22, %v2510_v54  ;;  %v2204_v7 = vadd.f32 %v7709_v4, %v1928_v21  ;;  %v6463_v54 = vperm.slane %v6363_v48, 5  ;;  %v1935_v37 = vadd.f32 %v7714_v43, %v1659_v18  ;;  %v7715_v22 = vld [vmem:[#allocation54_spill] sm:$0xff]  ;;  %v7719_v18 = vld [vmem:[#allocation32_spill] sm:$0xff] }
 0x212   :  { %v2206_v20 = vadd.f32 %v7715_v22, %v1930_v25  ;;  %v2533_v51 = vadd.f32 %v2517_v47, %v2516_v13  ;;  %v1936_v15 = vadd.f32 %v7717_v38, %v1660_v24  ;;  %v7720_v13 = vld [vmem:[#allocation45_spill] sm:$0xff] }
 0x213   :  { %v2526_v42 = vadd.f32 %v2525_v16, %v2511_v52  ;;  %v2211_v21 = vadd.f32 %v6306_v26, %v1935_v37 }
 0x214   :  { %v2357_v49 = vpop.f32.mrf.mxu2  ;;  %v2380_v5 = vpop.f32.mrf.mxu3  ;;  %v2212_v4 = vadd.f32 %v6308_v56, %v1936_v15 }
 0x215   :  { %v6439_v2 = vadd.f32 %v2357_v49, %v2209_v33  ;;  %v2400_v35 = vpop.f32.mrf.mxu0  ;;  %v2423_v28 = vpop.f32.mrf.mxu1  ;;  %v2205_v33 = vadd.f32 %v6298_v27, %v1929_v14  ;;  %v2486_v30 = vadd.f32 %v2380_v5, %v2210_v19  ;;  %v7716_v49 = vld [vmem:[#allocation19_spill] sm:$0xff] }
 0x216   :  { %v6444_v46 = vadd.f32 %v2400_v35, %v2203_v11  ;;  %v6460_v62 = vadd.f32 %v2423_v28, %v2204_v7  ;;  %v6470_v11 = vperm.slane %v6363_v48, 6  ;;  %v1387_v9 = vadd.f32 %v7716_v49, %v6371_v58 }
 0x217   :  { %v2518_v53 = vmul.f32 %v6398_v10, %v6439_v2  ;;  %v6477_v35 = vperm.slane %v6363_v48, 7  ;;  %v1661_v58 = vadd.f32 %v7718_v32, %v1386_v29  ;;  %v2519_v48 = vmul.f32 %v6423_v44, %v2486_v30 }
 0x218   :  { %v2512_v34 = vmul.f32 %v6435_v57, %v6444_v46  ;;  %v2513_v5 = vmul.f32 %v6463_v54, %v6460_v62  ;;  %v1662_v45 = vadd.f32 %v7719_v18, %v1387_v9 }
 0x219   :  { %v2534_v27 = vadd.f32 %v2533_v51, %v2518_v53  ;;  %v1937_v47 = vadd.f32 %v7720_v13, %v1661_v58 }
 0x21a   :  { %v2527_v59 = vadd.f32 %v2526_v42, %v2512_v34  ;;  %v1938_v14 = vadd.f32 %v7721_v8, %v1662_v45 }
 0x21b   :  { %v2535_v25 = vadd.f32 %v2534_v27, %v2519_v48  ;;  %v2213_v56 = vadd.f32 %v6340_v40, %v1937_v47 }
 0x21c   :  { %v2446_v17 = vpop.f32.mrf.mxu2  ;;  %v2469_v16 = vpop.f32.mrf.mxu3  ;;  %v2528_v7 = vadd.f32 %v2527_v59, %v2513_v5  ;;  %v2214_v34 = vadd.f32 %v6342_v41, %v1938_v14 }
 0x21d   :  { %v6481_v28 = vadd.f32 %v2446_v17, %v2205_v33  ;;  %v6483_v31 = vadd.f32 %v2469_v16, %v2206_v20  ;;  %v2403_v39 = vpop.f32.mrf.mxu0  ;;  %v2426_v26 = vpop.f32.mrf.mxu1 }
 0x21e   :  { %v2487_v3 = vadd.f32 %v2403_v39, %v2211_v21  ;;  %v2488_v61 = vadd.f32 %v2426_v26, %v2212_v4 }
 0x21f   :  { %v2514_v52 = vmul.f32 %v6470_v11, %v6481_v28  ;;  %v2515_v29 = vmul.f32 %v6477_v35, %v6483_v31 }
 0x220   :  { %v2520_v6 = vmul.f32 %v6435_v57, %v2487_v3  ;;  %v2521_v43 = vmul.f32 %v6463_v54, %v2488_v61 }
 0x221   :  { %v2529_v19 = vadd.f32 %v2528_v7, %v2514_v52 }
 0x222   :  { %v2536_v42 = vadd.f32 %v2535_v25, %v2520_v6 }
 0x223   :  { %v2530_v53 = vadd.f32 %v2529_v19, %v2515_v29 }
 0x224   :  { %v2449_v55 = vpop.f32.mrf.mxu2  ;;  %v2472_v24 = vpop.f32.mrf.mxu3  ;;  %v2537_v22 = vadd.f32 %v2536_v42, %v2521_v43 }
 0x225   :  { %v2489_v37 = vadd.f32 %v2449_v55, %v2213_v56  ;;  %v2490_v33 = vadd.f32 %v2472_v24, %v2214_v34  ;;  %2531 = vadd.xlane.f32.xlu1 %v2530_v53 }
 0x227   :  { %v2522_v20 = vmul.f32 %v6470_v11, %v2489_v37  ;;  %v2523_v51 = vmul.f32 %v6477_v35, %v2490_v33 }
 0x229   :  { %v2538_v59 = vadd.f32 %v2537_v22, %v2522_v20 }
 0x22b   :  { %v2539_v49 = vadd.f32 %v2538_v59, %v2523_v51 }
 0x22d   :  { %2540 = vadd.xlane.f32.xlu0 %v2539_v49 }
 0x298   :  { %v2532_v40 = vpop.xlane.xlu1 %2531 }
 0x299   :  { %v2542_v9 = vmul.f32 0.001953125, %v2532_v40 }
 0x29b   :  { %v6502_v41 = vsub.f32 %v6382_v63, %v2542_v9  ;;  %v6505_v38 = vsub.f32 %v6384_v0, %v2542_v9  ;;  %v6512_v17 = vsub.f32 %v6395_v60, %v2542_v9  ;;  %v6517_v63 = vsub.f32 %v6425_v23, %v2542_v9 }
 0x29c   :  { %v6558_v6 = vsub.f32 %v6460_v62, %v2542_v9  ;;  %v6572_v24 = vsub.f32 %v6481_v28, %v2542_v9  ;;  %v6582_v40 = vsub.f32 %v6483_v31, %v2542_v9 }
 0x29d   :  { %v2560_v15 = vmul.f32 %v6502_v41, %v6502_v41  ;;  %v2561_v21 = vmul.f32 %v6505_v38, %v6505_v38  ;;  %v2562_v0 = vmul.f32 %v6512_v17, %v6512_v17 }
 0x29e   :  { %v2565_v43 = vmul.f32 %v6558_v6, %v6558_v6 }
 0x29f   :  { %v2576_v27 = vmul.f32 %v2560_v15, %v6379_v1  ;;  %v2577_v5 = vmul.f32 %v2561_v21, %v6387_v36  ;;  %v2566_v21 = vmul.f32 %v6572_v24, %v6572_v24 }
 0x2a0   :  { %v2541_v16 = vpop.xlane.xlu0 %2540 }
 0x2a1   :  { %v2543_v39 = vmul.f32 0.001953125, %v2541_v16  ;;  %v2592_v45 = vadd.f32 %v2577_v5, %v2576_v27  ;;  %v2581_v16 = vmul.f32 %v2565_v43, %v6463_v54 }
 0x2a3   :  { %v6522_v32 = vsub.f32 %v6427_v12, %v2543_v39  ;;  %v6525_v58 = vsub.f32 %v6429_v50, %v2543_v39  ;;  %v6528_v60 = vsub.f32 %v6439_v2, %v2543_v39  ;;  %v6530_v18 = vsub.f32 %v2486_v30, %v2543_v39 }
 0x2a4   :  { %v6532_v26 = vsub.f32 %v2487_v3, %v2543_v39  ;;  %v6541_v50 = vsub.f32 %v6444_v46, %v2542_v9  ;;  %v2563_v2 = vmul.f32 %v6517_v63, %v6517_v63  ;;  %v2578_v30 = vmul.f32 %v2562_v0, %v6398_v10 }
 0x2a5   :  { %v2568_v23 = vmul.f32 %v6522_v32, %v6522_v32  ;;  %v2569_v4 = vmul.f32 %v6525_v58, %v6525_v58  ;;  %v2570_v12 = vmul.f32 %v6528_v60, %v6528_v60  ;;  %v6546_v48 = vsub.f32 %v2488_v61, %v2543_v39 }
 0x2a6   :  { %v2571_v3 = vmul.f32 %v6530_v18, %v6530_v18  ;;  %v6552_v13 = vsub.f32 %v2489_v37, %v2543_v39  ;;  %v2572_v46 = vmul.f32 %v6532_v26, %v6532_v26  ;;  %v2593_v14 = vadd.f32 %v2592_v45, %v2578_v30  ;;  %v2665_v30 = vld [vmem:[%s7612_s4 + $0x8] sm:$0xff] }
 0x2a7   :  { %v2584_v7 = vmul.f32 %v2568_v23, %v6379_v1  ;;  %v2585_v52 = vmul.f32 %v2569_v4, %v6387_v36  ;;  %v2586_v47 = vmul.f32 %v2570_v12, %v6398_v10  ;;  %v2564_v25 = vmul.f32 %v6541_v50, %v6541_v50  ;;  %v2664_v23 = vld [vmem:[%s7612_s4] sm:$0xff] }
 0x2a8   :  { %v2579_v29 = vmul.f32 %v2563_v2, %v6423_v44  ;;  %v6563_v61 = vsub.f32 %v2490_v33, %v2543_v39  ;;  %v2573_v19 = vmul.f32 %v6546_v48, %v6546_v48  ;;  %v2587_v56 = vmul.f32 %v2571_v3, %v6423_v44 }
 0x2a9   :  { %v2601_v8 = vadd.f32 %v2585_v52, %v2584_v7  ;;  %v2574_v42 = vmul.f32 %v6552_v13, %v6552_v13  ;;  %v2588_v53 = vmul.f32 %v2572_v46, %v6435_v57  ;;  %v2580_v20 = vmul.f32 %v2564_v25, %v6435_v57 }
 0x2aa   :  { %v2594_v55 = vadd.f32 %v2593_v14, %v2579_v29  ;;  %v2575_v37 = vmul.f32 %v6563_v61, %v6563_v61  ;;  %v2589_v33 = vmul.f32 %v2573_v19, %v6463_v54  ;;  %v2567_v39 = vmul.f32 %v6582_v40, %v6582_v40 }
 0x2ab   :  { %v2602_v34 = vadd.f32 %v2601_v8, %v2586_v47  ;;  %v2590_v51 = vmul.f32 %v2574_v42, %v6470_v11  ;;  %v2582_v0 = vmul.f32 %v2566_v21, %v6470_v11  ;;  %v5483_v4 = vmov 0  }
 0x2ac   :  { %v2595_v49 = vadd.f32 %v2594_v55, %v2580_v20  ;;  %v2591_v28 = vmul.f32 %v2575_v37, %v6477_v35  ;;  %v2583_v31 = vmul.f32 %v2567_v39, %v6477_v35  ;;  %5147 = vset.pattern.permute.xlu0 %v5483_v4  ;;  %5146 = vset.pattern.permute.xlu1 %v5483_v4 }
 0x2ad   :  { %v2603_v62 = vadd.f32 %v2602_v34, %v2587_v56  ;;  %2668 = vperm.xlu1 %5146, %v2664_v23   ;;  %5145 = vset.pattern.permute.xlu2 %v5483_v4  ;;  %v2613_v34 = vld [vmem:[%s7613_s3 + $0x8] sm:$0xff] }
 0x2ae   :  { %v2596_v5 = vadd.f32 %v2595_v49, %v2581_v16 }
 0x2af   :  { %v2604_v22 = vadd.f32 %v2603_v62, %v2588_v53 }
 0x2b0   :  { %v2597_v45 = vadd.f32 %v2596_v5, %v2582_v0 }
 0x2b1   :  { %v2605_v59 = vadd.f32 %v2604_v22, %v2589_v33  ;;  %v2612_v33 = vld [vmem:[%s7613_s3] sm:$0xff]  ;;  %s5484_s3 = smov 127  }
 0x2b2   :  { %v2598_v9 = vadd.f32 %v2597_v45, %v2583_v31 }
 0x2b3   :  { %v2606_v15 = vadd.f32 %v2605_v59, %v2590_v51 }
 0x2b5   :  { %v2607_v27 = vadd.f32 %v2606_v15, %v2591_v28 }
 0x2b7   :  { %2608 = vadd.xlane.f32.xlu2 %v2607_v27 }
 0x2bf   :  { %2599 = vadd.xlane.f32.xlu2 %v2598_v9 }
 0x2d7   :  { %2673 = vperm.xlu2 %5145, %v2665_v30  }
 0x31f   :  { %v2669_v59 = vpop.permute.xlu1 %2668 }
 0x32a   :  { %v2609_v12 = vpop.xlane.xlu2 %2608 }
 0x32b   :  { %v2611_v2 = vmul.f32 0.001953125, %v2609_v12 }
 0x32d   :  { %v2615_v3 = vadd.f32 1e-05, %v2611_v2 }
 0x32f   :  { %5468 = vrsqrt.f32 %v2615_v3  ;;  %vm2632_vm11 = vweird.f32 %v2615_v3 }
 0x332   :  { %v2600_v7 = vpop.xlane.xlu2 %2599 }
 0x333   :  { %v2610_v52 = vmul.f32 0.001953125, %v2600_v7 }
 0x335   :  { %v5469_v46 = vpop.eup %5468  ;;  %v2614_v47 = vadd.f32 1e-05, %v2610_v52 }
 0x336   :  { %v2627_v8 = vmul.f32 %v5469_v46, %v2615_v3  ;;  %vm2633_vm10 = vweird.f32 %v5469_v46 }
 0x337   :  { %5470 = vrsqrt.f32 %v2614_v47  ;;  %vm2634_vm12 = vmor %vm2632_vm11, %vm2633_vm10  ;;  %vm2622_vm14 = vweird.f32 %v2614_v47  ;;  %vm4441_vm10 = vcmask 703488  }
 0x338   :  { %v2628_v14 = vmul.f32 %v5469_v46, %v2627_v8 }
 0x33a   :  { %v2629_v25 = vmul.f32 0.5, %v2628_v14 }
 0x33c   :  { %v2630_v29 = vsub.f32 1.5, %v2629_v25 }
 0x33d   :  { %v5471_v19 = vpop.eup %5470 }
 0x33e   :  { %v2617_v56 = vmul.f32 %v5471_v19, %v2614_v47  ;;  %v2631_v42 = vmul.f32 %v5469_v46, %v2630_v29  ;;  %vm2623_vm13 = vweird.f32 %v5471_v19 }
 0x33f   :  { %vm2624_vm15 = vmor %vm2622_vm14, %vm2623_vm13 }
 0x340   :  { %v2618_v53 = vmul.f32 %v5471_v19, %v2617_v56  ;;  %v2635_v62 = vsel %vm2634_vm12, %v5469_v46, %v2631_v42 }
 0x341   :  { %v2637_v55 = vmul.f32 %v2635_v62, %v2613_v34 }
 0x342   :  { %v2619_v43 = vmul.f32 0.5, %v2618_v53 }
 0x343   :  { %2645 = vperm.xlu0 %5147, %v2637_v55  }
 0x344   :  { %v2620_v37 = vsub.f32 1.5, %v2619_v43 }
 0x346   :  { %v2621_v22 = vmul.f32 %v5471_v19, %v2620_v37 }
 0x348   :  { %v2625_v20 = vsel %vm2624_vm15, %v5471_v19, %v2621_v22 }
 0x349   :  { %v2636_v51 = vmul.f32 %v2625_v20, %v2612_v33 }
 0x34b   :  { %2640 = vperm.xlu1 %5146, %v2636_v51  }
 0x3b5   :  { %v6611_v31 = vpop.permute.xlu0 %2645 }
 0x3b6   :  { %v2658_v53 = vmul.f32 %v6611_v31, %v6528_v60  ;;  %v2659_v55 = vmul.f32 %v6611_v31, %v6530_v18 }
 0x3bd   :  { %v2641_v49 = vpop.permute.xlu1 %2640 }
 0x3be   :  { %v2649_v28 = vmul.f32 %v2641_v49, %v6505_v38  ;;  %v2650_v15 = vmul.f32 %v2641_v49, %v6512_v17  ;;  %v2651_v21 = vmul.f32 %v2641_v49, %v6517_v63  ;;  %v2648_v16 = vmul.f32 %v2641_v49, %v6502_v41 }
 0x3bf   :  { %v2652_v27 = vmul.f32 %v2641_v49, %v6541_v50  ;;  %v2654_v5 = vmul.f32 %v2641_v49, %v6572_v24  ;;  %v2655_v39 = vmul.f32 %v2641_v49, %v6582_v40  ;;  %v2663_v41 = vmul.f32 %v6611_v31, %v6563_v61  ;;  %v6621_v40 = vpop.permute.xlu2 %2673 }
 0x3c0   :  { %v2678_v0 = vadd.f32 %v2669_v59, %v2650_v15  ;;  %v2679_v45 = vadd.f32 %v2669_v59, %v2651_v21  ;;  %v2677_v4 = vadd.f32 %v2669_v59, %v2649_v28  ;;  %v2676_v2 = vadd.f32 %v2669_v59, %v2648_v16 }
 0x3c1   :  { %v2682_v9 = vadd.f32 %v2669_v59, %v2654_v5  ;;  %v2683_v23 = vadd.f32 %v2669_v59, %v2655_v39  ;;  %v2680_v38 = vadd.f32 %v2669_v59, %v2652_v27  ;;  %v2653_v61 = vmul.f32 %v2641_v49, %v6558_v6 }
 0x3c2   :  { %v2694_v12 = vmax.f32 %v2678_v0, 0.0  ;;  %v2695_v17 = vmax.f32 %v2679_v45, 0.0  ;;  %v2693_v52 = vmax.f32 %v2677_v4, 0.0  ;;  %v2692_v8 = vmax.f32 %v2676_v2, 0.0 }
 0x3c3   :  { %v2698_v63 = vmax.f32 %v2682_v9, 0.0  ;;  %v2699_v30 = vmax.f32 %v2683_v23, 0.0  ;;  %v2696_v46 = vmax.f32 %v2680_v38, 0.0  ;;  %v2691_v29 = vadd.f32 %v6621_v40, %v2663_v41 }
 0x3c4   :  { %v6616_v50 = vmul.f32 %v2694_v12, %v6398_v10  ;;  %v6619_v24 = vmul.f32 %v2695_v17, %v6423_v44  ;;  %v6647_v6 = vmul.f32 %v2693_v52, %v6387_v36  ;;  %v2681_v56 = vadd.f32 %v2669_v59, %v2653_v61 }
 0x3c5   :  { %v6624_v3 = vmul.f32 %v2698_v63, %v6470_v11  ;;  %v2715_v7 = vmul.f32 %v2699_v30, %v6477_v35  ;;  %v6650_v19 = vmul.f32 %v2696_v46, %v6435_v57  ;;  %v6653_v34 = vmul.f32 %v2692_v8, %v6379_v1 }
 0x3c6   :  { %v6629_v47 = vpack.i.bf16 %v6619_v24, %v6616_v50  ;;  %v2707_v42 = vmax.f32 %v2691_v29, 0.0  ;;  %v2697_v43 = vmax.f32 %v2681_v56, 0.0  ;;  %v6665_v37 = vpack.i.bf16 %v6616_v50, %v6647_v6 }
 0x3c7   :  { %v6633_v14 = vpack.i.bf16 %v2715_v7, %v6624_v3  ;;  %v6637_v25 = vpack.i.bf16 %v6624_v3, %v6619_v24  ;;  %v6659_v62 = vpack.i.bf16 %v6650_v19, %v6647_v6  ;;  %v5163_v33 = vpack.i.bf16 %v6647_v6, %v6653_v34 }
 0x3c8   :  { %5149 = vrot.lane.b32.xlu1 %v6629_v47, %s5484_s3  ;;  %v6670_v22 = vmul.f32 %v2707_v42, %v6477_v35  ;;  %v2686_v18 = vadd.f32 %v6621_v40, %v2658_v53  ;;  %v2687_v20 = vadd.f32 %v6621_v40, %v2659_v55  ;;  %v6683_v51 = vmul.f32 %v2697_v43, %v6463_v54 }
 0x3c9   :  { %5159 = vrot.lane.b32.xlu0 %v6633_v14, %s5484_s3  ;;  %5174 = vrot.lane.b32.xlu2 %v6637_v25, %s5485_s25  ;;  %v2656_v35 = vmul.f32 %v6611_v31, %v6522_v32  ;;  %v2657_v59 = vmul.f32 %v6611_v31, %v6525_v58  ;;  %v6690_v15 = vpack.i.bf16 %v2715_v7, %v6650_v19 }
 0x3ca   :  { %v6678_v60 = vpack.i.bf16 %v2715_v7, %v6670_v22  ;;  %v2702_v49 = vmax.f32 %v2686_v18, 0.0  ;;  %v2703_v28 = vmax.f32 %v2687_v20, 0.0  ;;  %v5168_v21 = vpack.i.bf16 %v6683_v51, %v6650_v19 }
 0x3cb   :  { %v2684_v32 = vadd.f32 %v6621_v40, %v2656_v35  ;;  %v2685_v58 = vadd.f32 %v6621_v40, %v2657_v59  ;;  %v6709_v0 = vpack.i.bf16 %v6624_v3, %v6683_v51  ;;  %v5233_v4 = vpack.i.bf16 %v6683_v51, %v6616_v50 }
 0x3cc   :  { %v6702_v16 = vmul.f32 %v2702_v49, %v6398_v10  ;;  %v6705_v27 = vmul.f32 %v2703_v28, %v6423_v44  ;;  %v2660_v10 = vmul.f32 %v6611_v31, %v6532_v26  ;;  %v2662_v26 = vmul.f32 %v6611_v31, %v6552_v13  ;;  %v6879_v28 = vld [vmem:[%s7614_s5 + $0x4] sm:$0xf] }
 0x3cd   :  { %v2700_v5 = vmax.f32 %v2684_v32, 0.0  ;;  %v2701_v39 = vmax.f32 %v2685_v58, 0.0  ;;  %v2661_v12 = vmul.f32 %v6611_v31, %v6546_v48  ;;  %v5228_v31 = vpack.i.bf16 %v6650_v19, %v6619_v24 }
 0x3ce   :  { %v6713_v45 = vpack.i.bf16 %v6705_v27, %v6702_v16  ;;  %v2688_v23 = vadd.f32 %v6621_v40, %v2660_v10  ;;  %v6796_v52 = vpack.i.bf16 %v6619_v24, %v6705_v27 }
 0x3cf   :  { %v6724_v44 = vmul.f32 %v2700_v5, %v6379_v1  ;;  %v6727_v9 = vmul.f32 %v2701_v39, %v6387_v36  ;;  %v2690_v36 = vadd.f32 %v6621_v40, %v2662_v26  ;;  %v2689_v13 = vadd.f32 %v6621_v40, %v2661_v12 }
 0x3d0   :  { %5154 = vrot.lane.b32.xlu1 %v6659_v62, %s5484_s3  ;;  %v2704_v1 = vmax.f32 %v2688_v23, 0.0 }
 0x3d1   :  { %5179 = vrot.lane.b32.xlu2 %v6665_v37, %s5486_s26  ;;  %5164 = vrot.lane.b32.xlu0 %v5163_v33, %s5485_s25  ;;  %v6736_v38 = vpack.i.bf16 %v6727_v9, %v6724_v44  ;;  %v2706_v2 = vmax.f32 %v2690_v36, 0.0  ;;  %v2705_v63 = vmax.f32 %v2689_v13, 0.0  ;;  %v6812_v61 = vpack.i.bf16 %v6653_v34, %v6724_v44 }
 0x3d2   :  { %v6748_v17 = vmul.f32 %v2704_v1, %v6435_v57 }
 0x3d3   :  { %v6761_v57 = vmul.f32 %v2706_v2, %v6470_v11  ;;  %v6764_v30 = vmul.f32 %v2705_v63, %v6463_v54  ;;  %v6781_v54 = vpack.i.bf16 %v6616_v50, %v6702_v16  ;;  %v6785_v11 = vpack.i.bf16 %v6702_v16, %v6727_v9 }
 0x3d4   :  { %v6752_v48 = vpack.i.bf16 %v6653_v34, %v6748_v17  ;;  %v6826_v29 = vpack.i.bf16 %v6670_v22, %v6748_v17 }
 0x3d5   :  { %v6768_v41 = vpack.i.bf16 %v6683_v51, %v6764_v30  ;;  %v6772_v40 = vpack.i.bf16 %v6670_v22, %v6761_v57  ;;  %v5273_v7 = vpack.i.bf16 %v6761_v57, %v6705_v27  ;;  %v5268_v46 = vpack.i.bf16 %v6764_v30, %v6748_v17 }
 0x3d6   :  { %v6816_v8 = vpack.i.bf16 %v6761_v57, %v6764_v30  ;;  %v5358_v56 = vpack.i.bf16 %v6764_v30, %v6702_v16  ;;  %v5368_v53 = vpack.i.bf16 %v6624_v3, %v6761_v57 }
 0x3d8   :  { %5194 = vrot.lane.b32.xlu1 %v6629_v47, %s5487_s27 }
 0x3d9   :  { %5189 = vrot.lane.b32.xlu2 %v6690_v15, %s5486_s26  ;;  %5169 = vrot.lane.b32.xlu0 %v5168_v21, %s5485_s25 }
 0x3e0   :  { %5199 = vrot.lane.b32.xlu1 %v6659_v62, %s5487_s27 }
 0x3e1   :  { %5184 = vrot.lane.b32.xlu0 %v6709_v0, %s5486_s26  ;;  %5209 = vrot.lane.b32.xlu2 %v6713_v45, %s5484_s3 }
 0x3e8   :  { %5234 = vrot.lane.b32.xlu1 %v5233_v4, %s5488_s28 }
 0x3e9   :  { %5204 = vrot.lane.b32.xlu0 %v6633_v14, %s5487_s27  ;;  %5214 = vrot.lane.b32.xlu2 %v6736_v38, %s5484_s3 }
 0x3f0   :  { %5239 = vrot.lane.b32.xlu1 %v5163_v33, %s5489_s29 }
 0x3f1   :  { %5219 = vrot.lane.b32.xlu0 %v6752_v48, %s5484_s3  ;;  %5229 = vrot.lane.b32.xlu2 %v5228_v31, %s5488_s28 }
 0x3f8   :  { %5254 = vrot.lane.b32.xlu1 %v6768_v41, %s5484_s3 }
 0x3f9   :  { %5224 = vrot.lane.b32.xlu0 %v5163_v33, %s5488_s28  ;;  %5244 = vrot.lane.b32.xlu2 %v6772_v40, %s5484_s3 }
 0x400   :  { %5264 = vrot.lane.b32.xlu1 %v6781_v54, %s5485_s25 }
 0x401   :  { %5279 = vrot.lane.b32.xlu0 %v6785_v11, %s5486_s26  ;;  %5249 = vrot.lane.b32.xlu2 %v5168_v21, %s5489_s29 }
 0x408   :  { %5274 = vrot.lane.b32.xlu1 %v5273_v7, %s5485_s25 }
 0x409   :  { %5289 = vrot.lane.b32.xlu0 %v6796_v52, %s5486_s26  ;;  %5259 = vrot.lane.b32.xlu2 %v6736_v38, %s5485_s25 }
 0x410   :  { %5284 = vrot.lane.b32.xlu1 %v6678_v60, %s5485_s25 }
 0x411   :  { %5314 = vrot.lane.b32.xlu0 %v6713_v45, %s5487_s27  ;;  %5269 = vrot.lane.b32.xlu2 %v5268_v46, %s5485_s25 }
 0x418   :  { %5294 = vrot.lane.b32.xlu1 %v6812_v61, %s5486_s26 }
 0x419   :  { %5324 = vrot.lane.b32.xlu0 %v6752_v48, %s5487_s27  ;;  %5299 = vrot.lane.b32.xlu2 %v6816_v8, %s5486_s26 }
 0x420   :  { %5304 = vrot.lane.b32.xlu1 %v6826_v29, %s5486_s26 }
 0x421   :  { %5359 = vrot.lane.b32.xlu0 %v5358_v56, %s5488_s28  ;;  %5319 = vrot.lane.b32.xlu2 %v6736_v38, %s5487_s27 }
 0x423   :  { %v6835_v42 = vpop.permute.xlu2 %5174 }
 0x428   :  { %5309 = vrot.lane.b32.xlu1 %v6637_v25, %s5489_s29  ;;  %v5343_v25 = vpack.i.bf16 %v6748_v17, %v6705_v27 }
 0x429   :  { %5369 = vrot.lane.b32.xlu0 %v5368_v53, %s5488_s28  ;;  %5329 = vrot.lane.b32.xlu2 %v6772_v40, %s5487_s27 }
 0x42b   :  { %v6844_v55 = vpop.permute.xlu2 %5179 }
 0x430   :  { %5334 = vrot.lane.b32.xlu1 %v6768_v41, %s5487_s27 }
 0x431   :  { %5379 = vrot.lane.b32.xlu0 %v6678_v60, %s5488_s28  ;;  %5339 = vrot.lane.b32.xlu2 %v6736_v38, %s5488_s28 }
 0x433   :  { %v6852_v43 = vpop.permute.xlu2 %5189 }
 0x438   :  { %5344 = vrot.lane.b32.xlu1 %v5343_v25, %s5488_s28 }
 0x439   :  { %5394 = vrot.lane.b32.xlu0 %v6629_v47, %s5490_s30  ;;  %5354 = vrot.lane.b32.xlu2 %v6709_v0, %s5491_s9 }
 0x43a   :  { %v6861_v33 = vpop.permute.xlu1 %5149 }
 0x43b   :  { %v6863_v22 = vpop.permute.xlu0 %5159  ;;  %v6865_v18 = vpop.permute.xlu2 %5209  ;;  %v5152_v59 = vunpack.i.h.bf16 %v6861_v33  ;;  %v5151_v49 = vunpack.i.l.bf16 %v6861_v33 }
 0x43c   :  { %v5212_v20 = vunpack.i.h.bf16 %v6865_v18  ;;  %v5211_v35 = vunpack.i.l.bf16 %v6865_v18  ;;  %v5162_v63 = vunpack.i.h.bf16 %v6863_v22 }
 0x43d   :  { %v2830_v21 = vsel %vm2827_vm0, %v5151_v49, %v5152_v59 }
 0x43e   :  { %v2837_v47 = vsel %vm2827_vm0, %v5211_v35, %v5212_v20 }
 0x43f   :  { %2914 = vmatpush.msra.mxu2 %v2837_v47 }
 0x440   :  { %5349 = vrot.lane.b32.xlu1 %v6665_v37, %s5491_s9 }
 0x441   :  { %5399 = vrot.lane.b32.xlu0 %v5273_v7, %s5489_s29  ;;  %5364 = vrot.lane.b32.xlu2 %v6736_v38, %s5489_s29 }
 0x442   :  { %2915 = vmatpush.msra.mxu2 %v2830_v21  ;;  %v6887_v32 = vpop.permute.xlu1 %5154 }
 0x443   :  { %v6889_v58 = vpop.permute.xlu0 %5164  ;;  %v5215_v37 = vpop.permute.xlu2 %5214  ;;  %5066 = vmatmul.msk.f32.vlgmr.msra.gmra.mxu2 %vm2856_vm2, %v6879_v28  ;;  %v5156_v0 = vunpack.i.l.bf16 %v6887_v32 }
 0x444   :  { %v5217_v5 = vunpack.i.h.bf16 %v5215_v37  ;;  %v5216_v39 = vunpack.i.l.bf16 %v5215_v37 }
 0x445   :  { %v2829_v4 = vsel %vm2827_vm0, %v5156_v0, %v5151_v49 }
 0x446   :  { %v2835_v10 = vsel %vm2827_vm0, %v5216_v39, %v5217_v5  ;;  %v2836_v23 = vsel %vm2827_vm0, %v5217_v5, %v5211_v35  ;;  %v5166_v5 = vunpack.i.l.bf16 %v6889_v58 }
 0x447   :  { %2874 = vmatpush.msra.mxu0 %v2835_v10  ;;  %2894 = vmatpush.msra.mxu1 %v2836_v23 }
 0x448   :  { %5384 = vrot.lane.b32.xlu1 %v5268_v46, %s5489_s29 }
 0x449   :  { %5409 = vrot.lane.b32.xlu0 %v6678_v60, %s5489_s29  ;;  %5374 = vrot.lane.b32.xlu2 %v6781_v54, %s5489_s29 }
 0x44a   :  { %2895 = vmatpush.msra.mxu1 %v2829_v4  ;;  %v6902_v26 = vpop.permute.xlu1 %5194 }
 0x44b   :  { %v6904_v12 = vpop.permute.xlu0 %5169  ;;  %v6906_v1 = vpop.permute.xlu2 %5229  ;;  %5065 = vmatmul.msk.f32.vlgmr.msra.gmra.mxu1 %vm2856_vm2, %v6879_v28 }
 0x44c   :  { %v5232_v46 = vunpack.i.h.bf16 %v6906_v1 }
 0x450   :  { %5389 = vrot.lane.b32.xlu1 %v6690_v15, %s5491_s9  ;;  %v5161_v15 = vunpack.i.l.bf16 %v6863_v22 }
 0x451   :  { %5419 = vrot.lane.b32.xlu0 %v6812_v61, %s5491_s9  ;;  %5404 = vrot.lane.b32.xlu2 %v6785_v11, %s5491_s9  ;;  %v5231_v61 = vunpack.i.l.bf16 %v6906_v1 }
 0x452   :  { %v6916_v60 = vpop.permute.xlu1 %5199  ;;  %v2834_v11 = vsel %vm2827_vm0, %v5161_v15, %v5162_v63  ;;  %v5171_v63 = vunpack.i.l.bf16 %v6904_v12 }
 0x453   :  { %v6918_v36 = vpop.permute.xlu0 %5184  ;;  %v6920_v13 = vpop.permute.xlu2 %5244 }
 0x454   :  { %v5247_v2 = vunpack.i.h.bf16 %v6920_v13  ;;  %v5246_v31 = vunpack.i.l.bf16 %v6920_v13 }
 0x456   :  { %v2841_v54 = vsel %vm2827_vm0, %v5246_v31, %v5247_v2  ;;  %v5172_v2 = vunpack.i.h.bf16 %v6904_v12 }
 0x457   :  { %2994 = vmatpush.msrb.mxu2 %v2841_v54 }
 0x458   :  { %5424 = vrot.lane.b32.xlu1 %v6816_v8, %s5491_s9 }
 0x459   :  { %5429 = vrot.lane.b32.xlu0 %v6826_v29, %s5491_s9  ;;  %5414 = vrot.lane.b32.xlu2 %v6796_v52, %s5491_s9 }
 0x45a   :  { %2995 = vmatpush.msrb.mxu2 %v2834_v11  ;;  %v6938_v7 = vpop.permute.xlu1 %5234 }
 0x45b   :  { %v5237_v8 = vunpack.i.h.bf16 %v6938_v7  ;;  %v5236_v29 = vunpack.i.l.bf16 %v6938_v7  ;;  %v6945_v56 = vpop.permute.xlu0 %5204  ;;  %v6947_v52 = vpop.permute.xlu2 %5249  ;;  %5070 = vmatmul.msk.f32.vlgmr.msrb.gmra.mxu2 %vm2856_vm2, %v6879_v28 }
 0x45c   :  { %3077 = vmatpush.msra.mxu2 %v6705_v27 }
 0x45d   :  { %v6957_v27 = vsel %vm3808_vm3, %v5236_v29, %v5231_v61  ;;  %v6964_v53 = vsel %vm3808_vm3, %v5232_v46, %v5237_v8 }
 0x45e   :  { %3078 = vmatpush.msra.mxu2 %v6619_v24  ;;  %v6975_v24 = vld [vmem:[%s7614_s5] sm:$0xf] }
 0x460   :  { %5444 = vrot.lane.b32.xlu1 %v6736_v38, %s5490_s30 }
 0x461   :  { %5434 = vrot.lane.b32.xlu0 %v6659_v62, %s5490_s30  ;;  %5439 = vrot.lane.b32.xlu2 %v6713_v45, %s5490_s30  ;;  %v5157_v62 = vunpack.i.h.bf16 %v6887_v32  ;;  %v5167_v45 = vunpack.i.h.bf16 %v6889_v58  ;;  %v7010_v32 = vld [vmem:[%s7614_s5 + $0x8] sm:$0xf] }
 0x462   :  { %v6977_v25 = vpop.permute.xlu1 %5239 }
 0x463   :  { %v5220_v35 = vpop.permute.xlu0 %5219  ;;  %v6979_v49 = vpop.permute.xlu2 %5259  ;;  %5074 = vmatmul.msk.f32.vlgmr.msra.gmra.mxu2 %vm2856_vm2, %v6975_v24  ;;  %v2831_v18 = vsel %vm2827_vm0, %v5152_v59, %v5157_v62 }
 0x464   :  { %v5222_v47 = vunpack.i.h.bf16 %v5220_v35  ;;  %v5221_v21 = vunpack.i.l.bf16 %v5220_v35  ;;  %v5262_v38 = vunpack.i.h.bf16 %v6979_v49  ;;  %v5261_v37 = vunpack.i.l.bf16 %v6979_v49 }
 0x466   :  { %v2828_v39 = vsel %vm2827_vm0, %v5222_v47, %v5156_v0  ;;  %v2838_v10 = vsel %vm2827_vm0, %v5212_v20, %v5221_v21  ;;  %v3183_v23 = vsel %vm3175_vm4, %v5261_v37, %v5262_v38  ;;  %v3176_v20 = vsel %vm3175_vm4, %v5166_v5, %v5167_v45 }
 0x467   :  { %2875 = vmatpush.msra.mxu0 %v2828_v39  ;;  %2934 = vmatpush.msra.mxu3 %v2838_v10  ;;  %v5187_v5 = vunpack.i.h.bf16 %v6918_v36 }
 0x468   :  { %3221 = vmatpush.msrb.mxu2 %v3183_v23  ;;  %5454 = vrot.lane.b32.xlu1 %v6772_v40, %s5490_s30 }
 0x469   :  { %5464 = vrot.lane.b32.xlu0 %v6768_v41, %s5490_s30  ;;  %5449 = vrot.lane.b32.xlu2 %v6752_v48, %s5490_s30 }
 0x46a   :  { %2935 = vmatpush.msra.mxu3 %v2831_v18  ;;  %3222 = vmatpush.msrb.mxu2 %v3176_v20  ;;  %v5255_v40 = vpop.permute.xlu1 %5254 }
 0x46b   :  { %5064 = vmatmul.msk.f32.vlgmr.msra.gmra.mxu0 %vm2856_vm2, %v6879_v28  ;;  %5067 = vmatmul.msk.f32.vlgmr.msra.gmra.mxu3 %vm2856_vm2, %v6879_v28  ;;  %v5257_v48 = vunpack.i.h.bf16 %v5255_v40  ;;  %v5256_v41 = vunpack.i.l.bf16 %v5255_v40  ;;  %v7016_v33 = vpop.permute.xlu0 %5224  ;;  %v7018_v59 = vpop.permute.xlu2 %5269 }
 0x46c   :  { %3017 = vmatpush.msrb.mxu3 %v6724_v44  ;;  %v5272_v0 = vunpack.i.h.bf16 %v7018_v59  ;;  %v5271_v4 = vunpack.i.l.bf16 %v7018_v59  ;;  %5078 = vmatmul.msk.f32.vlgmr.msrb.gmra.mxu2 %vm2856_vm2, %v7010_v32 }
 0x46d   :  { %v2839_v54 = vsel %vm2827_vm0, %v5221_v21, %v5256_v41  ;;  %v2840_v11 = vsel %vm2827_vm0, %v5256_v41, %v5246_v31  ;;  %v2832_v35 = vsel %vm2827_vm0, %v5157_v62, %v5257_v48  ;;  %v5182_v62 = vunpack.i.h.bf16 %v6844_v55 }
 0x46e   :  { %3018 = vmatpush.msrb.mxu3 %v6653_v34  ;;  %2954 = vmatpush.msrb.mxu0 %v2839_v54  ;;  %v3187_v44 = vsel %vm3175_vm4, %v5271_v4, %v5272_v0  ;;  %v2833_v34 = vsel %vm2827_vm0, %v5257_v48, %v5161_v15  ;;  %v5177_v48 = vunpack.i.h.bf16 %v6835_v42 }
 0x46f   :  { %2974 = vmatpush.msrb.mxu1 %v2840_v11  ;;  %3301 = vmatpush.msra.mxu2 %v3187_v44  ;;  %v5197_v44 = vunpack.i.h.bf16 %v6902_v26 }
 0x470   :  { %3097 = vmatpush.msra.mxu3 %v6748_v17  ;;  %2955 = vmatpush.msrb.mxu0 %v2832_v35  ;;  %v3180_v17 = vsel %vm3175_vm4, %v5171_v63, %v5172_v2  ;;  %v3181_v54 = vsel %vm3175_vm4, %v5172_v2, %v5177_v48  ;;  %v5196_v2 = vunpack.i.l.bf16 %v6902_v26 }
 0x471   :  { %5459 = vrot.lane.b32.xlu2 %v6633_v14, %s5490_s30  ;;  %2975 = vmatpush.msrb.mxu1 %v2833_v34 }
 0x472   :  { %3098 = vmatpush.msra.mxu3 %v6650_v19  ;;  %3302 = vmatpush.msra.mxu2 %v3180_v17  ;;  %v5265_v13 = vpop.permute.xlu1 %5264  ;;  %v7053_v19 = vld [vmem:[%s7611_s1] sm:$0xff] }
 0x473   :  { %5068 = vmatmul.msk.f32.vlgmr.msrb.gmra.mxu0 %vm2856_vm2, %v6879_v28  ;;  %5069 = vmatmul.msk.f32.vlgmr.msrb.gmra.mxu1 %vm2856_vm2, %v6879_v28  ;;  %v5266_v14 = vunpack.i.l.bf16 %v5265_v13  ;;  %v7059_v22 = vpop.permute.xlu0 %5279  ;;  %v7061_v31 = vpop.permute.xlu2 %5299  ;;  %v5267_v21 = vunpack.i.h.bf16 %v5265_v13  ;;  %v4623_v37 = vperm.slane %v7053_v19, 1  ;;  %v4626_v40 = vperm.slane %v7053_v19, 4 }
 0x474   :  { %5071 = vmatmul.msk.f32.vlgmr.msrb.gmra.mxu3 %vm2856_vm2, %v6975_v24  ;;  %3037 = vmatpush.msra.mxu0 %v6727_v9  ;;  %v5282_v15 = vunpack.i.h.bf16 %v7059_v22  ;;  %v5281_v47 = vunpack.i.l.bf16 %v7059_v22  ;;  %v5181_v9 = vunpack.i.l.bf16 %v6844_v55  ;;  %v5302_v49 = vunpack.i.h.bf16 %v7061_v31 }
 0x475   :  { %3057 = vmatpush.msra.mxu1 %v6702_v16  ;;  %v3184_v28 = vsel %vm3175_vm4, %v5262_v38, %v5266_v14  ;;  %5082 = vmatmul.msk.f32.vlgmr.msra.gmra.mxu2 %vm2856_vm2, %v7010_v32  ;;  %v5301_v38 = vunpack.i.l.bf16 %v7061_v31 }
 0x476   :  { %3038 = vmatpush.msra.mxu0 %v6647_v6  ;;  %3241 = vmatpush.msrb.mxu3 %v3184_v28  ;;  %v3395_v16 = vsel %vm3386_vm5, %v5281_v47, %v5282_v15  ;;  %v3177_v6 = vsel %vm3175_vm4, %v5167_v45, %v5267_v21 }
 0x477   :  { %3058 = vmatpush.msra.mxu1 %v6616_v50  ;;  %3452 = vmatpush.msrb.mxu2 %v3395_v16  ;;  %v5186_v50 = vunpack.i.l.bf16 %v6918_v36  ;;  %v3399_v10 = vsel %vm3386_vm5, %v5301_v38, %v5302_v49 }
 0x478   :  { %3117 = vmatpush.msrb.mxu0 %v6764_v30  ;;  %3242 = vmatpush.msrb.mxu3 %v3177_v6 }
 0x479   :  { %3137 = vmatpush.msrb.mxu1 %v6761_v57  ;;  %4632 = vrot.lane.b32.xlu2 %v4623_v37, %s5487_s27  ;;  %v3388_v57 = vsel %vm3386_vm5, %v5181_v9, %v5182_v62  ;;  %v3392_v41 = vsel %vm3386_vm5, %v5186_v50, %v5187_v5  ;;  %v4629_v37 = vperm.slane %v7053_v19, 7 }
 0x47a   :  { %3118 = vmatpush.msrb.mxu0 %v6683_v51  ;;  %v5275_v51 = vpop.permute.xlu1 %5274  ;;  %3453 = vmatpush.msrb.mxu2 %v3388_v57 }
 0x47b   :  { %3138 = vmatpush.msrb.mxu1 %v6624_v3  ;;  %5072 = vmatmul.msk.f32.vlgmr.msra.gmra.mxu0 %vm2856_vm2, %v6975_v24  ;;  %v5277_v30 = vunpack.i.h.bf16 %v5275_v51  ;;  %v5276_v58 = vunpack.i.l.bf16 %v5275_v51  ;;  %v7103_v45 = vpop.permute.xlu0 %5289  ;;  %v7105_v39 = vpop.permute.xlu2 %5319  ;;  %v5176_v3 = vunpack.i.l.bf16 %v6835_v42  ;;  %v7138_v42 = vld [vmem:[%s7614_s5 + $0xc] sm:$0xf]  ;;  %v5207_v51 = vunpack.i.h.bf16 %v6945_v56 }
 0x47c   :  { %5073 = vmatmul.msk.f32.vlgmr.msra.gmra.mxu1 %vm2856_vm2, %v6975_v24  ;;  %5075 = vmatmul.msk.f32.vlgmr.msra.gmra.mxu3 %vm2856_vm2, %v6975_v24  ;;  %v5292_v11 = vunpack.i.h.bf16 %v7103_v45 }
 0x47d   :  { %3532 = vmatpush.msra.mxu2 %v3399_v10  ;;  %v3185_v23 = vsel %vm3175_vm4, %v5266_v14, %v5276_v58  ;;  %v3186_v18 = vsel %vm3175_vm4, %v5276_v58, %v5271_v4  ;;  %v3188_v20 = vsel %vm3175_vm4, %v5272_v0, %v5277_v30  ;;  %v3178_v4 = vsel %vm3175_vm4, %v5267_v21, %v5176_v3 }
 0x47e   :  { %3261 = vmatpush.msra.mxu0 %v3185_v23  ;;  %3281 = vmatpush.msra.mxu1 %v3186_v18  ;;  %v3179_v59 = vsel %vm3175_vm4, %v5176_v3, %v5171_v63  ;;  %v5291_v0 = vunpack.i.l.bf16 %v7103_v45 }
 0x47f   :  { %3533 = vmatpush.msra.mxu2 %v3392_v41  ;;  %3321 = vmatpush.msra.mxu3 %v3188_v20  ;;  %v4745_v41 = vld [vmem:[%s7615_s7] sm:$0xf] }
 0x480   :  { %3262 = vmatpush.msra.mxu0 %v3178_v4  ;;  %3282 = vmatpush.msra.mxu1 %v3179_v59  ;;  %v3396_v13 = vsel %vm3386_vm5, %v5282_v15, %v5291_v0  ;;  %v3389_v15 = vsel %vm3386_vm5, %v5182_v62, %v5292_v11  ;;  %v3600_v62 = vsel %vm3597_vm6, %v5196_v2, %v5197_v44  ;;  %v7220_v59 = vld [vmem:[%s7614_s5 + $0x10] sm:$0xf] }
 0x481   :  { %4638 = vrot.lane.b32.xlu2 %v4626_v40, %s5487_s27  ;;  %3322 = vmatpush.msra.mxu3 %v3181_v54 }
 0x482   :  { %5086 = vmatmul.msk.f32.vlgmr.msrb.gmra.mxu2 %vm2856_vm2, %v7138_v42  ;;  %v5285_v63 = vpop.permute.xlu1 %5284 }
 0x483   :  { %5076 = vmatmul.msk.f32.vlgmr.msrb.gmra.mxu0 %vm2856_vm2, %v6975_v24  ;;  %v5287_v35 = vunpack.i.h.bf16 %v5285_v63  ;;  %v5286_v34 = vunpack.i.l.bf16 %v5285_v63  ;;  %v7151_v17 = vpop.permute.xlu0 %5314  ;;  %v7153_v12 = vpop.permute.xlu2 %5329 }
 0x484   :  { %5077 = vmatmul.msk.f32.vlgmr.msrb.gmra.mxu1 %vm2856_vm2, %v6975_v24  ;;  %5079 = vmatmul.msk.f32.vlgmr.msrb.gmra.mxu3 %vm2856_vm2, %v7010_v32  ;;  %v5317_v14 = vunpack.i.h.bf16 %v7151_v17  ;;  %v5316_v21 = vunpack.i.l.bf16 %v7151_v17  ;;  %v5332_v24 = vunpack.i.h.bf16 %v7153_v12  ;;  %v5331_v16 = vunpack.i.l.bf16 %v7153_v12  ;;  %v7318_v12 = vld [vmem:[%s7614_s5 + $0x14] sm:$0xf] }
 0x485   :  { %3472 = vmatpush.msrb.mxu3 %v3396_v13  ;;  %v3189_v28 = vsel %vm3175_vm4, %v5277_v30, %v5286_v34  ;;  %v3182_v57 = vsel %vm3175_vm4, %v5177_v48, %v5287_v35  ;;  %v5206_v30 = vunpack.i.l.bf16 %v6945_v56  ;;  %v5322_v35 = vunpack.i.h.bf16 %v7105_v39 }
 0x486   :  { %3341 = vmatpush.msrb.mxu0 %v3189_v28  ;;  %v3607_v6 = vsel %vm3597_vm6, %v5316_v21, %v5317_v14  ;;  %v3611_v58 = vsel %vm3597_vm6, %v5331_v16, %v5332_v24  ;;  %v5321_v34 = vunpack.i.l.bf16 %v7105_v39  ;;  %v5227_v17 = vunpack.i.h.bf16 %v7016_v33 }
 0x487   :  { %3473 = vmatpush.msrb.mxu3 %v3389_v15  ;;  %3683 = vmatpush.msrb.mxu2 %v3607_v6  ;;  %v3604_v40 = vsel %vm3597_vm6, %v5206_v30, %v5207_v51  ;;  %v5201_v15 = vunpack.i.l.bf16 %v6916_v60 }
 0x488   :  { %3342 = vmatpush.msrb.mxu0 %v3182_v57  ;;  %v3605_v31 = vsel %vm3597_vm6, %v5321_v34, %v5322_v35 }
 0x489   :  { %4644 = vrot.lane.b32.xlu2 %v4629_v37, %s5487_s27  ;;  %3684 = vmatpush.msrb.mxu2 %v3600_v62  ;;  %v5192_v37 = vunpack.i.h.bf16 %v6852_v43  ;;  %v3599_v57 = vsel %vm3597_vm6, %v5201_v15, %v5196_v2 }
 0x48a   :  { %5090 = vmatmul.msk.f32.vlgmr.msra.gmra.mxu2 %vm2856_vm2, %v7138_v42  ;;  %v5295_v3 = vpop.permute.xlu1 %5294 }
 0x48b   :  { %5080 = vmatmul.msk.f32.vlgmr.msra.gmra.mxu0 %vm2856_vm2, %v7010_v32  ;;  %3763 = vmatpush.msra.mxu2 %v3611_v58  ;;  %v7197_v10 = vpop.permute.xlu0 %5324  ;;  %v5297_v23 = vunpack.i.h.bf16 %v5295_v3  ;;  %v5296_v18 = vunpack.i.l.bf16 %v5295_v3  ;;  %v7199_v20 = vpop.permute.xlu2 %5339 }
 0x48c   :  { %5081 = vmatmul.msk.f32.vlgmr.msra.gmra.mxu1 %vm2856_vm2, %v7010_v32  ;;  %5083 = vmatmul.msk.f32.vlgmr.msra.gmra.mxu3 %vm2856_vm2, %v7010_v32  ;;  %v5341_v36 = vunpack.i.l.bf16 %v7199_v20 }
 0x48d   :  { %3764 = vmatpush.msra.mxu2 %v3604_v40  ;;  %v3394_v48 = vsel %vm3386_vm5, %v5296_v18, %v5281_v47  ;;  %v3387_v4 = vsel %vm3386_vm5, %v5297_v23, %v5181_v9  ;;  %v5191_v9 = vunpack.i.l.bf16 %v6852_v43  ;;  %v3393_v43 = vsel %vm3386_vm5, %v5187_v5, %v5192_v37 }
 0x48e   :  { %3432 = vmatpush.msrb.mxu1 %v3394_v48  ;;  %v3812_v37 = vsel %vm3808_vm3, %v5231_v61, %v5232_v46 }
 0x48f   :  { %v3390_v24 = vsel %vm3386_vm5, %v5292_v11, %v5191_v9  ;;  %v5342_v11 = vunpack.i.h.bf16 %v7199_v20 }
 0x490   :  { %3433 = vmatpush.msrb.mxu1 %v3387_v4 }
 0x491   :  { %4748 = vperm.xlu2 %5145, %v4745_v41  }
 0x492   :  { %v5305_v54 = vpop.permute.xlu1 %5304  ;;  %5094 = vmatmul.msk.f32.vlgmr.msrb.gmra.mxu2 %vm2856_vm2, %v7220_v59 }
 0x493   :  { %5084 = vmatmul.msk.f32.vlgmr.msrb.gmra.mxu0 %vm2856_vm2, %v7010_v32  ;;  %v7226_v22 = vpop.permute.xlu0 %5359  ;;  %v5307_v47 = vunpack.i.h.bf16 %v5305_v54  ;;  %v5306_v55 = vunpack.i.l.bf16 %v5305_v54  ;;  %v7228_v63 = vpop.permute.xlu2 %5354  ;;  %v5326_v32 = vunpack.i.l.bf16 %v7197_v10 }
 0x494   :  { %5085 = vmatmul.msk.f32.vlgmr.msrb.gmra.mxu1 %vm2856_vm2, %v7138_v42  ;;  %5087 = vmatmul.msk.f32.vlgmr.msrb.gmra.mxu3 %vm2856_vm2, %v7138_v42 }
 0x495   :  { %v3397_v13 = vsel %vm3386_vm5, %v5291_v0, %v5306_v55  ;;  %v3398_v28 = vsel %vm3386_vm5, %v5306_v55, %v5301_v38  ;;  %v3400_v39 = vsel %vm3386_vm5, %v5302_v49, %v5307_v47  ;;  %v3391_v0 = vsel %vm3386_vm5, %v5191_v9, %v5186_v50 }
 0x496   :  { %3492 = vmatpush.msra.mxu0 %v3397_v13  ;;  %3512 = vmatpush.msra.mxu1 %v3398_v28  ;;  %v5327_v38 = vunpack.i.h.bf16 %v7197_v10  ;;  %v5202_v49 = vunpack.i.h.bf16 %v6916_v60  ;;  %v3606_v50 = vsel %vm3597_vm6, %v5322_v35, %v5316_v21  ;;  %v3608_v45 = vsel %vm3597_vm6, %v5317_v14, %v5326_v32 }
 0x497   :  { %3552 = vmatpush.msra.mxu3 %v3400_v39  ;;  %v5226_v14 = vunpack.i.l.bf16 %v7016_v33  ;;  %v3816_v33 = vsel %vm3808_vm3, %v5341_v36, %v5342_v11  ;;  %v5361_v10 = vunpack.i.l.bf16 %v7226_v22  ;;  %v5251_v36 = vunpack.i.l.bf16 %v6947_v52 }
 0x498   :  { %3493 = vmatpush.msra.mxu0 %v3390_v24  ;;  %3513 = vmatpush.msra.mxu1 %v3391_v0  ;;  %v3598_v21 = vsel %vm3597_vm6, %v5327_v38, %v5201_v15  ;;  %v3601_v51 = vsel %vm3597_vm6, %v5197_v44, %v5202_v49  ;;  %v5242_v24 = vunpack.i.h.bf16 %v6977_v25  ;;  %v5241_v0 = vunpack.i.l.bf16 %v6977_v25 }
 0x499   :  { %3553 = vmatpush.msra.mxu3 %v3393_v43  ;;  %v3809_v62 = vsel %vm3808_vm3, %v5226_v14, %v5227_v17  ;;  %v3817_v48 = vsel %vm3808_vm3, %v5342_v11, %v5361_v10  ;;  %v5252_v11 = vunpack.i.h.bf16 %v6947_v52 }
 0x49a   :  { %3643 = vmatpush.msrb.mxu0 %v3605_v31  ;;  %3663 = vmatpush.msrb.mxu1 %v3606_v50  ;;  %v7269_v5 = vpop.permute.xlu1 %5309  ;;  %v4020_v15 = vsel %vm4019_vm7, %v5241_v0, %v5242_v24 }
 0x49b   :  { %3703 = vmatpush.msrb.mxu3 %v3608_v45  ;;  %5088 = vmatmul.msk.f32.vlgmr.msra.gmra.mxu0 %vm2856_vm2, %v7138_v42  ;;  %v7273_v60 = vpop.permute.xlu0 %5369  ;;  %v7275_v6 = vpop.permute.xlu2 %5364  ;;  %v5311_v38 = vunpack.i.l.bf16 %v7269_v5 }
 0x49c   :  { %5098 = vmatmul.msk.f32.vlgmr.msra.gmra.mxu2 %vm2856_vm2, %v7220_v59  ;;  %5089 = vmatmul.msk.f32.vlgmr.msra.gmra.mxu1 %vm2856_vm2, %v7138_v42  ;;  %v5371_v40 = vunpack.i.l.bf16 %v7273_v60  ;;  %v5372_v4 = vunpack.i.h.bf16 %v7273_v60 }
 0x49d   :  { %5091 = vmatmul.msk.f32.vlgmr.msra.gmra.mxu3 %vm2856_vm2, %v7138_v42  ;;  %3644 = vmatpush.msrb.mxu0 %v3598_v21 }
 0x49e   :  { %3664 = vmatpush.msrb.mxu1 %v3599_v57  ;;  %3704 = vmatpush.msrb.mxu3 %v3601_v51 }
 0x4a0   :  { %3854 = vmatpush.msra.mxu3 %v3816_v33 }
 0x4a2   :  { %3855 = vmatpush.msra.mxu3 %v3809_v62  ;;  %v5335_v42 = vpop.permute.xlu1 %5334 }
 0x4a3   :  { %5092 = vmatmul.msk.f32.vlgmr.msrb.gmra.mxu0 %vm2856_vm2, %v7220_v59  ;;  %v7296_v58 = vpop.permute.xlu0 %5379  ;;  %v5337_v2 = vunpack.i.h.bf16 %v5335_v42  ;;  %v5336_v3 = vunpack.i.l.bf16 %v5335_v42  ;;  %v7303_v26 = vpop.permute.xlu2 %5374 }
 0x4a4   :  { %5093 = vmatmul.msk.f32.vlgmr.msrb.gmra.mxu1 %vm2856_vm2, %v7220_v59  ;;  %v5381_v55 = vunpack.i.l.bf16 %v7296_v58  ;;  %v5382_v28 = vunpack.i.h.bf16 %v7296_v58  ;;  %v5376_v39 = vunpack.i.l.bf16 %v7303_v26 }
 0x4a5   :  { %5095 = vmatmul.msk.f32.vlgmr.msrb.gmra.mxu3 %vm2856_vm2, %v7220_v59  ;;  %v3609_v44 = vsel %vm3597_vm6, %v5326_v32, %v5336_v3  ;;  %v3610_v23 = vsel %vm3597_vm6, %v5336_v3, %v5331_v16  ;;  %v3602_v18 = vsel %vm3597_vm6, %v5202_v49, %v5337_v2  ;;  %v3603_v20 = vsel %vm3597_vm6, %v5337_v2, %v5206_v30  ;;  %v7378_v49 = vld [vmem:[%s7614_s5 + $0x18] sm:$0xf] }
 0x4a6   :  { %3723 = vmatpush.msra.mxu0 %v3609_v44  ;;  %3743 = vmatpush.msra.mxu1 %v3610_v23  ;;  %v5362_v16 = vunpack.i.h.bf16 %v7226_v22  ;;  %v3810_v22 = vsel %vm3808_vm3, %v5227_v17, %v5236_v29  ;;  %v5366_v32 = vunpack.i.l.bf16 %v7275_v6  ;;  %v3814_v29 = vsel %vm3808_vm3, %v5237_v8, %v5372_v4 }
 0x4a7   :  { %v3822_v7 = vsel %vm3808_vm3, %v5371_v40, %v5381_v55  ;;  %v5377_v8 = vunpack.i.h.bf16 %v7303_v26  ;;  %v3815_v25 = vsel %vm3808_vm3, %v5372_v4, %v5382_v28  ;;  %v4024_v26 = vsel %vm4019_vm7, %v5251_v36, %v5252_v11 }
 0x4a8   :  { %3724 = vmatpush.msra.mxu0 %v3602_v18  ;;  %3744 = vmatpush.msra.mxu1 %v3603_v20  ;;  %v3821_v47 = vsel %vm3808_vm3, %v5362_v16, %v5371_v40 }
 0x4a9   :  { %v4021_v43 = vsel %vm4019_vm7, %v5242_v24, %v5377_v8  ;;  %v4022_v50 = vsel %vm4019_vm7, %v5377_v8, %v5311_v38 }
 0x4aa   :  { %3874 = vmatpush.msrb.mxu0 %v3817_v48  ;;  %v5345_v41 = vpop.permute.xlu1 %5344 }
 0x4ab   :  { %5096 = vmatmul.msk.f32.vlgmr.msra.gmra.mxu0 %vm2856_vm2, %v7220_v59  ;;  %v7324_v56 = vpop.permute.xlu0 %5394  ;;  %v5347_v30 = vunpack.i.h.bf16 %v5345_v41  ;;  %v5346_v54 = vunpack.i.l.bf16 %v5345_v41  ;;  %v7340_v13 = vpop.permute.xlu2 %5404  ;;  %v4622_v41 = vperm.slane %v7053_v19, 0 }
 0x4ac   :  { %5097 = vmatmul.msk.f32.vlgmr.msra.gmra.mxu1 %vm2856_vm2, %v7220_v59  ;;  %3875 = vmatpush.msrb.mxu0 %v3810_v22  ;;  %v5367_v59 = vunpack.i.h.bf16 %v7275_v6  ;;  %v5312_v6 = vunpack.i.h.bf16 %v7269_v5  ;;  %v5407_v58 = vunpack.i.h.bf16 %v7340_v13  ;;  %v5406_v2 = vunpack.i.l.bf16 %v7340_v13 }
 0x4ad   :  { %5099 = vmatmul.msk.f32.vlgmr.msra.gmra.mxu3 %vm2856_vm2, %v7318_v12  ;;  %v3818_v9 = vsel %vm3808_vm3, %v5361_v10, %v5346_v54  ;;  %v3819_v35 = vsel %vm3808_vm3, %v5346_v54, %v5347_v30  ;;  %v3820_v34 = vsel %vm3808_vm3, %v5347_v30, %v5362_v16  ;;  %v4023_v10 = vsel %vm4019_vm7, %v5311_v38, %v5251_v36 }
 0x4ae   :  { %3954 = vmatpush.msra.mxu0 %v3821_v47  ;;  %3894 = vmatpush.msrb.mxu1 %v3818_v9  ;;  %v4027_v1 = vsel %vm4019_vm7, %v5366_v32, %v5367_v59  ;;  %v4028_v61 = vsel %vm4019_vm7, %v5367_v59, %v5376_v39  ;;  %v4025_v44 = vsel %vm4019_vm7, %v5252_v11, %v5312_v6  ;;  %v4624_v9 = vperm.slane %v7053_v19, 2 }
 0x4af   :  { %3914 = vmatpush.msrb.mxu2 %v3819_v35  ;;  %3934 = vmatpush.msrb.mxu3 %v3820_v34  ;;  %v2747_v34 = vld [vmem:[%s7614_s5 + $0x1c] sm:$0xf]  ;;  %v5357_v13 = vunpack.i.h.bf16 %v7228_v63 }
 0x4b0   :  { %3955 = vmatpush.msra.mxu0 %v3814_v29  ;;  %3895 = vmatpush.msrb.mxu1 %v6957_v27  ;;  %v5356_v29 = vunpack.i.l.bf16 %v7228_v63 }
 0x4b1   :  { %3915 = vmatpush.msrb.mxu2 %v3812_v37  ;;  %3935 = vmatpush.msrb.mxu3 %v6964_v53 }
 0x4b2   :  { %5102 = vmatmul.msk.f32.vlgmr.msrb.gmra.mxu2 %vm2856_vm2, %v7318_v12  ;;  %3974 = vmatpush.msra.mxu1 %v3822_v7  ;;  %v7361_v27 = vpop.permute.xlu1 %5349  ;;  %v4236_v38 = vsel %vm4230_vm8, %v5356_v29, %v5357_v13 }
 0x4b3   :  { %5100 = vmatmul.msk.f32.vlgmr.msrb.gmra.mxu0 %vm2856_vm2, %v7318_v12  ;;  %4065 = vmatpush.msra.mxu2 %v4027_v1  ;;  %v5400_v46 = vpop.permute.xlu0 %5399  ;;  %v7381_v45 = vpop.permute.xlu2 %5414  ;;  %v5352_v23 = vunpack.i.h.bf16 %v7361_v27  ;;  %v5351_v18 = vunpack.i.l.bf16 %v7361_v27 }
 0x4b4   :  { %5101 = vmatmul.msk.f32.vlgmr.msrb.gmra.mxu1 %vm2856_vm2, %v7318_v12  ;;  %v5401_v53 = vunpack.i.l.bf16 %v5400_v46  ;;  %4085 = vmatpush.msra.mxu3 %v4028_v61  ;;  %v5402_v17 = vunpack.i.h.bf16 %v5400_v46  ;;  %v5416_v33 = vunpack.i.l.bf16 %v7381_v45  ;;  %v5417_v20 = vunpack.i.h.bf16 %v7381_v45 }
 0x4b5   :  { %5103 = vmatmul.msk.f32.vlgmr.msrb.gmra.mxu3 %vm2856_vm2, %v7318_v12  ;;  %3975 = vmatpush.msra.mxu1 %v3815_v25  ;;  %v4232_v47 = vsel %vm4230_vm8, %v5351_v18, %v5352_v23 }
 0x4b6   :  { %4066 = vmatpush.msra.mxu2 %v4020_v15  ;;  %v4029_v31 = vsel %vm4019_vm7, %v5376_v39, %v5401_v53  ;;  %4086 = vmatpush.msra.mxu3 %v4021_v43  ;;  %v4240_v48 = vsel %vm4230_vm8, %v5407_v58, %v5416_v33  ;;  %v4233_v55 = vsel %vm4230_vm8, %v5352_v23, %v5417_v20  ;;  %v5397_v15 = vunpack.i.h.bf16 %v7324_v56 }
 0x4b7   :  { %4105 = vmatpush.msrb.mxu0 %v4029_v31  ;;  %4630 = vrot.lane.b32.xlu1 %v4622_v41, %s5487_s27  ;;  %v5396_v43 = vunpack.i.l.bf16 %v7324_v56  ;;  %v4628_v41 = vperm.slane %v7053_v19, 6 }
 0x4b8   :  { %4634 = vrot.lane.b32.xlu0 %v4624_v9, %s5487_s27 }
 0x4b9   :  { %4106 = vmatpush.msrb.mxu0 %v4022_v50 }
 0x4ba   :  { %5106 = vmatmul.msk.f32.vlgmr.msra.gmra.mxu2 %vm2856_vm2, %v7378_v49  ;;  %v5385_v60 = vpop.permute.xlu1 %5384 }
 0x4bb   :  { %5104 = vmatmul.msk.f32.vlgmr.msra.gmra.mxu0 %vm2856_vm2, %v7318_v12  ;;  %v5410_v14 = vpop.permute.xlu0 %5409  ;;  %v5387_v21 = vunpack.i.h.bf16 %v5385_v60  ;;  %v5386_v57 = vunpack.i.l.bf16 %v5385_v60  ;;  %v7415_v4 = vpop.permute.xlu2 %5439 }
 0x4bc   :  { %5105 = vmatmul.msk.f32.vlgmr.msra.gmra.mxu1 %vm2856_vm2, %v7318_v12  ;;  %v5412_v52 = vunpack.i.h.bf16 %v5410_v14  ;;  %v5411_v51 = vunpack.i.l.bf16 %v5410_v14  ;;  %v4239_v12 = vsel %vm4230_vm8, %v5406_v2, %v5407_v58  ;;  %v5442_v8 = vunpack.i.h.bf16 %v7415_v4 }
 0x4bd   :  { %5107 = vmatmul.msk.f32.vlgmr.msra.gmra.mxu3 %vm2856_vm2, %v7378_v49  ;;  %v4030_v62 = vsel %vm4019_vm7, %v5401_v53, %v5386_v57  ;;  %v4031_v5 = vsel %vm4019_vm7, %v5386_v57, %v5387_v21  ;;  %v4032_v42 = vsel %vm4019_vm7, %v5387_v21, %v5402_v17  ;;  %v5441_v46 = vunpack.i.l.bf16 %v7415_v4 }
 0x4be   :  { %4125 = vmatpush.msrb.mxu1 %v4030_v62  ;;  %4145 = vmatpush.msrb.mxu2 %v4031_v5  ;;  %v4033_v3 = vsel %vm4019_vm7, %v5402_v17, %v5411_v51  ;;  %v4026_v40 = vsel %vm4019_vm7, %v5312_v6, %v5412_v52  ;;  %v4625_v17 = vperm.slane %v7053_v19, 3  ;;  %v4444_v52 = vsel %vm4441_vm10, %v5396_v43, %v5397_v15 }
 0x4bf   :  { %4165 = vmatpush.msrb.mxu3 %v4032_v42  ;;  %4185 = vmatpush.msra.mxu0 %v4033_v3  ;;  %v4451_v11 = vsel %vm4441_vm10, %v5441_v46, %v5442_v8  ;;  %v4627_v5 = vperm.slane %v7053_v19, 5  ;;  %v2748_v3 = vld [vmem:[%s7614_s5 + $0x20] sm:$0xf] }
 0x4c0   :  { %4126 = vmatpush.msrb.mxu1 %v4023_v10  ;;  %4146 = vmatpush.msrb.mxu2 %v4024_v26 }
 0x4c1   :  { %4166 = vmatpush.msrb.mxu3 %v4025_v44  ;;  %4186 = vmatpush.msra.mxu0 %v4026_v40 }
 0x4c2   :  { %5110 = vmatmul.msk.f32.vlgmr.msrb.gmra.mxu2 %vm2856_vm2, %v7378_v49  ;;  %v5390_v16 = vpop.permute.xlu1 %5389  ;;  %4636 = vrot.lane.b32.xlu1 %v4625_v17, %s5487_s27 }
 0x4c3   :  { %4316 = vmatpush.msra.mxu3 %v4240_v48  ;;  %5108 = vmatmul.msk.f32.vlgmr.msrb.gmra.mxu0 %vm2856_vm2, %v7378_v49  ;;  %v5420_v30 = vpop.permute.xlu0 %5419  ;;  %v5391_v24 = vunpack.i.l.bf16 %v5390_v16  ;;  %v5392_v1 = vunpack.i.h.bf16 %v5390_v16  ;;  %v7441_v27 = vpop.permute.xlu2 %5449 }
 0x4c4   :  { %4296 = vmatpush.msra.mxu2 %v4239_v12  ;;  %5109 = vmatmul.msk.f32.vlgmr.msrb.gmra.mxu1 %vm2856_vm2, %v7378_v49  ;;  %v5422_v54 = vunpack.i.h.bf16 %v5420_v30  ;;  %v5421_v22 = vunpack.i.l.bf16 %v5420_v30  ;;  %v5451_v31 = vunpack.i.l.bf16 %v7441_v27  ;;  %v5452_v51 = vunpack.i.h.bf16 %v7441_v27 }
 0x4c5   :  { %5111 = vmatmul.msk.f32.vlgmr.msrb.gmra.mxu3 %vm2856_vm2, %v7378_v49  ;;  %v4235_v50 = vsel %vm4230_vm8, %v5391_v24, %v5356_v29  ;;  %v4237_v45 = vsel %vm4230_vm8, %v5357_v13, %v5392_v1  ;;  %4640 = vrot.lane.b32.xlu0 %v4627_v5, %s5487_s27 }
 0x4c6   :  { %4297 = vmatpush.msra.mxu2 %v4232_v47  ;;  %4317 = vmatpush.msra.mxu3 %v4233_v55  ;;  %v4238_v35 = vsel %vm4230_vm8, %v5421_v22, %v5406_v2  ;;  %v4231_v59 = vsel %vm4230_vm8, %v5422_v54, %v5351_v18  ;;  %v4452_v14 = vsel %vm4441_vm10, %v5442_v8, %v5451_v31  ;;  %v2917_v10 = vpop.f32.mrf.mxu2 }
 0x4c7   :  { %4276 = vmatpush.msra.mxu1 %v4238_v35 }
 0x4c8   :  { %v2897_v9 = vpop.f32.mrf.mxu1 }
 0x4c9   :  { %4277 = vmatpush.msra.mxu1 %v4231_v59 }
 0x4ca   :  { %5114 = vmatmul.msk.f32.vlgmr.msra.gmra.mxu2 %vm2856_vm2, %v2747_v34  ;;  %v5425_v32 = vpop.permute.xlu1 %5424  ;;  %4642 = vrot.lane.b32.xlu1 %v4628_v41, %s5487_s27 }
 0x4cb   :  { %5112 = vmatmul.msk.f32.vlgmr.msra.gmra.mxu0 %vm2856_vm2, %v7378_v49  ;;  %v5430_v28 = vpop.permute.xlu0 %5429  ;;  %v5427_v39 = vunpack.i.h.bf16 %v5425_v32  ;;  %v5426_v37 = vunpack.i.l.bf16 %v5425_v32  ;;  %v4234_v49 = vsel %vm4230_vm8, %v5417_v20, %v5391_v24  ;;  %v5460_v26 = vpop.permute.xlu2 %5459 }
 0x4cc   :  { %5113 = vmatmul.msk.f32.vlgmr.msra.gmra.mxu1 %vm2856_vm2, %v2747_v34  ;;  %v5432_v0 = vunpack.i.h.bf16 %v5430_v28  ;;  %v5431_v7 = vunpack.i.l.bf16 %v5430_v28  ;;  %v5462_v23 = vunpack.i.h.bf16 %v5460_v26  ;;  %v5461_v18 = vunpack.i.l.bf16 %v5460_v26 }
 0x4cd   :  { %5115 = vmatmul.msk.f32.vlgmr.msra.gmra.mxu3 %vm2856_vm2, %v2747_v34  ;;  %v4243_v63 = vsel %vm4230_vm8, %v5426_v37, %v5427_v39 }
 0x4ce   :  { %v4241_v61 = vsel %vm4230_vm8, %v5416_v33, %v5431_v7  ;;  %v4242_v53 = vsel %vm4230_vm8, %v5431_v7, %v5426_v37  ;;  %4376 = vmatpush.msrb.mxu2 %v4243_v63  ;;  %v4244_v25 = vsel %vm4230_vm8, %v5427_v39, %v5432_v0  ;;  %v4448_v22 = vsel %vm4441_vm10, %v5461_v18, %v5462_v23 }
 0x4cf   :  { %4336 = vmatpush.msrb.mxu0 %v4241_v61  ;;  %4356 = vmatpush.msrb.mxu1 %v4242_v53 }
 0x4d0   :  { %4396 = vmatpush.msrb.mxu3 %v4244_v25  ;;  %4377 = vmatpush.msrb.mxu2 %v4236_v38 }
 0x4d1   :  { %4337 = vmatpush.msrb.mxu0 %v4234_v49  ;;  %4357 = vmatpush.msrb.mxu1 %v4235_v50 }
 0x4d2   :  { %4397 = vmatpush.msrb.mxu3 %v4237_v45  ;;  %5118 = vmatmul.msk.f32.vlgmr.msrb.gmra.mxu2 %vm2856_vm2, %v2747_v34  ;;  %v5445_v36 = vpop.permute.xlu1 %5444 }
 0x4d3   :  { %5116 = vmatmul.msk.f32.vlgmr.msrb.gmra.mxu0 %vm2856_vm2, %v2747_v34  ;;  %4527 = vmatpush.msra.mxu2 %v4451_v11  ;;  %v5435_v56 = vpop.permute.xlu0 %5434  ;;  %v5447_v60 = vunpack.i.h.bf16 %v5445_v36  ;;  %v5446_v6 = vunpack.i.l.bf16 %v5445_v36 }
 0x4d4   :  { %5117 = vmatmul.msk.f32.vlgmr.msrb.gmra.mxu1 %vm2856_vm2, %v2747_v34  ;;  %v5437_v21 = vunpack.i.h.bf16 %v5435_v56  ;;  %v5436_v57 = vunpack.i.l.bf16 %v5435_v56  ;;  %4547 = vmatpush.msra.mxu3 %v4452_v14 }
 0x4d5   :  { %5119 = vmatmul.msk.f32.vlgmr.msrb.gmra.mxu3 %vm2856_vm2, %v2747_v34  ;;  %4528 = vmatpush.msra.mxu2 %v4444_v52  ;;  %v4449_v33 = vsel %vm4441_vm10, %v5446_v6, %v5447_v60  ;;  %v4450_v62 = vsel %vm4441_vm10, %v5447_v60, %v5441_v46 }
 0x4d6   :  { %4487 = vmatpush.msra.mxu0 %v4449_v33  ;;  %4507 = vmatpush.msra.mxu1 %v4450_v62  ;;  %v4445_v42 = vsel %vm4441_vm10, %v5397_v15, %v5437_v21  ;;  %v4442_v58 = vsel %vm4441_vm10, %v5452_v51, %v5436_v57  ;;  %v4443_v2 = vsel %vm4441_vm10, %v5436_v57, %v5396_v43 }
 0x4d7   :  { %4548 = vmatpush.msra.mxu3 %v4445_v42 }
 0x4d8   :  { %4488 = vmatpush.msra.mxu0 %v4442_v58  ;;  %4508 = vmatpush.msra.mxu1 %v4443_v2 }
 0x4da   :  { %5122 = vmatmul.msk.f32.vlgmr.msra.gmra.mxu2 %vm2856_vm2, %v2748_v3  ;;  %v5455_v44 = vpop.permute.xlu1 %5454 }
 0x4db   :  { %5120 = vmatmul.msk.f32.vlgmr.msra.gmra.mxu0 %vm2856_vm2, %v2748_v3  ;;  %v5465_v20 = vpop.permute.xlu0 %5464  ;;  %v5457_v40 = vunpack.i.h.bf16 %v5455_v44  ;;  %v5456_v48 = vunpack.i.l.bf16 %v5455_v44 }
 0x4dc   :  { %5121 = vmatmul.msk.f32.vlgmr.msra.gmra.mxu1 %vm2856_vm2, %v2748_v3  ;;  %v5467_v12 = vunpack.i.h.bf16 %v5465_v20  ;;  %v5466_v16 = vunpack.i.l.bf16 %v5465_v20 }
 0x4dd   :  { %5123 = vmatmul.msk.f32.vlgmr.msra.gmra.mxu3 %vm2856_vm2, %v2748_v3  ;;  %v4455_v4 = vsel %vm4441_vm10, %v5456_v48, %v5457_v40 }
 0x4de   :  { %v4453_v30 = vsel %vm4441_vm10, %v5451_v31, %v5466_v16  ;;  %v4454_v54 = vsel %vm4441_vm10, %v5466_v16, %v5456_v48  ;;  %4607 = vmatpush.msrb.mxu2 %v4455_v4  ;;  %v4446_v47 = vsel %vm4441_vm10, %v5437_v21, %v5467_v12  ;;  %v4447_v55 = vsel %vm4441_vm10, %v5467_v12, %v5461_v18  ;;  %v2997_v19 = vpop.f32.mrf.mxu2 }
 0x4df   :  { %4567 = vmatpush.msrb.mxu0 %v4453_v30  ;;  %4587 = vmatpush.msrb.mxu1 %v4454_v54 }
 0x4e0   :  { %4608 = vmatpush.msrb.mxu2 %v4448_v22 }
 0x4e1   :  { %4568 = vmatpush.msrb.mxu0 %v4446_v47  ;;  %4588 = vmatpush.msrb.mxu1 %v4447_v55 }
 0x4e2   :  { %5126 = vmatmul.msk.f32.vlgmr.msrb.gmra.mxu2 %vm2856_vm2, %v2748_v3 }
 0x4e3   :  { %5124 = vmatmul.msk.f32.vlgmr.msrb.gmra.mxu0 %vm2856_vm2, %v2748_v3 }
 0x4e4   :  { %5125 = vmatmul.msk.f32.vlgmr.msrb.gmra.mxu1 %vm2856_vm2, %v2748_v3 }
 0x4e6   :  { %v3080_v34 = vpop.f32.mrf.mxu2 }
 0x4e8   :  { %v2877_v35 = vpop.f32.mrf.mxu0 }
 0x4ee   :  { %v2937_v59 = vpop.f32.mrf.mxu3 }
 0x4ef   :  { %v3081_v32 = vadd.f32 %v3080_v34, %v2937_v59  ;;  %v3224_v28 = vpop.f32.mrf.mxu2 }
 0x4f0   :  { %v2957_v13 = vpop.f32.mrf.mxu0  ;;  %v2977_v29 = vpop.f32.mrf.mxu1 }
 0x4f7   :  { %v3020_v39 = vpop.f32.mrf.mxu3 }
 0x4f8   :  { %v3021_v37 = vadd.f32 %v3020_v39, %v2877_v35  ;;  %v3040_v24 = vpop.f32.mrf.mxu0  ;;  %v3304_v63 = vpop.f32.mrf.mxu2 }
 0x4f9   :  { %v3041_v0 = vadd.f32 %v3040_v24, %v2897_v9  ;;  %v3060_v7 = vpop.f32.mrf.mxu1 }
 0x4fa   :  { %v3061_v8 = vadd.f32 %v3060_v7, %v2917_v10  ;;  %v3347_v1 = vadd.f32 %v3224_v28, %v3021_v37 }
 0x4ff   :  { %v3100_v27 = vpop.f32.mrf.mxu3 }
 0x500   :  { %v3101_v46 = vadd.f32 %v3100_v27, %v2957_v13  ;;  %v3120_v61 = vpop.f32.mrf.mxu0 }
 0x501   :  { %v3121_v53 = vadd.f32 %v3120_v61, %v2977_v29  ;;  %v3140_v25 = vpop.f32.mrf.mxu1  ;;  %v4633_v29 = vpop.permute.xlu2 %4632 }
 0x502   :  { %v3141_v15 = vadd.f32 %v3140_v25, %v2997_v19  ;;  %v3351_v38 = vadd.f32 %v3304_v63, %v3101_v46 }
 0x505   :  { %v3455_v36 = vpop.f32.mrf.mxu2 }
 0x507   :  { %v3244_v43 = vpop.f32.mrf.mxu3 }
 0x508   :  { %v3348_v31 = vadd.f32 %v3244_v43, %v3041_v0  ;;  %v3264_v49 = vpop.f32.mrf.mxu0 }
 0x509   :  { %v3349_v50 = vadd.f32 %v3264_v49, %v3061_v8  ;;  %v3284_v45 = vpop.f32.mrf.mxu1 }
 0x50a   :  { %v3350_v11 = vadd.f32 %v3284_v45, %v3081_v32  ;;  %v3559_v34 = vadd.f32 %v3455_v36, %v3348_v31 }
 0x50d   :  { %v3535_v52 = vpop.f32.mrf.mxu2 }
 0x50f   :  { %v3324_v56 = vpop.f32.mrf.mxu3 }
 0x510   :  { %v3352_v60 = vadd.f32 %v3324_v56, %v3121_v53  ;;  %v3344_v6 = vpop.f32.mrf.mxu0 }
 0x511   :  { %v3353_v17 = vadd.f32 %v3344_v6, %v3141_v15  ;;  %v3435_v14 = vpop.f32.mrf.mxu1 }
 0x512   :  { %v3558_v9 = vadd.f32 %v3435_v14, %v3347_v1  ;;  %v3563_v25 = vadd.f32 %v3535_v52, %v3352_v60 }
 0x515   :  { %v3686_v42 = vpop.f32.mrf.mxu2 }
 0x517   :  { %v3475_v21 = vpop.f32.mrf.mxu3 }
 0x518   :  { %v3495_v57 = vpop.f32.mrf.mxu0  ;;  %v3560_v28 = vadd.f32 %v3475_v21, %v3349_v50 }
 0x519   :  { %v3515_v51 = vpop.f32.mrf.mxu1  ;;  %v3561_v46 = vadd.f32 %v3495_v57, %v3350_v11 }
 0x51a   :  { %v3771_v61 = vadd.f32 %v3686_v42, %v3560_v28  ;;  %v3562_v1 = vadd.f32 %v3515_v51, %v3351_v38 }
 0x51f   :  { %v3766_v10 = vpop.f32.mrf.mxu2 }
 0x520   :  { %v3555_v33 = vpop.f32.mrf.mxu3  ;;  %v3646_v62 = vpop.f32.mrf.mxu0 }
 0x521   :  { %v3666_v5 = vpop.f32.mrf.mxu1  ;;  %v3769_v32 = vadd.f32 %v3646_v62, %v3558_v9  ;;  %v3564_v7 = vadd.f32 %v3555_v33, %v3353_v17  ;;  %v4639_v62 = vpop.permute.xlu2 %4638 }
 0x522   :  { %v3770_v39 = vadd.f32 %v3666_v5, %v3559_v34 }
 0x523   :  { %v3775_v50 = vadd.f32 %v3766_v10, %v3564_v7 }
 0x528   :  { %v3706_v58 = vpop.f32.mrf.mxu3  ;;  %v3726_v2 = vpop.f32.mrf.mxu0 }
 0x529   :  { %v3746_v3 = vpop.f32.mrf.mxu1  ;;  %v4631_v55 = vpop.permute.xlu1 %4630  ;;  %v3772_v31 = vadd.f32 %v3706_v58, %v3561_v46  ;;  %v3773_v56 = vadd.f32 %v3726_v2, %v3562_v1 }
 0x52a   :  { %v4635_v63 = vpop.permute.xlu0 %4634  ;;  %v3774_v6 = vadd.f32 %v3746_v3, %v3563_v25  ;;  %v7495_v11 = vsel %vm3597_vm6, %v4631_v55, %v4633_v29 }
 0x52b   :  { %v7502_v51 = vsel %vm3597_vm6, %v4633_v29, %v4635_v63 }
 0x530   :  { %v3857_v26 = vpop.f32.mrf.mxu3  ;;  %v3877_v44 = vpop.f32.mrf.mxu0 }
 0x531   :  { %v3897_v23 = vpop.f32.mrf.mxu1  ;;  %v3980_v37 = vadd.f32 %v3857_v26, %v3769_v32  ;;  %v3981_v24 = vadd.f32 %v3877_v44, %v3770_v39 }
 0x532   :  { %v3982_v49 = vadd.f32 %v3897_v23, %v3771_v61 }
 0x534   :  { %v4637_v0 = vpop.permute.xlu1 %4636 }
 0x535   :  { %v3917_v18 = vpop.f32.mrf.mxu2 }
 0x536   :  { %v3983_v21 = vadd.f32 %v3917_v18, %v3772_v31 }
 0x538   :  { %v3937_v20 = vpop.f32.mrf.mxu3  ;;  %v3957_v40 = vpop.f32.mrf.mxu0 }
 0x539   :  { %v3977_v48 = vpop.f32.mrf.mxu1  ;;  %v3984_v38 = vadd.f32 %v3937_v20, %v3773_v56  ;;  %v3985_v60 = vadd.f32 %v3957_v40, %v3774_v6 }
 0x53a   :  { %v3986_v2 = vadd.f32 %v3977_v48, %v3775_v50 }
 0x53c   :  { %v4643_v40 = vpop.permute.xlu1 %4642 }
 0x53d   :  { %v4068_v12 = vpop.f32.mrf.mxu2 }
 0x53e   :  { %v4191_v8 = vadd.f32 %v4068_v12, %v3980_v37 }
 0x540   :  { %v4088_v16 = vpop.f32.mrf.mxu3  ;;  %v4108_v41 = vpop.f32.mrf.mxu0 }
 0x541   :  { %v4128_v4 = vpop.f32.mrf.mxu1  ;;  %v4192_v53 = vadd.f32 %v4088_v16, %v3981_v24  ;;  %v4193_v33 = vadd.f32 %v4108_v41, %v3982_v49  ;;  %v4648_v16 = vsel %vm3597_vm6, %v4635_v63, %v4637_v0  ;;  %v4645_v63 = vpop.permute.xlu2 %4644 }
 0x542   :  { %v4194_v5 = vadd.f32 %v4128_v4, %v3983_v21  ;;  %v4641_v4 = vpop.permute.xlu0 %4640 }
 0x543   :  { %v4650_v28 = vsel %vm3597_vm6, %v4639_v62, %v4641_v4 }
 0x545   :  { %v4148_v30 = vpop.f32.mrf.mxu2 }
 0x546   :  { %v4195_v3 = vadd.f32 %v4148_v30, %v3984_v38 }
 0x548   :  { %v4168_v54 = vpop.f32.mrf.mxu3  ;;  %v4188_v22 = vpop.f32.mrf.mxu0 }
 0x549   :  { %v4279_v47 = vpop.f32.mrf.mxu1  ;;  %v4196_v10 = vadd.f32 %v4168_v54, %v3985_v60  ;;  %v4649_v54 = vsel %vm3597_vm6, %v4637_v0, %v4639_v62 }
 0x54a   :  { %v4402_v15 = vadd.f32 %v4279_v47, %v4191_v8  ;;  %v4197_v47 = vadd.f32 %v4188_v22, %v3986_v2 }
 0x54d   :  { %v4299_v19 = vpop.f32.mrf.mxu2 }
 0x54e   :  { %v4403_v45 = vadd.f32 %v4299_v19, %v4192_v53  ;;  %v4652_v53 = vsel %vm3597_vm6, %v4643_v40, %v4645_v63 }
 0x550   :  { %v4319_v35 = vpop.f32.mrf.mxu3  ;;  %v4339_v59 = vpop.f32.mrf.mxu0 }
 0x551   :  { %v4359_v13 = vpop.f32.mrf.mxu1  ;;  %v4404_v42 = vadd.f32 %v4319_v35, %v4193_v33  ;;  %v4405_v44 = vadd.f32 %v4339_v59, %v4194_v5  ;;  %v4651_v59 = vsel %vm3597_vm6, %v4641_v4, %v4643_v40 }
 0x552   :  { %v4406_v12 = vadd.f32 %v4359_v13, %v4195_v3 }
 0x555   :  { %v4379_v27 = vpop.f32.mrf.mxu2 }
 0x556   :  { %v4407_v55 = vadd.f32 %v4379_v27, %v4196_v10 }
 0x558   :  { %v4399_v43 = vpop.f32.mrf.mxu3  ;;  %v4490_v36 = vpop.f32.mrf.mxu0 }
 0x559   :  { %v7492_v14 = vadd.f32 %v4490_v36, %v4402_v15  ;;  %v4510_v17 = vpop.f32.mrf.mxu1  ;;  %v4408_v22 = vadd.f32 %v4399_v43, %v4197_v47  ;;  %v4765_v43 = vld [vmem:[%s7609_s0 + $0xc] sm:$0xff] }
 0x55a   :  { %v7497_v57 = vadd.f32 %v4510_v17, %v4403_v45  ;;  %v4767_v45 = vld [vmem:[%s7609_s0 + $0x1c] sm:$0xff]  ;;  %4773 = vst [vmem:[#allocation1] ss:$2 sm:$0xff] %v4765_v43 }
 0x55b   :  { %v4660_v52 = vmul.f32 %v7495_v11, %v7492_v14  ;;  %4777 = vst [vmem:[#allocation1 + $0x20] ss:$2 sm:$0xff] %v4767_v45 }
 0x55c   :  { %v4661_v58 = vmul.f32 %v7502_v51, %v7497_v57 }
 0x55d   :  { %v4530_v26 = vpop.f32.mrf.mxu2  ;;  %v4667_v23 = vsel %vm109_vm1, %v4660_v52, 0.0 }
 0x55e   :  { %v4668_v18 = vsel %vm109_vm1, %v4661_v58, 0.0  ;;  %v4615_v20 = vadd.f32 %v4530_v26, %v4404_v42 }
 0x55f   :  { %v4669_v30 = vadd.f32 %v4668_v18, %v4667_v23 }
 0x560   :  { %v4550_v41 = vpop.f32.mrf.mxu3  ;;  %v4662_v19 = vmul.f32 %v4648_v16, %v4615_v20  ;;  %v4570_v48 = vpop.f32.mrf.mxu0 }
 0x561   :  { %v4616_v9 = vadd.f32 %v4550_v41, %v4405_v44  ;;  %v4617_v35 = vadd.f32 %v4570_v48, %v4406_v12  ;;  %v4590_v34 = vpop.f32.mrf.mxu1  ;;  %v4781_v36 = vld.sshfl [vmem:[#allocation1 + $0x8] sm:$0xff pattern:$0x75316420] }
 0x562   :  { %v4670_v32 = vsel %vm109_vm1, %v4662_v19, 0.0  ;;  %v4618_v13 = vadd.f32 %v4590_v34, %v4407_v55  ;;  %4790 = vrot.lane.b32.xlu2 %v4781_v36, %s5482_s11  ;;  %v4784_v50 = vld.sshfl [vmem:[#allocation1 + $0x20] sm:$0xff pattern:$0x75316420] }
 0x563   :  { %v4663_v29 = vmul.f32 %v4649_v54, %v4616_v9  ;;  %v4671_v39 = vadd.f32 %v4670_v32, %v4669_v30  ;;  %v4664_v37 = vmul.f32 %v4650_v28, %v4617_v35  ;;  %v4768_v34 = vld [vmem:[%s7609_s0 + $0x24] sm:$0xff] }
 0x564   :  { %v4665_v7 = vmul.f32 %v4651_v59, %v4618_v13  ;;  %4779 = vst [vmem:[#allocation1 + $0x30] ss:$2 sm:$0xff] %v4768_v34  ;;  %v4785_v32 = vld.sshfl [vmem:[#allocation1 + $0x28] sm:$0xff pattern:$0x75316420] }
 0x565   :  { %v4672_v24 = vsel %vm109_vm1, %v4663_v29, 0.0  ;;  %v4610_v27 = vpop.f32.mrf.mxu2  ;;  %v4674_v0 = vsel %vm109_vm1, %v4664_v37, 0.0 }
 0x566   :  { %v4673_v8 = vadd.f32 %v4672_v24, %v4671_v39  ;;  %v4619_v46 = vadd.f32 %v4610_v27, %v4408_v22  ;;  %v4676_v25 = vsel %vm109_vm1, %v4665_v7, 0.0 }
 0x568   :  { %v4675_v61 = vadd.f32 %v4674_v0, %v4673_v8  ;;  %v4666_v1 = vmul.f32 %v4652_v53, %v4619_v46 }
 0x56a   :  { %v4677_v15 = vadd.f32 %v4676_v25, %v4675_v61  ;;  %v4678_v31 = vsel %vm109_vm1, %v4666_v1, 0.0  ;;  %v4780_v25 = vld.sshfl [vmem:[#allocation1] sm:$0xff pattern:$0x75316420]  ;;  %v4749_v1 = vpop.permute.xlu2 %4748 }
 0x56b   :  { %v4787_v29 = vld.sshfl [vmem:[#allocation1 + $0x38] sm:$0xff pattern:$0x75316420] }
 0x56c   :  { %v4679_v49 = vadd.f32 %v4678_v31, %v4677_v15 }
 0x56e   :  { %4680 = vadd.xlane.f32.xlu0 %v4679_v49 }
 0x582   :  { %4796 = vrot.lane.b32.xlu0 %v4784_v50, %s5482_s11 }
 0x58a   :  { %4802 = vrot.lane.b32.xlu0 %v4787_v29, %s5482_s11 }
 0x5bc   :  { %v4791_v15 = vpop.permute.xlu2 %4790 }
 0x5e1   :  { %v4681_v56 = vpop.xlane.xlu0 %4680 }
 0x5e2   :  { %v4682_v6 = vmul.f32 0.001953125, %v4681_v56 }
 0x5e4   :  { %v7527_v17 = vsub.f32 %v7492_v14, %v4682_v6  ;;  %v7530_v21 = vsub.f32 %v7497_v57, %v4682_v6  ;;  %v7532_v33 = vsub.f32 %v4615_v20, %v4682_v6  ;;  %v7534_v38 = vsub.f32 %v4616_v9, %v4682_v6 }
 0x5e5   :  { %v7536_v60 = vsub.f32 %v4617_v35, %v4682_v6  ;;  %v7538_v52 = vsub.f32 %v4618_v13, %v4682_v6  ;;  %v7548_v42 = vsub.f32 %v4619_v46, %v4682_v6  ;;  %v4766_v35 = vld [vmem:[%s7609_s0 + $0x14] sm:$0xff]  ;;  %v4720_v46 = vld [vmem:[%s7616_s6] sm:$0xf] }
 0x5e6   :  { %v4690_v62 = vmul.f32 %v7527_v17, %v7527_v17  ;;  %v4691_v5 = vmul.f32 %v7530_v21, %v7530_v21  ;;  %v4692_v14 = vmul.f32 %v7532_v33, %v7532_v33  ;;  %v4693_v57 = vmul.f32 %v7534_v38, %v7534_v38  ;;  %4775 = vst [vmem:[#allocation1 + $0x10] ss:$2 sm:$0xff] %v4766_v35 }
 0x5e7   :  { %v4694_v58 = vmul.f32 %v7536_v60, %v7536_v60  ;;  %v4695_v26 = vmul.f32 %v7538_v52, %v7538_v52  ;;  %v4696_v40 = vmul.f32 %v7548_v42, %v7548_v42 }
 0x5e8   :  { %v4697_v2 = vmul.f32 %v4690_v62, %v7495_v11  ;;  %v4698_v3 = vmul.f32 %v4691_v5, %v7502_v51  ;;  %v4699_v10 = vmul.f32 %v4692_v14, %v4648_v16  ;;  %v4700_v44 = vmul.f32 %v4693_v57, %v4649_v54 }
 0x5e9   :  { %v4701_v12 = vmul.f32 %v4694_v58, %v4650_v28  ;;  %v4702_v11 = vmul.f32 %v4695_v26, %v4651_v59  ;;  %v4703_v47 = vmul.f32 %v4696_v40, %v4652_v53  ;;  %v4786_v28 = vld.sshfl [vmem:[#allocation1 + $0x30] sm:$0xff pattern:$0x75316420] }
 0x5ea   :  { %v4704_v23 = vsel %vm109_vm1, %v4697_v2, 0.0  ;;  %v4705_v18 = vsel %vm109_vm1, %v4698_v3, 0.0  ;;  %v4707_v41 = vsel %vm109_vm1, %v4699_v10, 0.0  ;;  %v4709_v51 = vsel %vm109_vm1, %v4700_v44, 0.0 }
 0x5eb   :  { %v4706_v20 = vadd.f32 %v4705_v18, %v4704_v23  ;;  %v4711_v55 = vsel %vm109_vm1, %v4701_v12, 0.0  ;;  %v4713_v9 = vsel %vm109_vm1, %v4702_v11, 0.0  ;;  %v4715_v30 = vsel %vm109_vm1, %v4703_v47, 0.0 }
 0x5ed   :  { %v4708_v4 = vadd.f32 %v4707_v41, %v4706_v20  ;;  %v4782_v59 = vld.sshfl [vmem:[#allocation1 + $0x10] sm:$0xff pattern:$0x75316420]  ;;  %v4783_v13 = vld.sshfl [vmem:[#allocation1 + $0x18] sm:$0xff pattern:$0x75316420] }
 0x5ee   :  { %4792 = vrot.lane.b32.xlu2 %v4782_v59, %s5482_s11 }
 0x5ef   :  { %v4710_v16 = vadd.f32 %v4709_v51, %v4708_v4 }
 0x5f1   :  { %v4712_v19 = vadd.f32 %v4711_v55, %v4710_v16 }
 0x5f3   :  { %v4714_v48 = vadd.f32 %v4713_v9, %v4712_v19 }
 0x5f4   :  { %v4797_v45 = vpop.permute.xlu0 %4796 }
 0x5f5   :  { %v4716_v54 = vadd.f32 %v4715_v30, %v4714_v48 }
 0x5f6   :  { %4794 = vrot.lane.b32.xlu2 %v4783_v13, %s5482_s11 }
 0x5f7   :  { %4717 = vadd.xlane.f32.xlu1 %v4716_v54 }
 0x5fc   :  { %v4803_v23 = vpop.permute.xlu0 %4802 }
 0x5fe   :  { %4800 = vrot.lane.b32.xlu2 %v4786_v28, %s5482_s11 }
 0x610   :  { %4798 = vrot.lane.b32.xlu1 %v4785_v32, %s5482_s11 }
 0x648   :  { %v4793_v31 = vpop.permute.xlu2 %4792 }
 0x649   :  { %v4805_v26 = vsel %vm2260_vm9, %v4791_v15, %v4793_v31 }
 0x650   :  { %v4795_v49 = vpop.permute.xlu2 %4794 }
 0x658   :  { %v4801_v43 = vpop.permute.xlu2 %4800 }
 0x659   :  { %v4810_v11 = vsel %vm2260_vm9, %v4801_v43, %v4803_v23 }
 0x66a   :  { %v4718_v39 = vpop.xlane.xlu1 %4717 }
 0x66b   :  { %v4719_v37 = vmul.f32 0.001953125, %v4718_v39 }
 0x66d   :  { %v4721_v22 = vadd.f32 1e-05, %v4719_v37 }
 0x66f   :  { %5472 = vrsqrt.f32 %v4721_v22  ;;  %vm4728_vm12 = vweird.f32 %v4721_v22 }
 0x675   :  { %v5473_v24 = vpop.eup %5472 }
 0x676   :  { %v4723_v7 = vmul.f32 %v5473_v24, %v4721_v22  ;;  %vm4729_vm11 = vweird.f32 %v5473_v24 }
 0x677   :  { %vm4730_vm13 = vmor %vm4728_vm12, %vm4729_vm11 }
 0x678   :  { %v4724_v8 = vmul.f32 %v5473_v24, %v4723_v7 }
 0x67a   :  { %v4725_v27 = vmul.f32 0.5, %v4724_v8 }
 0x67c   :  { %v4726_v63 = vsub.f32 1.5, %v4725_v27 }
 0x67e   :  { %v4727_v0 = vmul.f32 %v5473_v24, %v4726_v63 }
 0x680   :  { %v4731_v61 = vsel %vm4730_vm13, %v5473_v24, %v4727_v0 }
 0x681   :  { %v4732_v53 = vmul.f32 %v4731_v61, %v4720_v46 }
 0x682   :  { %v4799_v44 = vpop.permute.xlu1 %4798 }
 0x683   :  { %4735 = vperm.xlu2 %5145, %v4732_v53   ;;  %v4809_v4 = vsel %vm2260_vm9, %v4799_v44, %v4801_v43  ;;  %v4808_v16 = vsel %vm2260_vm9, %v4797_v45, %v4799_v44 }
 0x68b   :  { %4788 = vrot.lane.b32.xlu2 %v4780_v25, %s5482_s11 }
 0x6dd   :  { %v4736_v36 = vpop.permute.xlu2 %4735 }
 0x6de   :  { %v4739_v50 = vmul.f32 %v4736_v36, %v7530_v21  ;;  %v4740_v56 = vmul.f32 %v4736_v36, %v7532_v33  ;;  %v4741_v6 = vmul.f32 %v4736_v36, %v7534_v38  ;;  %v4742_v62 = vmul.f32 %v4736_v36, %v7536_v60 }
 0x6df   :  { %v4743_v5 = vmul.f32 %v4736_v36, %v7538_v52  ;;  %v4744_v14 = vmul.f32 %v4736_v36, %v7548_v42  ;;  %v4738_v57 = vmul.f32 %v4736_v36, %v7527_v17  ;;  %v4806_v38 = vsel %vm2260_vm9, %v4793_v31, %v4795_v49 }
 0x6e0   :  { %v4753_v58 = vadd.f32 %v4749_v1, %v4740_v56  ;;  %v4754_v2 = vadd.f32 %v4749_v1, %v4741_v6  ;;  %v4755_v3 = vadd.f32 %v4749_v1, %v4742_v62  ;;  %v4752_v10 = vadd.f32 %v4749_v1, %v4739_v50 }
 0x6e1   :  { %v4756_v21 = vadd.f32 %v4749_v1, %v4743_v5  ;;  %v4757_v33 = vadd.f32 %v4749_v1, %v4744_v14  ;;  %v4751_v18 = vadd.f32 %v4749_v1, %v4738_v57  ;;  %v4807_v42 = vsel %vm2260_vm9, %v4795_v49, %v4797_v45 }
 0x6e2   :  { %v4760_v60 = vmax.f32 %v4753_v58, 0.0  ;;  %v4761_v20 = vmax.f32 %v4754_v2, 0.0  ;;  %v4759_v52 = vmax.f32 %v4752_v10, 0.0  ;;  %v4762_v40 = vmax.f32 %v4755_v3, 0.0 }
 0x6e3   :  { %v4763_v17 = vmax.f32 %v4756_v21, 0.0  ;;  %v4764_v12 = vmax.f32 %v4757_v33, 0.0  ;;  %v4758_v19 = vmax.f32 %v4751_v18, 0.0 }
 0x6e4   :  { %v4821_v41 = vadd.f32 %v4807_v42, %v4761_v20  ;;  %v4819_v51 = vadd.f32 %v4805_v26, %v4759_v52  ;;  %v4820_v48 = vadd.f32 %v4806_v38, %v4760_v60  ;;  %v4822_v34 = vadd.f32 %v4808_v16, %v4762_v40 }
 0x6e5   :  { %v4823_v47 = vadd.f32 %v4809_v4, %v4763_v17  ;;  %v4824_v55 = vadd.f32 %v4810_v11, %v4764_v12  ;;  %v4789_v9 = vpop.permute.xlu2 %4788 }
 0x6e6   :  { %v4832_v30 = vrot.slane %v4821_v41, 4  ;;  %v4831_v54 = vrot.slane %v4819_v51, 4  ;;  %v4804_v35 = vsel %vm2260_vm9, %v4789_v9, %v4791_v15 }
 0x6e7   :  { %v4833_v59 = vrot.slane %v4823_v47, 4  ;;  %4843 = vst [vmem:[%s7617_s8 + $0x18] sm:$0xf] %v4824_v55  ;;  %v4818_v32 = vadd.f32 %v4804_v35, %v4758_v19 }
 0x6e8   :  { %v4835_v29 = vsel %vm109_vm1, %v4820_v48, %v4832_v30 }
 0x6e9   :  { %v4836_v13 = vsel %vm109_vm1, %v4822_v34, %v4833_v59  ;;  %4841 = vst [vmem:[%s7617_s8 + $0x8] sm:$0xff] %v4835_v29  ;;  %v4834_v28 = vsel %vm109_vm1, %v4818_v32, %v4831_v54 }
 0x6ea   :  { %4842 = vst [vmem:[%s7617_s8 + $0x10] sm:$0xff] %v4836_v13 }
 0x6eb   :  { %4840 = vst [vmem:[%s7617_s8] sm:$0xff] %v4834_v28 }

</bundles_post_ra>
